<compile_context>
chip_gen: v7x
topology: tpu7x:2x2x1
jax: 0.10.0
libtpu: 0.0.40
codegen_flags: <defaults>
</compile_context>

<pallas_src>
import jax
import jax.numpy as jnp
from jax.experimental import pallas as pl
from jax.experimental.pallas import tpu as pltpu

HIDDEN = 768
LANE = 128
_W2_TILE_BUDGET = 4 << 20    # bf16 bytes of one (HIDDEN, TN) W2 tile, per buffer
_FAST_PATH_BYTES = 4 << 20   # whole bf16 W2 at/below this -> single grid step


def _mlp_head_kernel(x_ref, w1_ref, b1_ref, w2_ref, b2_ref, o_ref):
    # h = ReLU(x @ W1 + b1) -- recomputed per column tile; tiny (B x 768 x 768)
    # and fully hidden under the W2-tile DMA, which keeps grid steps
    # independent so the tile axis can be megacore-parallel.
    x = x_ref[...].astype(jnp.bfloat16)           # [B, 768]; in-vreg cast
    h = jnp.dot(x, w1_ref[...], preferred_element_type=jnp.float32)
    h = jnp.maximum(h + b1_ref[...], 0.0).astype(jnp.bfloat16)
    # y_tile = Sigmoid(h @ W2[:, j*TN:(j+1)*TN] + b2_tile)
    y = jnp.dot(h, w2_ref[...], preferred_element_type=jnp.float32)
    o_ref[...] = jax.nn.sigmoid(y + b2_ref[...]).astype(o_ref.dtype)


def _pick_tile(out_dim):
    """Column-tile width for streaming W2/b2/out."""
    bytes_per_col = HIDDEN * 2  # bf16
    if out_dim * bytes_per_col <= _FAST_PATH_BYTES:
        return out_dim          # single tile: one weight DMA, no step overhead
    max_tn = _W2_TILE_BUDGET // bytes_per_col
    cands = [d for d in range(LANE, out_dim, LANE)
             if out_dim % d == 0 and d <= max_tn]
    if not cands:               # out_dim = 768*n_classes, so 128 always divides
        return LANE
    # Prefer an even number of tiles so v7x's two TensorCores get a balanced
    # split of the "parallel" grid axis.
    even = [d for d in cands if (out_dim // d) % 2 == 0]
    return max(even) if even else max(cands)


def _spec(shape, index_map, n_buffers=2):
    """BlockSpec with an optional buffer-count hint (falls back gracefully)."""
    if n_buffers != 2 and hasattr(pl, "Buffered"):
        try:
            return pl.BlockSpec(shape, index_map,
                                pipeline_mode=pl.Buffered(n_buffers))
        except TypeError:       # older JAX without pipeline_mode support
            pass
    return pl.BlockSpec(shape, index_map)


def prepare_head_params(w1, b1, w2, b2):
    """One-time (init-time) parameter prep: weights -> bf16, biases -> f32.

    Call this OUTSIDE the hot path so the bf16 copies stay HBM-resident and
    each kernel invocation reads exactly one half-width copy of the weights.
    """
    return (w1.astype(jnp.bfloat16), b1.astype(jnp.float32),
            w2.astype(jnp.bfloat16), b2.astype(jnp.float32))


def neuromodulator_head(x, w1, b1, w2, b2):
    """Fused Linear -> ReLU -> Linear -> Sigmoid head.

    x : (B, 768) float32 pooled encoder output (cast to bf16 inside the kernel)
    w1: (768, 768) bf16 (pre-cast once via prepare_head_params), b1: (1, 768) f32
    w2: (768, 768*n_classes) bf16,                               b2: (1, 768*n_classes) f32
    returns (B, 768*n_classes) float32
    """
    B = x.shape[0]
    out_dim = w2.shape[1]
    tn = _pick_tile(out_dim)
    n_tiles = out_dim // tn
    stream_bufs = 1 if n_tiles == 1 else 2  # no pipelining needed for one step

    return pl.pallas_call(
        _mlp_head_kernel,
        out_shape=jax.ShapeDtypeStruct((B, out_dim), jnp.float32),
        grid=(n_tiles,),
        in_specs=[
            _spec((B, HIDDEN), lambda j: (0, 0), n_buffers=1),        # x  (resident)
            _spec((HIDDEN, HIDDEN), lambda j: (0, 0), n_buffers=1),   # W1 (resident)
            _spec((1, HIDDEN), lambda j: (0, 0), n_buffers=1),        # b1 (resident)
            _spec((HIDDEN, tn), lambda j: (0, j), n_buffers=stream_bufs),  # W2 tile
            _spec((1, tn), lambda j: (0, j), n_buffers=stream_bufs),       # b2 tile
        ],
        out_specs=_spec((B, tn), lambda j: (0, j), n_buffers=stream_bufs),
        compiler_params=pltpu.CompilerParams(
            dimension_semantics=("parallel",),
        ),
    )(x, w1, b1, w2, b2)


def reference_head(x, w1, b1, w2, b2):
    h = jnp.maximum(x @ w1 + b1, 0.0)
    return jax.nn.sigmoid(h @ w2 + b2)


if __name__ == "__main__":
    n_classes = 2
    batch = 2

    key = jax.random.PRNGKey(0)
    k_x, k_w1, k_b1, k_w2, k_b2 = jax.random.split(key, 5)

    # Deterministic synthetic parameters (shapes from the module's __init__).
    x = jax.random.normal(k_x, (batch, HIDDEN), dtype=jnp.float32)
    w1 = jax.random.normal(k_w1, (HIDDEN, HIDDEN), dtype=jnp.float32) * 0.02
    b1 = jax.random.normal(k_b1, (1, HIDDEN), dtype=jnp.float32) * 0.02
    w2 = jax.random.normal(k_w2, (HIDDEN, HIDDEN * n_classes), dtype=jnp.float32) * 0.02
    b2 = jax.random.normal(k_b2, (1, HIDDEN * n_classes), dtype=jnp.float32) * 0.02

    # One-time parameter prep (bf16 weights stay HBM-resident across calls);
    # this is intentionally *outside* the per-call hot path.
    w1_p, b1_p, w2_p, b2_p = jax.block_until_ready(
        prepare_head_params(w1, b1, w2, b2))

    out = neuromodulator_head(x, w1_p, b1_p, w2_p, b2_p)
    out = jax.block_until_ready(out)

    ref = reference_head(x, w1, b1, w2, b2)
    assert out.shape == (batch, HIDDEN * n_classes), out.shape
    # bf16-resident weights -> tolerance relaxed vs the f32 reference.
    assert jnp.allclose(out, ref, atol=2e-2, rtol=2e-2), "mismatch vs reference"

    print("KERNEL_OK")
</pallas_src>

<mosaic_0001>
module attributes {stable_mosaic.version = 11 : i64} {
  func.func @_mlp_head_kernel(%arg0: i32, %arg1: memref<2x768xf32, #tpu.memory_space<vmem>>, %arg2: memref<768x768xbf16, #tpu.memory_space<vmem>>, %arg3: memref<1x768xf32, #tpu.memory_space<vmem>>, %arg4: memref<768x1536xbf16, #tpu.memory_space<vmem>>, %arg5: memref<1x1536xf32, #tpu.memory_space<vmem>>, %arg6: memref<2x1536xf32, #tpu.memory_space<vmem>>) attributes {dimension_semantics = [#tpu.dimension_semantics<parallel>], iteration_bounds = array<i64: 1>, scalar_prefetch = 0 : i64, scratch_operands = 0 : i64, tpu.core_type = #tpu.core_type<tc>, window_params = [{pipeline_mode = #tpu.pipeline_mode<synchronous>, transform_indices = @transform_0, window_bounds = array<i64: 2, 768>}, {pipeline_mode = #tpu.pipeline_mode<synchronous>, transform_indices = @transform_1, window_bounds = array<i64: 768, 768>}, {pipeline_mode = #tpu.pipeline_mode<synchronous>, transform_indices = @transform_2, window_bounds = array<i64: 1, 768>}, {pipeline_mode = #tpu.pipeline_mode<synchronous>, transform_indices = @transform_3, window_bounds = array<i64: 768, 1536>}, {pipeline_mode = #tpu.pipeline_mode<synchronous>, transform_indices = @transform_4, window_bounds = array<i64: 1, 1536>}, {pipeline_mode = #tpu.pipeline_mode<synchronous>, transform_indices = @transform_5, window_bounds = array<i64: 2, 1536>}]} {
    %c0 = arith.constant 0 : index
    %c0_0 = arith.constant 0 : index
    %0 = vector.load %arg1[%c0, %c0_0] : memref<2x768xf32, #tpu.memory_space<vmem>>, vector<2x768xf32>
    %1 = arith.truncf %0 : vector<2x768xf32> to vector<2x768xbf16>
    %c0_1 = arith.constant 0 : index
    %c0_2 = arith.constant 0 : index
    %2 = vector.load %arg2[%c0_1, %c0_2] : memref<768x768xbf16, #tpu.memory_space<vmem>>, vector<768x768xbf16>
    %cst = arith.constant dense<0.000000e+00> : vector<2x768xf32>
    %3 = tpu.matmul %1, %2, %cst {dimension_numbers = #tpu.dot_dimension_numbers<[1], [0], [0], [1], [0, 0, 1, 1], [], []>} : vector<2x768xbf16>, vector<768x768xbf16>, vector<2x768xf32> -> vector<2x768xf32>
    %c0_3 = arith.constant 0 : index
    %c0_4 = arith.constant 0 : index
    %4 = vector.load %arg3[%c0_3, %c0_4] : memref<1x768xf32, #tpu.memory_space<vmem>>, vector<1x768xf32>
    %5 = vector.broadcast %4 : vector<1x768xf32> to vector<2x768xf32>
    %6 = arith.addf %3, %5 : vector<2x768xf32>
    %cst_5 = arith.constant 0.000000e+00 : f32
    %7 = vector.broadcast %cst_5 : f32 to vector<2x768xf32>
    %8 = arith.maximumf %6, %7 : vector<2x768xf32>
    %9 = arith.truncf %8 : vector<2x768xf32> to vector<2x768xbf16>
    %c0_6 = arith.constant 0 : index
    %c0_7 = arith.constant 0 : index
    %10 = vector.load %arg4[%c0_6, %c0_7] : memref<768x1536xbf16, #tpu.memory_space<vmem>>, vector<768x1536xbf16>
    %cst_8 = arith.constant dense<0.000000e+00> : vector<2x1536xf32>
    %11 = tpu.matmul %9, %10, %cst_8 {dimension_numbers = #tpu.dot_dimension_numbers<[1], [0], [0], [1], [0, 0, 1, 1], [], []>} : vector<2x768xbf16>, vector<768x1536xbf16>, vector<2x1536xf32> -> vector<2x1536xf32>
    %c0_9 = arith.constant 0 : index
    %c0_10 = arith.constant 0 : index
    %12 = vector.load %arg5[%c0_9, %c0_10] : memref<1x1536xf32, #tpu.memory_space<vmem>>, vector<1x1536xf32>
    %13 = vector.broadcast %12 : vector<1x1536xf32> to vector<2x1536xf32>
    %14 = arith.addf %11, %13 : vector<2x1536xf32>
    %15 = arith.negf %14 : vector<2x1536xf32>
    %16 = math.exp %15 : vector<2x1536xf32>
    %cst_11 = arith.constant 1.000000e+00 : f32
    %17 = vector.broadcast %cst_11 : f32 to vector<2x1536xf32>
    %18 = arith.addf %17, %16 : vector<2x1536xf32>
    %19 = arith.divf %17, %18 : vector<2x1536xf32>
    %c0_12 = arith.constant 0 : index
    %c0_13 = arith.constant 0 : index
    %20 = vector.load %arg6[%c0_12, %c0_13] : memref<2x1536xf32, #tpu.memory_space<vmem>>, vector<2x1536xf32>
    tpu.vector_store %arg6[%c0_12, %c0_13], %19 {strides = array<i32>} : memref<2x1536xf32, #tpu.memory_space<vmem>>, vector<2x1536xf32>,
    return
  }
  func.func @transform_0(%arg0: i32) -> (i32, i32) {
    %c0_i32 = arith.constant 0 : i32
    %c0_i32_0 = arith.constant 0 : i32
    %c0_i32_1 = arith.constant 0 : i32
    return %c0_i32, %c0_i32_0 : i32, i32
  }
  func.func @transform_1(%arg0: i32) -> (i32, i32) {
    %c0_i32 = arith.constant 0 : i32
    %c0_i32_0 = arith.constant 0 : i32
    %c0_i32_1 = arith.constant 0 : i32
    return %c0_i32, %c0_i32_0 : i32, i32
  }
  func.func @transform_2(%arg0: i32) -> (i32, i32) {
    %c0_i32 = arith.constant 0 : i32
    %c0_i32_0 = arith.constant 0 : i32
    %c0_i32_1 = arith.constant 0 : i32
    return %c0_i32, %c0_i32_0 : i32, i32
  }
  func.func @transform_3(%arg0: i32) -> (i32, i32) {
    %c0_i32 = arith.constant 0 : i32
    %c0_i32_0 = arith.constant 0 : i32
    return %c0_i32, %arg0 : i32, i32
  }
  func.func @transform_4(%arg0: i32) -> (i32, i32) {
    %c0_i32 = arith.constant 0 : i32
    %c0_i32_0 = arith.constant 0 : i32
    return %c0_i32, %arg0 : i32, i32
  }
  func.func @transform_5(%arg0: i32) -> (i32, i32) {
    %c0_i32 = arith.constant 0 : i32
    %c0_i32_0 = arith.constant 0 : i32
    return %c0_i32, %arg0 : i32, i32
  }
}

</mosaic_0001>

<bundles_post_ra>
// kernel: tpu_custom_call.1
= control target key start
LH: loop header
LB: loop body
LE: loop exit
PB: predicated region body
PF: predicated region fallthrough
CT: control target
= control target key end

     0   :  { %10 = vsyncpa [#allocation3], 0  ;;  %s9411_s0 = inlined_call_operand.hbm [shape: f32[2,768], index: 0, kind: input, shape index: {}]   ;;  %s9412_s1 = inlined_call_operand.hbm [shape: bf16[768,768], index: 1, kind: input, shape index: {}]   ;;  %s9413_s2 = inlined_call_operand.hbm [shape: f32[1,768], index: 2, kind: input, shape index: {}]   ;;  %s9414_s3 = inlined_call_operand.hbm [shape: bf16[768,1536], index: 3, kind: input, shape index: {}]   ;;  %s9415_s4 = inlined_call_operand.hbm [shape: f32[1,1536], index: 4, kind: input, shape index: {}]   ;;  %s9416_s5 = inlined_call_operand.hbm [shape: f32[2,1536], index: 5, kind: output, shape index: {}]  }
   0x1   :  { %11 = vsyncpa [#allocation6], 0 }
   0x2   :  { %12 = vsyncpa [#allocation9], 0 }
   0x3   :  { %13 = vsyncpa [#allocation4], 0  ;;  %s9143_s18 = smov [#allocation5]   ;;  %s9003_s22 = scalar_lea.hbm %s9412_s1, 36864 }
   0x4   :  { %s29_s19 = sshll.u32 %s9143_s18, 4  ;;  %p9004_p0 = scmp.ne.s32.totalorder %s9412_s1, %s9003_s22  ;;  %s30_s19 = int_to_ptr.vmem [resolvable:$true] %s29_s19 }
   0x5   :  { %p9007_p1 = scmp.lt.u32.totalorder %s9003_s22, %s9412_s1 }
   0x7   :  { %p9009_p2 = pnand %p9007_p1, %p9004_p0 }
   0x9   :  { %9012 = shalt.err (!%p9009_p2)
}
   0xa   :  { %s9013_s27 = scalar_lea.vmem %s30_s19, 36864  ;;  %p9018_p4 = scmp.lt.s32.totalorder %s30_s19, %s30_s19 }
   0xb   :  { %p9014_p3 = scmp.ne.s32.totalorder %s30_s19, %s9013_s27  ;;  %p9019_p5 = scmp.lt.s32.totalorder %s9013_s27, %s9013_s27 }
   0xd   :  { %p9020_p6 = por %p9019_p5, %p9018_p4 }
   0xf   :  { %p9021_p7 = pnand %p9020_p6, %p9014_p3 }
  0x11   :  { %9024 = shalt.err (!%p9021_p7)
}
  0x12   :  { %s9144_s28 = smov 384   ;;  %s9145_s29 = smov 24  }
  0x13   :  { %35 = dma.hbm_to_vmem [thread:$0]  %s9412_s1, 36864, %s30_s19, [#allocation6], %s9144_s28, %s9144_s28, %s9145_s29  }
  0x14   :  { %s9146_s7 = smov [#allocation8]   ;;  %s9025_s11 = scalar_lea.hbm %s9414_s3, 73728 }
  0x15   :  { %s51_s8 = sshll.u32 %s9146_s7, 4  ;;  %p9026_p8 = scmp.ne.s32.totalorder %s9414_s3, %s9025_s11  ;;  %s52_s8 = int_to_ptr.vmem [resolvable:$true] %s51_s8 }
  0x16   :  { %p9029_p9 = scmp.lt.u32.totalorder %s9025_s11, %s9414_s3 }
  0x18   :  { %p9031_p10 = pnand %p9029_p9, %p9026_p8 }
  0x1a   :  { %9034 = shalt.err (!%p9031_p10)
}
  0x1b   :  { %s9035_s16 = scalar_lea.vmem %s52_s8, 73728  ;;  %p9040_p12 = scmp.lt.s32.totalorder %s52_s8, %s52_s8 }
  0x1c   :  { %p9036_p11 = scmp.ne.s32.totalorder %s52_s8, %s9035_s16  ;;  %p9041_p13 = scmp.lt.s32.totalorder %s9035_s16, %s9035_s16 }
  0x1e   :  { %p9042_p0 = por %p9041_p13, %p9040_p12 }
  0x20   :  { %p9043_p1 = pnand %p9042_p0, %p9036_p11 }
  0x22   :  { %9046 = shalt.err (!%p9043_p1)
}
  0x23   :  { %s9147_s1 = smov 768   ;;  %s9148_s17 = smov 48  }
  0x24   :  { %57 = dma.hbm_to_vmem [thread:$0]  %s9414_s3, 73728, %s52_s8, [#allocation9], %s9147_s1, %s9147_s1, %s9148_s17  }
  0x25   :  { %s9149_s20 = smov [#allocation2]   ;;  %s9150_s22 = smov [#allocation7]  }
  0x26   :  { %s20_s21 = sshll.u32 %s9149_s20, 4  ;;  %s42_s23 = sshll.u32 %s9150_s22, 4  ;;  %s21_s21 = int_to_ptr.vmem [resolvable:$true] %s20_s21  ;;  %s43_s23 = int_to_ptr.vmem [resolvable:$true] %s42_s23 }
  0x27   :  { %s9047_s26 = scalar_lea.hbm %s9411_s0, 192 }
  0x28   :  { %p9048_p2 = scmp.ne.s32.totalorder %s9411_s0, %s9047_s26  ;;  %p9051_p3 = scmp.lt.u32.totalorder %s9047_s26, %s9411_s0 }
  0x2a   :  { %p9053_p4 = pnand %p9051_p3, %p9048_p2 }
  0x2c   :  { %9056 = shalt.err (!%p9053_p4)
}
  0x2d   :  { %s9057_s3 = scalar_lea.vmem %s21_s21, 192  ;;  %p9062_p6 = scmp.lt.s32.totalorder %s21_s21, %s21_s21 }
  0x2e   :  { %p9058_p5 = scmp.ne.s32.totalorder %s21_s21, %s9057_s3  ;;  %p9063_p7 = scmp.lt.s32.totalorder %s9057_s3, %s9057_s3 }
  0x30   :  { %p9064_p8 = por %p9063_p7, %p9062_p6 }
  0x32   :  { %p9065_p9 = pnand %p9064_p8, %p9058_p5 }
  0x34   :  { %9068 = shalt.err (!%p9065_p9)
}
  0x35   :  { %23 = dma.hbm_to_vmem [thread:$0]  %s9411_s0, 192, %s21_s21, [#allocation3]  }
  0x36   :  { %s9069_s10 = scalar_lea.hbm %s9413_s2, 96 }
  0x37   :  { %p9070_p10 = scmp.ne.s32.totalorder %s9413_s2, %s9069_s10  ;;  %p9073_p11 = scmp.lt.u32.totalorder %s9069_s10, %s9413_s2 }
  0x39   :  { %p9075_p12 = pnand %p9073_p11, %p9070_p10 }
  0x3b   :  { %9078 = shalt.err (!%p9075_p12)
}
  0x3c   :  { %s9079_s15 = scalar_lea.vmem %s43_s23, 96  ;;  %p9084_p0 = scmp.lt.s32.totalorder %s43_s23, %s43_s23 }
  0x3d   :  { %p9080_p13 = scmp.ne.s32.totalorder %s43_s23, %s9079_s15  ;;  %p9085_p1 = scmp.lt.s32.totalorder %s9079_s15, %s9079_s15 }
  0x3f   :  { %p9086_p2 = por %p9085_p1, %p9084_p0 }
  0x41   :  { %p9087_p3 = pnand %p9086_p2, %p9080_p13 }
  0x43   :  { %9090 = shalt.err (!%p9087_p3)
}
  0x44   :  { %45 = dma.hbm_to_vmem [thread:$0]  %s9413_s2, 96, %s43_s23, [#allocation6]  }
  0x45   :  { %s9151_s1 = smov [#allocation10]   ;;  %s9091_s20 = scalar_lea.hbm %s9415_s4, 192 }
  0x46   :  { %s64_s17 = sshll.u32 %s9151_s1, 4  ;;  %p9092_p4 = scmp.ne.s32.totalorder %s9415_s4, %s9091_s20  ;;  %s65_s17 = int_to_ptr.vmem [resolvable:$true] %s64_s17 }
  0x47   :  { %p9095_p5 = scmp.lt.u32.totalorder %s9091_s20, %s9415_s4 }
  0x49   :  { %p9097_p6 = pnand %p9095_p5, %p9092_p4 }
  0x4b   :  { %9100 = shalt.err (!%p9097_p6)
}
  0x4c   :  { %s9101_s26 = scalar_lea.vmem %s65_s17, 192  ;;  %p9106_p8 = scmp.lt.s32.totalorder %s65_s17, %s65_s17 }
  0x4d   :  { %p9102_p7 = scmp.ne.s32.totalorder %s65_s17, %s9101_s26  ;;  %p9107_p9 = scmp.lt.s32.totalorder %s9101_s26, %s9101_s26 }
  0x4f   :  { %p9108_p10 = por %p9107_p9, %p9106_p8 }
  0x51   :  { %p9109_p11 = pnand %p9108_p10, %p9102_p7 }
  0x53   :  { %9112 = shalt.err (!%p9109_p11)
}
  0x54   :  { %67 = dma.hbm_to_vmem [thread:$0]  %s9415_s4, 192, %s65_s17, [#allocation9]  }
  0x55   :  { %9135 = dma.done.wait [#allocation3], 192  }
  0x56   :  { %9136 = vsyncadd [#allocation3], 4294967104 }
  0x57   :  { %9137 = dma.done.wait [#allocation6], 36960  }
  0x58   :  { %9138 = vsyncadd [#allocation6], 4294930336 }
  0x59   :  { %9139 = dma.done.wait [#allocation9], 73920  }
  0x5a   :  { %9140 = vsyncadd [#allocation9], 4294893376  ;;  %v7657_v0 = vld [vmem:[#allocation5 + $0x4] ss:$24 sps:$4 sm:$0xff]   ;;  %v7661_v2 = vld [vmem:[#allocation5] ss:$24 sps:$4 sm:$0xff]   ;;  %v91_v38 = vlaneseq }
  0x5b   :  { %v7659_v1 = vld [vmem:[#allocation5 + $0x304] ss:$24 sps:$4 sm:$0xff]   ;;  %1884 = vmatprep.subr.bf16.mxu1 %v7657_v0  ;;  %v7662_v3 = vld [vmem:[#allocation5 + $0x300] ss:$24 sps:$4 sm:$0xff]   ;;  %v7663_v4 = vld [vmem:[#allocation5 + $0x34] ss:$24 sps:$4 sm:$0xff]  }
  0x5c   :  { %1925 = vmatprep.subr.bf16.mxu0 %v7659_v1  ;;  %1885 = vmatpush1.bf16.msra.mxu1 %v7661_v2  ;;  %v7665_v5 = vld [vmem:[#allocation5 + $0x334] ss:$24 sps:$4 sm:$0xff]   ;;  %v7667_v6 = vld [vmem:[#allocation5 + $0x30] ss:$24 sps:$4 sm:$0xff]   ;;  %v7669_v8 = vld [vmem:[#allocation5 + $0x64] ss:$24 sps:$4 sm:$0xff]  }
  0x5d   :  { %1926 = vmatpush1.bf16.msra.mxu0 %v7662_v3  ;;  %1886 = vmatprep.subr.bf16.mxu1 %v7663_v4  ;;  %v7668_v7 = vld [vmem:[#allocation5 + $0x330] ss:$24 sps:$4 sm:$0xff]   ;;  %v7671_v9 = vld [vmem:[#allocation5 + $0x364] ss:$24 sps:$4 sm:$0xff]   ;;  %v7673_v10 = vld [vmem:[#allocation5 + $0x60] ss:$24 sps:$4 sm:$0xff]  }
  0x5e   :  { %1927 = vmatprep.subr.bf16.mxu0 %v7665_v5  ;;  %v7674_v11 = vld [vmem:[#allocation5 + $0x360] ss:$24 sps:$4 sm:$0xff]   ;;  %v7675_v12 = vld [vmem:[#allocation5 + $0x94] ss:$24 sps:$4 sm:$0xff]   ;;  %v7679_v14 = vld [vmem:[#allocation5 + $0x90] ss:$24 sps:$4 sm:$0xff]  }
  0x5f   :  { %v7677_v13 = vld [vmem:[#allocation5 + $0x394] ss:$24 sps:$4 sm:$0xff]   ;;  %v7680_v15 = vld [vmem:[#allocation5 + $0x390] ss:$24 sps:$4 sm:$0xff]   ;;  %v7681_v16 = vld [vmem:[#allocation5 + $0xc4] ss:$24 sps:$4 sm:$0xff]  }
  0x60   :  { %1887 = vmatpush1.bf16.msra.mxu1 %v7667_v6  ;;  %v7683_v17 = vld [vmem:[#allocation5 + $0x3c4] ss:$24 sps:$4 sm:$0xff]   ;;  %v7685_v18 = vld [vmem:[#allocation5 + $0xc0] ss:$24 sps:$4 sm:$0xff]   ;;  %v7687_v20 = vld [vmem:[#allocation5 + $0xf4] ss:$24 sps:$4 sm:$0xff]  }
  0x61   :  { %1928 = vmatpush1.bf16.msra.mxu0 %v7668_v7  ;;  %1888 = vmatprep.subr.bf16.mxu1 %v7669_v8  ;;  %v7686_v19 = vld [vmem:[#allocation5 + $0x3c0] ss:$24 sps:$4 sm:$0xff]   ;;  %v7689_v21 = vld [vmem:[#allocation5 + $0x3f4] ss:$24 sps:$4 sm:$0xff]   ;;  %v7691_v22 = vld [vmem:[#allocation5 + $0xf0] ss:$24 sps:$4 sm:$0xff]  }
  0x62   :  { %1929 = vmatprep.subr.bf16.mxu0 %v7671_v9  ;;  %v7692_v23 = vld [vmem:[#allocation5 + $0x3f0] ss:$24 sps:$4 sm:$0xff]   ;;  %v7693_v24 = vld [vmem:[#allocation5 + $0x124] ss:$24 sps:$4 sm:$0xff]   ;;  %v7697_v26 = vld [vmem:[#allocation5 + $0x120] ss:$24 sps:$4 sm:$0xff]  }
  0x63   :  { %v7695_v25 = vld [vmem:[#allocation5 + $0x424] ss:$24 sps:$4 sm:$0xff]   ;;  %v7698_v27 = vld [vmem:[#allocation5 + $0x420] ss:$24 sps:$4 sm:$0xff]   ;;  %v7699_v28 = vld [vmem:[#allocation5 + $0x154] ss:$24 sps:$4 sm:$0xff]  }
  0x64   :  { %1889 = vmatpush1.bf16.msra.mxu1 %v7673_v10  ;;  %v7701_v29 = vld [vmem:[#allocation5 + $0x454] ss:$24 sps:$4 sm:$0xff]   ;;  %v7703_v30 = vld [vmem:[#allocation5 + $0x150] ss:$24 sps:$4 sm:$0xff]   ;;  %v7705_v32 = vld [vmem:[#allocation5 + $0x184] ss:$24 sps:$4 sm:$0xff]  }
  0x65   :  { %1930 = vmatpush1.bf16.msra.mxu0 %v7674_v11  ;;  %1890 = vmatprep.subr.bf16.mxu1 %v7675_v12  ;;  %v7704_v31 = vld [vmem:[#allocation5 + $0x450] ss:$24 sps:$4 sm:$0xff]   ;;  %v7707_v33 = vld [vmem:[#allocation5 + $0x484] ss:$24 sps:$4 sm:$0xff]   ;;  %v7709_v34 = vld [vmem:[#allocation5 + $0x180] ss:$24 sps:$4 sm:$0xff]  }
  0x66   :  { %1931 = vmatprep.subr.bf16.mxu0 %v7677_v13  ;;  %v7710_v35 = vld [vmem:[#allocation5 + $0x480] ss:$24 sps:$4 sm:$0xff]   ;;  %v9152_v36 = vmov 1983009808   ;;  %v7711_v39 = vld [vmem:[#allocation5 + $0x1b4] ss:$24 sps:$4 sm:$0xff]  }
  0x67   :  { %v89_v37 = vunpack.c.l.s4 %v9152_v36  ;;  %v7713_v40 = vld [vmem:[#allocation5 + $0x4b4] ss:$24 sps:$4 sm:$0xff]   ;;  %v7715_v41 = vld [vmem:[#allocation5 + $0x1b0] ss:$24 sps:$4 sm:$0xff]   ;;  %v9244_v43 = vshrl.u32 %v91_v38, 7  ;;  %s9153_s4 = smov [#allocation11]  }
  0x68   :  { %1891 = vmatpush1.bf16.msra.mxu1 %v7679_v14  ;;  %v7716_v44 = vld [vmem:[#allocation5 + $0x4b0] ss:$24 sps:$4 sm:$0xff]   ;;  %v7717_v45 = vld [vmem:[#allocation5 + $0x1e4] ss:$24 sps:$4 sm:$0xff]   ;;  %v7721_v47 = vld [vmem:[#allocation5 + $0x1e0] ss:$24 sps:$4 sm:$0xff]  }
  0x69   :  { %1932 = vmatpush1.bf16.msra.mxu0 %v7680_v15  ;;  %1892 = vmatprep.subr.bf16.mxu1 %v7681_v16  ;;  %v90_v42 = vunpack.c.0.s8 %v89_v37  ;;  %v7719_v46 = vld [vmem:[#allocation5 + $0x4e4] ss:$24 sps:$4 sm:$0xff]   ;;  %v7722_v48 = vld [vmem:[#allocation5 + $0x4e0] ss:$24 sps:$4 sm:$0xff]   ;;  %v7723_v50 = vld [vmem:[#allocation5 + $0x214] ss:$24 sps:$4 sm:$0xff]  }
  0x6a   :  { %1933 = vmatprep.subr.bf16.mxu0 %v7683_v17  ;;  %v7725_v51 = vld [vmem:[#allocation5 + $0x514] ss:$24 sps:$4 sm:$0xff]   ;;  %v7727_v53 = vld [vmem:[#allocation5 + $0x210] ss:$24 sps:$4 sm:$0xff]   ;;  %v7729_v57 = vld [vmem:[#allocation5 + $0x244] ss:$24 sps:$4 sm:$0xff]  }
  0x6b   :  { %v9247_v49 = vsub.s32 %v90_v42, %v9244_v43  ;;  %v83_v52 = vld [vmem:[#allocation2] sm:$0xff]  ;;  %v7728_v56 = vld [vmem:[#allocation5 + $0x510] ss:$24 sps:$4 sm:$0xff]   ;;  %v7731_v58 = vld [vmem:[#allocation5 + $0x544] ss:$24 sps:$4 sm:$0xff]   ;;  %s6670_s27 = sshll.u32 %s9153_s4, 4  ;;  %s6671_s27 = int_to_ptr.vmem [resolvable:$true] %s6670_s27 }
  0x6c   :  { %1893 = vmatpush1.bf16.msra.mxu1 %v7685_v18  ;;  %v87_v55 = vcombine.high %v83_v52, %v83_v52  ;;  %v7733_v61 = vld [vmem:[#allocation5 + $0x240] ss:$24 sps:$4 sm:$0xff]   ;;  %v7735_v1 = vld [vmem:[#allocation5 + $0x274] ss:$24 sps:$4 sm:$0xff]   ;;  %v7739_v4 = vld [vmem:[#allocation5 + $0x270] ss:$24 sps:$4 sm:$0xff]   ;;  %p9118_p13 = scmp.lt.s32.totalorder %s6671_s27, %s6671_s27 }
  0x6d   :  { %1934 = vmatpush1.bf16.msra.mxu0 %v7686_v19  ;;  %1894 = vmatprep.subr.bf16.mxu1 %v7687_v20  ;;  %v94_v54 = vrot.slane %v83_v52, %v9247_v49  ;;  %v7734_v0 = vld [vmem:[#allocation5 + $0x540] ss:$24 sps:$4 sm:$0xff]   ;;  %v7737_v2 = vld [vmem:[#allocation5 + $0x574] ss:$24 sps:$4 sm:$0xff]   ;;  %v7740_v5 = vld [vmem:[#allocation5 + $0x570] ss:$24 sps:$4 sm:$0xff]  }
  0x6e   :  { %1935 = vmatprep.subr.bf16.mxu0 %v7689_v21  ;;  %v101_v60 = vrot.slane %v87_v55, %v9247_v49  ;;  %v7741_v6 = vld [vmem:[#allocation5 + $0x2a4] ss:$24 sps:$4 sm:$0xff]   ;;  %v7745_v8 = vld [vmem:[#allocation5 + $0x2a0] ss:$24 sps:$4 sm:$0xff]   ;;  %v7747_v10 = vld [vmem:[#allocation5 + $0x2d4] ss:$24 sps:$4 sm:$0xff]  }
  0x6f   :  { %v102_v59 = vcombine.high %v94_v54, %v94_v54  ;;  %v7743_v7 = vld [vmem:[#allocation5 + $0x5a4] ss:$24 sps:$4 sm:$0xff]   ;;  %v7746_v9 = vld [vmem:[#allocation5 + $0x5a0] ss:$24 sps:$4 sm:$0xff]   ;;  %v7749_v11 = vld [vmem:[#allocation5 + $0x5d4] ss:$24 sps:$4 sm:$0xff]   ;;  %v9257_v16 = vpack.c.bf16 %v94_v54, %v94_v54 }
  0x70   :  { %1895 = vmatpush1.bf16.msra.mxu1 %v7691_v22  ;;  %v103_v63 = vcombine.high %v101_v60, %v101_v60  ;;  %v7751_v12 = vld [vmem:[#allocation5 + $0x2d0] ss:$24 sps:$4 sm:$0xff]   ;;  %v7756_v14 = vld [vmem:[#allocation5 + $0x604] ss:$24 sps:$4 sm:$0xff]   ;;  %v7754_v17 = vld [vmem:[#allocation5 + $0x600] ss:$24 sps:$4 sm:$0xff]   ;;  %v9259_v18 = vpack.c.bf16 %v101_v60, %v101_v60 }
  0x71   :  { %1936 = vmatpush1.bf16.msra.mxu0 %v7692_v23  ;;  %1896 = vmatprep.subr.bf16.mxu1 %v7693_v24  ;;  %v9251_v62 = vpack.c.bf16 %v102_v59, %v102_v59  ;;  %v7752_v13 = vld [vmem:[#allocation5 + $0x5d0] ss:$24 sps:$4 sm:$0xff]   ;;  %v7759_v15 = vld [vmem:[#allocation5 + $0xc] ss:$24 sps:$4 sm:$0xff]   ;;  %v7765_v21 = vld [vmem:[#allocation5 + $0x3c] ss:$24 sps:$4 sm:$0xff]  }
  0x72   :  { %1937 = vmatprep.subr.bf16.mxu0 %v7695_v25  ;;  %v9253_v3 = vpack.c.bf16 %v103_v63, %v103_v63  ;;  %v7757_v19 = vld [vmem:[#allocation5 + $0x8] ss:$24 sps:$4 sm:$0xff]   ;;  %v7762_v20 = vld [vmem:[#allocation5 + $0x634] ss:$24 sps:$4 sm:$0xff]   ;;  %v7763_v23 = vld [vmem:[#allocation5 + $0x38] ss:$24 sps:$4 sm:$0xff]  }
  0x73   :  { %1916 = vmatprep.mubr.bf16.mxu1 %v9251_v62  ;;  %v7760_v22 = vld [vmem:[#allocation5 + $0x630] ss:$24 sps:$4 sm:$0xff]   ;;  %v7768_v24 = vld [vmem:[#allocation5 + $0x664] ss:$24 sps:$4 sm:$0xff]   ;;  %v7786_v36 = vld [vmem:[#allocation5 + $0x6f4] ss:$24 sps:$4 sm:$0xff]  }
  0x74   :  { %1897 = vmatpush1.bf16.msra.mxu1 %v7697_v26  ;;  %1957 = vmatprep.mubr.bf16.mxu0 %v9253_v3  ;;  %v7771_v25 = vld [vmem:[#allocation5 + $0x6c] ss:$24 sps:$4 sm:$0xff]   ;;  %v7766_v26 = vld [vmem:[#allocation5 + $0x660] ss:$24 sps:$4 sm:$0xff]   ;;  %v7789_v37 = vld [vmem:[#allocation5 + $0xfc] ss:$24 sps:$4 sm:$0xff]  }
  0x75   :  { %1938 = vmatpush1.bf16.msra.mxu0 %v7698_v27  ;;  %1898 = vmatprep.subr.bf16.mxu1 %v7699_v28  ;;  %v7769_v27 = vld [vmem:[#allocation5 + $0x68] ss:$24 sps:$4 sm:$0xff]   ;;  %v7774_v28 = vld [vmem:[#allocation5 + $0x694] ss:$24 sps:$4 sm:$0xff]   ;;  %v7799_v52 = vld [vmem:[#allocation5 + $0x158] ss:$24 sps:$4 sm:$0xff]  }
  0x76   :  { %1939 = vmatprep.subr.bf16.mxu0 %v7701_v29  ;;  %v7777_v29 = vld [vmem:[#allocation5 + $0x9c] ss:$24 sps:$4 sm:$0xff]   ;;  %v7784_v38 = vld [vmem:[#allocation5 + $0x6f0] ss:$24 sps:$4 sm:$0xff]   ;;  %v7807_v54 = vld [vmem:[#allocation5 + $0x18c] ss:$24 sps:$4 sm:$0xff]  }
  0x77   :  { %v9264_v42 = vld.sshfl [vmem:[#allocation2 + $0x8] sm:$0x33 pattern:$0x76325410]  ;;  %v7802_v55 = vld [vmem:[#allocation5 + $0x780] ss:$24 sps:$4 sm:$0xff]  }
  0x78   :  { %1899 = vmatpush1.bf16.msra.mxu1 %v7703_v30  ;;  %v7772_v30 = vld [vmem:[#allocation5 + $0x690] ss:$24 sps:$4 sm:$0xff]   ;;  %v7819_v63 = vld [vmem:[#allocation5 + $0x1ec] ss:$24 sps:$4 sm:$0xff]   ;;  %s9113_s28 = scalar_lea.vmem %s6671_s27, 384 }
  0x79   :  { %1940 = vmatpush1.bf16.msra.mxu0 %v7704_v31  ;;  %1900 = vmatprep.subr.bf16.mxu1 %v7705_v32  ;;  %v7775_v31 = vld [vmem:[#allocation5 + $0x98] ss:$24 sps:$4 sm:$0xff]   ;;  %v7780_v32 = vld [vmem:[#allocation5 + $0x6c4] ss:$24 sps:$4 sm:$0xff]   ;;  %p9114_p12 = scmp.ne.s32.totalorder %s6671_s27, %s9113_s28  ;;  %p9119_p0 = scmp.lt.s32.totalorder %s9113_s28, %s9113_s28 }
  0x7a   :  { %1941 = vmatprep.subr.bf16.mxu0 %v7707_v33  ;;  %v7783_v33 = vld [vmem:[#allocation5 + $0xcc] ss:$24 sps:$4 sm:$0xff]   ;;  %v7808_v59 = vld [vmem:[#allocation5 + $0x7b0] ss:$24 sps:$4 sm:$0xff]  }
  0x7b   :  { %v7811_v60 = vld [vmem:[#allocation5 + $0x1b8] ss:$24 sps:$4 sm:$0xff]   ;;  %p9120_p1 = por %p9119_p0, %p9118_p13 }
  0x7c   :  { %1901 = vmatpush1.bf16.msra.mxu1 %v7709_v34  ;;  %v7778_v34 = vld [vmem:[#allocation5 + $0x6c0] ss:$24 sps:$4 sm:$0xff]  }
  0x7d   :  { %1942 = vmatpush1.bf16.msra.mxu0 %v7710_v35  ;;  %1902 = vmatprep.subr.bf16.mxu1 %v7711_v39  ;;  %v7781_v35 = vld [vmem:[#allocation5 + $0xc8] ss:$24 sps:$4 sm:$0xff]   ;;  %v7787_v39 = vld [vmem:[#allocation5 + $0xf8] ss:$24 sps:$4 sm:$0xff]   ;;  %p9121_p2 = pnand %p9120_p1, %p9114_p12 }
  0x7e   :  { %1943 = vmatprep.subr.bf16.mxu0 %v7713_v40  ;;  %v7792_v40 = vld [vmem:[#allocation5 + $0x724] ss:$24 sps:$4 sm:$0xff]  }
  0x80   :  { %1903 = vmatpush1.bf16.msra.mxu1 %v7715_v41  ;;  %v7795_v41 = vld [vmem:[#allocation5 + $0x12c] ss:$24 sps:$4 sm:$0xff]  }
  0x81   :  { %1944 = vmatpush1.bf16.msra.mxu0 %v7716_v44  ;;  %1904 = vmatprep.subr.bf16.mxu1 %v7717_v45  ;;  %v111_v44 = vcombine.high %v9264_v42, %v9264_v42  ;;  %v7790_v45 = vld [vmem:[#allocation5 + $0x720] ss:$24 sps:$4 sm:$0xff]  }
  0x82   :  { %1945 = vmatprep.subr.bf16.mxu0 %v7719_v46  ;;  %v7793_v46 = vld [vmem:[#allocation5 + $0x128] ss:$24 sps:$4 sm:$0xff]  }
  0x84   :  { %1905 = vmatpush1.bf16.msra.mxu1 %v7721_v47  ;;  %v7798_v47 = vld [vmem:[#allocation5 + $0x754] ss:$24 sps:$4 sm:$0xff]  }
  0x85   :  { %1946 = vmatpush1.bf16.msra.mxu0 %v7722_v48  ;;  %1906 = vmatprep.subr.bf16.mxu1 %v7723_v50  ;;  %v7801_v48 = vld [vmem:[#allocation5 + $0x15c] ss:$24 sps:$4 sm:$0xff]   ;;  %v9268_v50 = vpack.c.bf16 %v111_v44, %v111_v44 }
  0x86   :  { %1947 = vmatprep.subr.bf16.mxu0 %v7725_v51  ;;  %v7796_v51 = vld [vmem:[#allocation5 + $0x750] ss:$24 sps:$4 sm:$0xff]   ;;  %v7879_v44 = vld [vmem:[#allocation5 + $0xd4] ss:$24 sps:$4 sm:$0xff]  }
  0x88   :  { %1907 = vmatpush1.bf16.msra.mxu1 %v7727_v53  ;;  %v7804_v53 = vld [vmem:[#allocation5 + $0x784] ss:$24 sps:$4 sm:$0xff]  }
  0x89   :  { %1948 = vmatpush1.bf16.msra.mxu0 %v7728_v56  ;;  %1908 = vmatprep.subr.bf16.mxu1 %v7729_v57  ;;  %v7805_v56 = vld [vmem:[#allocation5 + $0x188] ss:$24 sps:$4 sm:$0xff]   ;;  %v7810_v57 = vld [vmem:[#allocation5 + $0x7b4] ss:$24 sps:$4 sm:$0xff]  }
  0x8a   :  { %1949 = vmatprep.subr.bf16.mxu0 %v7731_v58  ;;  %v7813_v58 = vld [vmem:[#allocation5 + $0x1bc] ss:$24 sps:$4 sm:$0xff]  }
  0x8c   :  { %1909 = vmatpush1.bf16.msra.mxu1 %v7733_v61  ;;  %v7816_v61 = vld [vmem:[#allocation5 + $0x7e4] ss:$24 sps:$4 sm:$0xff]  }
  0x8d   :  { %1950 = vmatpush1.bf16.msra.mxu0 %v7734_v0  ;;  %1910 = vmatprep.subr.bf16.mxu1 %v7735_v1  ;;  %v7814_v0 = vld [vmem:[#allocation5 + $0x7e0] ss:$24 sps:$4 sm:$0xff]  }
  0x8e   :  { %1951 = vmatprep.subr.bf16.mxu0 %v7737_v2  ;;  %v7817_v1 = vld [vmem:[#allocation5 + $0x1e8] ss:$24 sps:$4 sm:$0xff]   ;;  %v7822_v2 = vld [vmem:[#allocation5 + $0x814] ss:$24 sps:$4 sm:$0xff]  }
  0x90   :  { %1911 = vmatpush1.bf16.msra.mxu1 %v7739_v4  ;;  %v7825_v4 = vld [vmem:[#allocation5 + $0x21c] ss:$24 sps:$4 sm:$0xff]  }
  0x91   :  { %1952 = vmatpush1.bf16.msra.mxu0 %v7740_v5  ;;  %1912 = vmatprep.subr.bf16.mxu1 %v7741_v6  ;;  %v7820_v5 = vld [vmem:[#allocation5 + $0x810] ss:$24 sps:$4 sm:$0xff]  }
  0x92   :  { %1953 = vmatprep.subr.bf16.mxu0 %v7743_v7  ;;  %v7823_v6 = vld [vmem:[#allocation5 + $0x218] ss:$24 sps:$4 sm:$0xff]   ;;  %v7828_v7 = vld [vmem:[#allocation5 + $0x844] ss:$24 sps:$4 sm:$0xff]  }
  0x94   :  { %1913 = vmatpush1.bf16.msra.mxu1 %v7745_v8  ;;  %v7831_v8 = vld [vmem:[#allocation5 + $0x24c] ss:$24 sps:$4 sm:$0xff]  }
  0x95   :  { %1954 = vmatpush1.bf16.msra.mxu0 %v7746_v9  ;;  %1914 = vmatprep.subr.bf16.mxu1 %v7747_v10  ;;  %v7826_v9 = vld [vmem:[#allocation5 + $0x840] ss:$24 sps:$4 sm:$0xff]  }
  0x96   :  { %1955 = vmatprep.subr.bf16.mxu0 %v7749_v11  ;;  %v7829_v10 = vld [vmem:[#allocation5 + $0x248] ss:$24 sps:$4 sm:$0xff]   ;;  %v7834_v11 = vld [vmem:[#allocation5 + $0x874] ss:$24 sps:$4 sm:$0xff]  }
  0x98   :  { %1915 = vmatpush1.bf16.msra.mxu1 %v7751_v12  ;;  %v7837_v12 = vld [vmem:[#allocation5 + $0x27c] ss:$24 sps:$4 sm:$0xff]  }
  0x99   :  { %1956 = vmatpush1.bf16.msra.mxu0 %v7752_v13  ;;  %2007 = vmatprep.subr.bf16.mxu1 %v7759_v15  ;;  %v7832_v13 = vld [vmem:[#allocation5 + $0x870] ss:$24 sps:$4 sm:$0xff]   ;;  %v7840_v15 = vld [vmem:[#allocation5 + $0x8a4] ss:$24 sps:$4 sm:$0xff]  }
  0x9a   :  { %1966 = vmatprep.subr.bf16.mxu0 %v7756_v14  ;;  %v7835_v14 = vld [vmem:[#allocation5 + $0x278] ss:$24 sps:$4 sm:$0xff]  }
  0x9b   :  { %1917 = vmatmul.mubr.bf16.vlgmr.msra.gmra.mrb[0].mxu1 %v9257_v16 }
  0x9c   :  { %1958 = vmatmul.mubr.bf16.vlgmr.msra.gmra.mrb[0].mxu0 %v9259_v18  ;;  %2008 = vmatpush1.bf16.msra.mxu1 %v7757_v19  ;;  %v7838_v19 = vld [vmem:[#allocation5 + $0x8a0] ss:$24 sps:$4 sm:$0xff]  }
  0x9d   :  { %1967 = vmatpush1.bf16.msra.mxu0 %v7754_v17  ;;  %2009 = vmatprep.subr.bf16.mxu1 %v7765_v21  ;;  %v7843_v17 = vld [vmem:[#allocation5 + $0x2ac] ss:$24 sps:$4 sm:$0xff]  }
  0x9e   :  { %1968 = vmatprep.subr.bf16.mxu0 %v7762_v20  ;;  %2039 = vmatprep.mubr.bf16.mxu1 %v9251_v62  ;;  %v7841_v20 = vld [vmem:[#allocation5 + $0x2a8] ss:$24 sps:$4 sm:$0xff]   ;;  %v7846_v21 = vld [vmem:[#allocation5 + $0x8d4] ss:$24 sps:$4 sm:$0xff]  }
  0x9f   :  { %1998 = vmatprep.mubr.bf16.mxu0 %v9268_v50 }
  0xa0   :  { %2010 = vmatpush1.bf16.msra.mxu1 %v7763_v23  ;;  %v7844_v23 = vld [vmem:[#allocation5 + $0x8d0] ss:$24 sps:$4 sm:$0xff]  }
  0xa1   :  { %1969 = vmatpush1.bf16.msra.mxu0 %v7760_v22  ;;  %2011 = vmatprep.subr.bf16.mxu1 %v7771_v25  ;;  %v7849_v22 = vld [vmem:[#allocation5 + $0x2dc] ss:$24 sps:$4 sm:$0xff]   ;;  %v7852_v25 = vld [vmem:[#allocation5 + $0x30c] ss:$24 sps:$4 sm:$0xff]  }
  0xa2   :  { %1970 = vmatprep.subr.bf16.mxu0 %v7768_v24  ;;  %v7847_v24 = vld [vmem:[#allocation5 + $0x2d8] ss:$24 sps:$4 sm:$0xff]  }
  0xa4   :  { %2012 = vmatpush1.bf16.msra.mxu1 %v7769_v27  ;;  %v9273_v27 = vpack.c.bf16 %v9264_v42, %v9264_v42  ;;  %v7876_v42 = vld [vmem:[#allocation5 + $0x3cc] ss:$24 sps:$4 sm:$0xff]  }
  0xa5   :  { %1971 = vmatpush1.bf16.msra.mxu0 %v7766_v26  ;;  %2013 = vmatprep.subr.bf16.mxu1 %v7777_v29  ;;  %v7855_v26 = vld [vmem:[#allocation5 + $0x14] ss:$24 sps:$4 sm:$0xff]   ;;  %v7853_v29 = vld [vmem:[#allocation5 + $0x10] ss:$24 sps:$4 sm:$0xff]  }
  0xa6   :  { %1972 = vmatprep.subr.bf16.mxu0 %v7774_v28  ;;  %v7850_v28 = vld [vmem:[#allocation5 + $0x308] ss:$24 sps:$4 sm:$0xff]  }
  0xa8   :  { %2014 = vmatpush1.bf16.msra.mxu1 %v7775_v31  ;;  %v7861_v31 = vld [vmem:[#allocation5 + $0x44] ss:$24 sps:$4 sm:$0xff]  }
  0xa9   :  { %1973 = vmatpush1.bf16.msra.mxu0 %v7772_v30  ;;  %2015 = vmatprep.subr.bf16.mxu1 %v7783_v33  ;;  %v7858_v30 = vld [vmem:[#allocation5 + $0x33c] ss:$24 sps:$4 sm:$0xff]   ;;  %v7859_v33 = vld [vmem:[#allocation5 + $0x40] ss:$24 sps:$4 sm:$0xff]  }
  0xaa   :  { %1974 = vmatprep.subr.bf16.mxu0 %v7780_v32  ;;  %v7856_v32 = vld [vmem:[#allocation5 + $0x338] ss:$24 sps:$4 sm:$0xff]  }
  0xac   :  { %2016 = vmatpush1.bf16.msra.mxu1 %v7781_v35  ;;  %v7867_v35 = vld [vmem:[#allocation5 + $0x74] ss:$24 sps:$4 sm:$0xff]  }
  0xad   :  { %1975 = vmatpush1.bf16.msra.mxu0 %v7778_v34  ;;  %2017 = vmatprep.subr.bf16.mxu1 %v7789_v37  ;;  %v7864_v34 = vld [vmem:[#allocation5 + $0x36c] ss:$24 sps:$4 sm:$0xff]   ;;  %v7865_v37 = vld [vmem:[#allocation5 + $0x70] ss:$24 sps:$4 sm:$0xff]  }
  0xae   :  { %1976 = vmatprep.subr.bf16.mxu0 %v7786_v36  ;;  %v7862_v36 = vld [vmem:[#allocation5 + $0x368] ss:$24 sps:$4 sm:$0xff]  }
  0xb0   :  { %2018 = vmatpush1.bf16.msra.mxu1 %v7787_v39  ;;  %v7873_v39 = vld [vmem:[#allocation5 + $0xa4] ss:$24 sps:$4 sm:$0xff]  }
  0xb1   :  { %1977 = vmatpush1.bf16.msra.mxu0 %v7784_v38  ;;  %2019 = vmatprep.subr.bf16.mxu1 %v7795_v41  ;;  %v7870_v38 = vld [vmem:[#allocation5 + $0x39c] ss:$24 sps:$4 sm:$0xff]   ;;  %v7871_v41 = vld [vmem:[#allocation5 + $0xa0] ss:$24 sps:$4 sm:$0xff]  }
  0xb2   :  { %1978 = vmatprep.subr.bf16.mxu0 %v7792_v40  ;;  %v7868_v40 = vld [vmem:[#allocation5 + $0x398] ss:$24 sps:$4 sm:$0xff]  }
  0xb4   :  { %2020 = vmatpush1.bf16.msra.mxu1 %v7793_v46  ;;  %v7882_v46 = vld [vmem:[#allocation5 + $0x3fc] ss:$24 sps:$4 sm:$0xff]  }
  0xb5   :  { %1979 = vmatpush1.bf16.msra.mxu0 %v7790_v45  ;;  %2021 = vmatprep.subr.bf16.mxu1 %v7801_v48  ;;  %v7874_v45 = vld [vmem:[#allocation5 + $0x3c8] ss:$24 sps:$4 sm:$0xff]   ;;  %v7880_v48 = vld [vmem:[#allocation5 + $0x3f8] ss:$24 sps:$4 sm:$0xff]  }
  0xb6   :  { %1980 = vmatprep.subr.bf16.mxu0 %v7798_v47  ;;  %v7885_v47 = vld [vmem:[#allocation5 + $0x104] ss:$24 sps:$4 sm:$0xff]  }
  0xb8   :  { %2022 = vmatpush1.bf16.msra.mxu1 %v7799_v52  ;;  %v7888_v52 = vld [vmem:[#allocation5 + $0x42c] ss:$24 sps:$4 sm:$0xff]  }
  0xb9   :  { %1981 = vmatpush1.bf16.msra.mxu0 %v7796_v51  ;;  %2023 = vmatprep.subr.bf16.mxu1 %v7807_v54  ;;  %v7883_v51 = vld [vmem:[#allocation5 + $0x100] ss:$24 sps:$4 sm:$0xff]  }
  0xba   :  { %1982 = vmatprep.subr.bf16.mxu0 %v7804_v53  ;;  %v7891_v53 = vld [vmem:[#allocation5 + $0x134] ss:$24 sps:$4 sm:$0xff]   ;;  %v7886_v54 = vld [vmem:[#allocation5 + $0x428] ss:$24 sps:$4 sm:$0xff]  }
  0xbc   :  { %2024 = vmatpush1.bf16.msra.mxu1 %v7805_v56  ;;  %v7894_v56 = vld [vmem:[#allocation5 + $0x45c] ss:$24 sps:$4 sm:$0xff]  }
  0xbd   :  { %1983 = vmatpush1.bf16.msra.mxu0 %v7802_v55  ;;  %2025 = vmatprep.subr.bf16.mxu1 %v7813_v58  ;;  %v7889_v55 = vld [vmem:[#allocation5 + $0x130] ss:$24 sps:$4 sm:$0xff]  }
  0xbe   :  { %1984 = vmatprep.subr.bf16.mxu0 %v7810_v57  ;;  %v7897_v57 = vld [vmem:[#allocation5 + $0x164] ss:$24 sps:$4 sm:$0xff]   ;;  %v7892_v58 = vld [vmem:[#allocation5 + $0x458] ss:$24 sps:$4 sm:$0xff]  }
  0xc0   :  { %2026 = vmatpush1.bf16.msra.mxu1 %v7811_v60  ;;  %v7900_v60 = vld [vmem:[#allocation5 + $0x48c] ss:$24 sps:$4 sm:$0xff]  }
  0xc1   :  { %1985 = vmatpush1.bf16.msra.mxu0 %v7808_v59  ;;  %2027 = vmatprep.subr.bf16.mxu1 %v7819_v63  ;;  %v7895_v59 = vld [vmem:[#allocation5 + $0x160] ss:$24 sps:$4 sm:$0xff]  }
  0xc2   :  { %1986 = vmatprep.subr.bf16.mxu0 %v7816_v61  ;;  %v7903_v61 = vld [vmem:[#allocation5 + $0x194] ss:$24 sps:$4 sm:$0xff]   ;;  %v7898_v63 = vld [vmem:[#allocation5 + $0x488] ss:$24 sps:$4 sm:$0xff]  }
  0xc4   :  { %2028 = vmatpush1.bf16.msra.mxu1 %v7817_v1  ;;  %v7906_v1 = vld [vmem:[#allocation5 + $0x4bc] ss:$24 sps:$4 sm:$0xff]  }
  0xc5   :  { %1987 = vmatpush1.bf16.msra.mxu0 %v7814_v0  ;;  %2029 = vmatprep.subr.bf16.mxu1 %v7825_v4  ;;  %v7901_v0 = vld [vmem:[#allocation5 + $0x190] ss:$24 sps:$4 sm:$0xff]  }
  0xc6   :  { %1988 = vmatprep.subr.bf16.mxu0 %v7822_v2  ;;  %v7909_v2 = vld [vmem:[#allocation5 + $0x1c4] ss:$24 sps:$4 sm:$0xff]   ;;  %v7904_v4 = vld [vmem:[#allocation5 + $0x4b8] ss:$24 sps:$4 sm:$0xff]  }
  0xc8   :  { %2030 = vmatpush1.bf16.msra.mxu1 %v7823_v6  ;;  %v7912_v6 = vld [vmem:[#allocation5 + $0x4ec] ss:$24 sps:$4 sm:$0xff]  }
  0xc9   :  { %1989 = vmatpush1.bf16.msra.mxu0 %v7820_v5  ;;  %2031 = vmatprep.subr.bf16.mxu1 %v7831_v8  ;;  %v7907_v5 = vld [vmem:[#allocation5 + $0x1c0] ss:$24 sps:$4 sm:$0xff]  }
  0xca   :  { %1990 = vmatprep.subr.bf16.mxu0 %v7828_v7  ;;  %v7915_v7 = vld [vmem:[#allocation5 + $0x1f4] ss:$24 sps:$4 sm:$0xff]   ;;  %v7910_v8 = vld [vmem:[#allocation5 + $0x4e8] ss:$24 sps:$4 sm:$0xff]  }
  0xcc   :  { %2032 = vmatpush1.bf16.msra.mxu1 %v7829_v10  ;;  %v7918_v10 = vld [vmem:[#allocation5 + $0x51c] ss:$24 sps:$4 sm:$0xff]  }
  0xcd   :  { %1991 = vmatpush1.bf16.msra.mxu0 %v7826_v9  ;;  %2033 = vmatprep.subr.bf16.mxu1 %v7837_v12  ;;  %v7913_v9 = vld [vmem:[#allocation5 + $0x1f0] ss:$24 sps:$4 sm:$0xff]  }
  0xce   :  { %1992 = vmatprep.subr.bf16.mxu0 %v7834_v11  ;;  %v7921_v11 = vld [vmem:[#allocation5 + $0x224] ss:$24 sps:$4 sm:$0xff]   ;;  %v7916_v12 = vld [vmem:[#allocation5 + $0x518] ss:$24 sps:$4 sm:$0xff]  }
  0xd0   :  { %2034 = vmatpush1.bf16.msra.mxu1 %v7835_v14  ;;  %v7924_v14 = vld [vmem:[#allocation5 + $0x54c] ss:$24 sps:$4 sm:$0xff]  }
  0xd1   :  { %1993 = vmatpush1.bf16.msra.mxu0 %v7832_v13  ;;  %2035 = vmatprep.subr.bf16.mxu1 %v7843_v17  ;;  %v7919_v13 = vld [vmem:[#allocation5 + $0x220] ss:$24 sps:$4 sm:$0xff]  }
  0xd2   :  { %1994 = vmatprep.subr.bf16.mxu0 %v7840_v15  ;;  %v7927_v15 = vld [vmem:[#allocation5 + $0x254] ss:$24 sps:$4 sm:$0xff]   ;;  %v7922_v17 = vld [vmem:[#allocation5 + $0x548] ss:$24 sps:$4 sm:$0xff]  }
  0xd4   :  { %2036 = vmatpush1.bf16.msra.mxu1 %v7841_v20  ;;  %v7930_v20 = vld [vmem:[#allocation5 + $0x57c] ss:$24 sps:$4 sm:$0xff]  }
  0xd5   :  { %1995 = vmatpush1.bf16.msra.mxu0 %v7838_v19  ;;  %2037 = vmatprep.subr.bf16.mxu1 %v7849_v22  ;;  %v7925_v19 = vld [vmem:[#allocation5 + $0x250] ss:$24 sps:$4 sm:$0xff]  }
  0xd6   :  { %1996 = vmatprep.subr.bf16.mxu0 %v7846_v21  ;;  %v7933_v21 = vld [vmem:[#allocation5 + $0x284] ss:$24 sps:$4 sm:$0xff]   ;;  %v7928_v22 = vld [vmem:[#allocation5 + $0x578] ss:$24 sps:$4 sm:$0xff]  }
  0xd8   :  { %2038 = vmatpush1.bf16.msra.mxu1 %v7847_v24  ;;  %v7936_v24 = vld [vmem:[#allocation5 + $0x5ac] ss:$24 sps:$4 sm:$0xff]  }
  0xd9   :  { %1997 = vmatpush1.bf16.msra.mxu0 %v7844_v23  ;;  %2048 = vmatprep.subr.bf16.mxu1 %v7852_v25  ;;  %v7931_v23 = vld [vmem:[#allocation5 + $0x280] ss:$24 sps:$4 sm:$0xff]   ;;  %v7939_v25 = vld [vmem:[#allocation5 + $0x2b4] ss:$24 sps:$4 sm:$0xff]  }
  0xda   :  { %2130 = vmatprep.subr.bf16.mxu0 %v7855_v26  ;;  %v7934_v26 = vld [vmem:[#allocation5 + $0x5a8] ss:$24 sps:$4 sm:$0xff]  }
  0xdb   :  { %2040 = vmatmul.mubr.bf16.vlgmr.msra.gmra.mrb[4].mxu1 %v9257_v16 }
  0xdc   :  { %1999 = vmatmul.mubr.bf16.vlgmr.msra.gmra.mrb[0].mxu0 %v9273_v27  ;;  %2049 = vmatpush1.bf16.msra.mxu1 %v7850_v28  ;;  %v7937_v28 = vld [vmem:[#allocation5 + $0x2b0] ss:$24 sps:$4 sm:$0xff]  }
  0xdd   :  { %2131 = vmatpush1.bf16.msra.mxu0 %v7853_v29  ;;  %2050 = vmatprep.subr.bf16.mxu1 %v7858_v30  ;;  %v7942_v29 = vld [vmem:[#allocation5 + $0x5dc] ss:$24 sps:$4 sm:$0xff]  }
  0xde   :  { %2132 = vmatprep.subr.bf16.mxu0 %v7861_v31  ;;  %2080 = vmatprep.mubr.bf16.mxu1 %v9253_v3  ;;  %v7945_v30 = vld [vmem:[#allocation5 + $0x2e4] ss:$24 sps:$4 sm:$0xff]   ;;  %v7940_v31 = vld [vmem:[#allocation5 + $0x5d8] ss:$24 sps:$4 sm:$0xff]  }
  0xdf   :  { %2162 = vmatprep.mubr.bf16.mxu0 %v9251_v62  ;;  %v7877_v62 = vld [vmem:[#allocation5 + $0xd0] ss:$24 sps:$4 sm:$0xff]  }
  0xe0   :  { %2051 = vmatpush1.bf16.msra.mxu1 %v7856_v32  ;;  %v7943_v32 = vld [vmem:[#allocation5 + $0x2e0] ss:$24 sps:$4 sm:$0xff]  }
  0xe1   :  { %2133 = vmatpush1.bf16.msra.mxu0 %v7859_v33  ;;  %2052 = vmatprep.subr.bf16.mxu1 %v7864_v34  ;;  %v7948_v33 = vld [vmem:[#allocation5 + $0x60c] ss:$24 sps:$4 sm:$0xff]  }
  0xe2   :  { %2134 = vmatprep.subr.bf16.mxu0 %v7867_v35  ;;  %v7951_v34 = vld [vmem:[#allocation5 + $0x314] ss:$24 sps:$4 sm:$0xff]   ;;  %v7946_v35 = vld [vmem:[#allocation5 + $0x608] ss:$24 sps:$4 sm:$0xff]  }
  0xe4   :  { %2053 = vmatpush1.bf16.msra.mxu1 %v7862_v36  ;;  %v7949_v36 = vld [vmem:[#allocation5 + $0x310] ss:$24 sps:$4 sm:$0xff]  }
  0xe5   :  { %2135 = vmatpush1.bf16.msra.mxu0 %v7865_v37  ;;  %2054 = vmatprep.subr.bf16.mxu1 %v7870_v38  ;;  %v7954_v37 = vld [vmem:[#allocation5 + $0x63c] ss:$24 sps:$4 sm:$0xff]  }
  0xe6   :  { %2136 = vmatprep.subr.bf16.mxu0 %v7873_v39  ;;  %v7957_v38 = vld [vmem:[#allocation5 + $0x344] ss:$24 sps:$4 sm:$0xff]   ;;  %v7952_v39 = vld [vmem:[#allocation5 + $0x638] ss:$24 sps:$4 sm:$0xff]  }
  0xe8   :  { %2055 = vmatpush1.bf16.msra.mxu1 %v7868_v40  ;;  %v7955_v40 = vld [vmem:[#allocation5 + $0x340] ss:$24 sps:$4 sm:$0xff]  }
  0xe9   :  { %2137 = vmatpush1.bf16.msra.mxu0 %v7871_v41  ;;  %2056 = vmatprep.subr.bf16.mxu1 %v7876_v42  ;;  %v7960_v41 = vld [vmem:[#allocation5 + $0x66c] ss:$24 sps:$4 sm:$0xff]  }
  0xea   :  { %2138 = vmatprep.subr.bf16.mxu0 %v7879_v44  ;;  %v7963_v42 = vld [vmem:[#allocation5 + $0x374] ss:$24 sps:$4 sm:$0xff]   ;;  %v7958_v44 = vld [vmem:[#allocation5 + $0x668] ss:$24 sps:$4 sm:$0xff]  }
  0xec   :  { %2057 = vmatpush1.bf16.msra.mxu1 %v7874_v45  ;;  %v7961_v45 = vld [vmem:[#allocation5 + $0x370] ss:$24 sps:$4 sm:$0xff]  }
  0xed   :  { %2139 = vmatpush1.bf16.msra.mxu0 %v7877_v62  ;;  %2058 = vmatprep.subr.bf16.mxu1 %v7882_v46  ;;  %v7966_v62 = vld [vmem:[#allocation5 + $0x69c] ss:$24 sps:$4 sm:$0xff]   ;;  %v7964_v46 = vld [vmem:[#allocation5 + $0x698] ss:$24 sps:$4 sm:$0xff]  }
  0xee   :  { %2140 = vmatprep.subr.bf16.mxu0 %v7885_v47  ;;  %v7967_v47 = vld [vmem:[#allocation5 + $0x3a0] ss:$24 sps:$4 sm:$0xff]  }
  0xf0   :  { %2059 = vmatpush1.bf16.msra.mxu1 %v7880_v48  ;;  %v7972_v48 = vld [vmem:[#allocation5 + $0x6cc] ss:$24 sps:$4 sm:$0xff]  }
  0xf1   :  { %2141 = vmatpush1.bf16.msra.mxu0 %v7883_v51  ;;  %2060 = vmatprep.subr.bf16.mxu1 %v7888_v52  ;;  %v7975_v51 = vld [vmem:[#allocation5 + $0x3d4] ss:$24 sps:$4 sm:$0xff]   ;;  %v7970_v52 = vld [vmem:[#allocation5 + $0x6c8] ss:$24 sps:$4 sm:$0xff]  }
  0xf2   :  { %2142 = vmatprep.subr.bf16.mxu0 %v7891_v53  ;;  %v7978_v53 = vld [vmem:[#allocation5 + $0x6fc] ss:$24 sps:$4 sm:$0xff]  }
  0xf4   :  { %2061 = vmatpush1.bf16.msra.mxu1 %v7886_v54  ;;  %v7981_v54 = vld [vmem:[#allocation5 + $0x404] ss:$24 sps:$4 sm:$0xff]  }
  0xf5   :  { %2143 = vmatpush1.bf16.msra.mxu0 %v7889_v55  ;;  %2062 = vmatprep.subr.bf16.mxu1 %v7894_v56  ;;  %v7976_v55 = vld [vmem:[#allocation5 + $0x6f8] ss:$24 sps:$4 sm:$0xff]  }
  0xf6   :  { %2144 = vmatprep.subr.bf16.mxu0 %v7897_v57  ;;  %v7979_v56 = vld [vmem:[#allocation5 + $0x400] ss:$24 sps:$4 sm:$0xff]   ;;  %v7984_v57 = vld [vmem:[#allocation5 + $0x72c] ss:$24 sps:$4 sm:$0xff]  }
  0xf8   :  { %2063 = vmatpush1.bf16.msra.mxu1 %v7892_v58  ;;  %v7987_v58 = vld [vmem:[#allocation5 + $0x434] ss:$24 sps:$4 sm:$0xff]  }
  0xf9   :  { %2145 = vmatpush1.bf16.msra.mxu0 %v7895_v59  ;;  %2064 = vmatprep.subr.bf16.mxu1 %v7900_v60  ;;  %v7982_v59 = vld [vmem:[#allocation5 + $0x728] ss:$24 sps:$4 sm:$0xff]  }
  0xfa   :  { %2146 = vmatprep.subr.bf16.mxu0 %v7903_v61  ;;  %v7985_v60 = vld [vmem:[#allocation5 + $0x430] ss:$24 sps:$4 sm:$0xff]   ;;  %v7990_v61 = vld [vmem:[#allocation5 + $0x75c] ss:$24 sps:$4 sm:$0xff]  }
  0xfc   :  { %2065 = vmatpush1.bf16.msra.mxu1 %v7898_v63  ;;  %v7993_v63 = vld [vmem:[#allocation5 + $0x464] ss:$24 sps:$4 sm:$0xff]  }
  0xfd   :  { %2147 = vmatpush1.bf16.msra.mxu0 %v7901_v0  ;;  %2066 = vmatprep.subr.bf16.mxu1 %v7906_v1  ;;  %v7988_v0 = vld [vmem:[#allocation5 + $0x758] ss:$24 sps:$4 sm:$0xff]  }
  0xfe   :  { %2148 = vmatprep.subr.bf16.mxu0 %v7909_v2  ;;  %v7991_v1 = vld [vmem:[#allocation5 + $0x460] ss:$24 sps:$4 sm:$0xff]   ;;  %v7996_v2 = vld [vmem:[#allocation5 + $0x78c] ss:$24 sps:$4 sm:$0xff]  }
 0x100   :  { %2067 = vmatpush1.bf16.msra.mxu1 %v7904_v4  ;;  %v7999_v4 = vld [vmem:[#allocation5 + $0x494] ss:$24 sps:$4 sm:$0xff]  }
 0x101   :  { %2149 = vmatpush1.bf16.msra.mxu0 %v7907_v5  ;;  %2068 = vmatprep.subr.bf16.mxu1 %v7912_v6  ;;  %v7994_v5 = vld [vmem:[#allocation5 + $0x788] ss:$24 sps:$4 sm:$0xff]  }
 0x102   :  { %2150 = vmatprep.subr.bf16.mxu0 %v7915_v7  ;;  %v7997_v6 = vld [vmem:[#allocation5 + $0x490] ss:$24 sps:$4 sm:$0xff]   ;;  %v8002_v7 = vld [vmem:[#allocation5 + $0x7bc] ss:$24 sps:$4 sm:$0xff]  }
 0x104   :  { %2069 = vmatpush1.bf16.msra.mxu1 %v7910_v8  ;;  %v8005_v8 = vld [vmem:[#allocation5 + $0x4c4] ss:$24 sps:$4 sm:$0xff]  }
 0x105   :  { %2151 = vmatpush1.bf16.msra.mxu0 %v7913_v9  ;;  %2070 = vmatprep.subr.bf16.mxu1 %v7918_v10  ;;  %v8000_v9 = vld [vmem:[#allocation5 + $0x7b8] ss:$24 sps:$4 sm:$0xff]  }
 0x106   :  { %2152 = vmatprep.subr.bf16.mxu0 %v7921_v11  ;;  %v8003_v10 = vld [vmem:[#allocation5 + $0x4c0] ss:$24 sps:$4 sm:$0xff]   ;;  %v8008_v11 = vld [vmem:[#allocation5 + $0x7ec] ss:$24 sps:$4 sm:$0xff]  }
 0x108   :  { %2071 = vmatpush1.bf16.msra.mxu1 %v7916_v12  ;;  %v8011_v12 = vld [vmem:[#allocation5 + $0x4f4] ss:$24 sps:$4 sm:$0xff]  }
 0x109   :  { %2153 = vmatpush1.bf16.msra.mxu0 %v7919_v13  ;;  %2072 = vmatprep.subr.bf16.mxu1 %v7924_v14  ;;  %v8006_v13 = vld [vmem:[#allocation5 + $0x7e8] ss:$24 sps:$4 sm:$0xff]  }
 0x10a   :  { %2154 = vmatprep.subr.bf16.mxu0 %v7927_v15  ;;  %v8009_v14 = vld [vmem:[#allocation5 + $0x4f0] ss:$24 sps:$4 sm:$0xff]   ;;  %v8014_v15 = vld [vmem:[#allocation5 + $0x81c] ss:$24 sps:$4 sm:$0xff]  }
 0x10c   :  { %2073 = vmatpush1.bf16.msra.mxu1 %v7922_v17  ;;  %v8017_v17 = vld [vmem:[#allocation5 + $0x524] ss:$24 sps:$4 sm:$0xff]  }
 0x10d   :  { %2155 = vmatpush1.bf16.msra.mxu0 %v7925_v19  ;;  %2074 = vmatprep.subr.bf16.mxu1 %v7930_v20  ;;  %v8012_v19 = vld [vmem:[#allocation5 + $0x818] ss:$24 sps:$4 sm:$0xff]  }
 0x10e   :  { %2156 = vmatprep.subr.bf16.mxu0 %v7933_v21  ;;  %v8015_v20 = vld [vmem:[#allocation5 + $0x520] ss:$24 sps:$4 sm:$0xff]   ;;  %v8020_v21 = vld [vmem:[#allocation5 + $0x84c] ss:$24 sps:$4 sm:$0xff]  }
 0x110   :  { %2075 = vmatpush1.bf16.msra.mxu1 %v7928_v22  ;;  %v8023_v22 = vld [vmem:[#allocation5 + $0x554] ss:$24 sps:$4 sm:$0xff]  }
 0x111   :  { %2157 = vmatpush1.bf16.msra.mxu0 %v7931_v23  ;;  %2076 = vmatprep.subr.bf16.mxu1 %v7936_v24  ;;  %v8018_v23 = vld [vmem:[#allocation5 + $0x848] ss:$24 sps:$4 sm:$0xff]  }
 0x112   :  { %2158 = vmatprep.subr.bf16.mxu0 %v7939_v25  ;;  %v8021_v24 = vld [vmem:[#allocation5 + $0x550] ss:$24 sps:$4 sm:$0xff]   ;;  %v8026_v25 = vld [vmem:[#allocation5 + $0x87c] ss:$24 sps:$4 sm:$0xff]  }
 0x114   :  { %2077 = vmatpush1.bf16.msra.mxu1 %v7934_v26  ;;  %v8029_v26 = vld [vmem:[#allocation5 + $0x584] ss:$24 sps:$4 sm:$0xff]  }
 0x115   :  { %2159 = vmatpush1.bf16.msra.mxu0 %v7937_v28  ;;  %2078 = vmatprep.subr.bf16.mxu1 %v7942_v29  ;;  %v8024_v28 = vld [vmem:[#allocation5 + $0x878] ss:$24 sps:$4 sm:$0xff]  }
 0x116   :  { %2160 = vmatprep.subr.bf16.mxu0 %v7945_v30  ;;  %v8027_v29 = vld [vmem:[#allocation5 + $0x580] ss:$24 sps:$4 sm:$0xff]   ;;  %v8032_v30 = vld [vmem:[#allocation5 + $0x8ac] ss:$24 sps:$4 sm:$0xff]  }
 0x118   :  { %2079 = vmatpush1.bf16.msra.mxu1 %v7940_v31  ;;  %v8035_v31 = vld [vmem:[#allocation5 + $0x5b4] ss:$24 sps:$4 sm:$0xff]  }
 0x119   :  { %2161 = vmatpush1.bf16.msra.mxu0 %v7943_v32  ;;  %2089 = vmatprep.subr.bf16.mxu1 %v7948_v33  ;;  %v8030_v32 = vld [vmem:[#allocation5 + $0x8a8] ss:$24 sps:$4 sm:$0xff]  }
 0x11a   :  { %2171 = vmatprep.subr.bf16.mxu0 %v7951_v34  ;;  %v8033_v33 = vld [vmem:[#allocation5 + $0x5b0] ss:$24 sps:$4 sm:$0xff]   ;;  %v8038_v34 = vld [vmem:[#allocation5 + $0x8dc] ss:$24 sps:$4 sm:$0xff]  }
 0x11b   :  { %2081 = vmatmul.mubr.bf16.vlgmr.msra.gmra.mrb[4].mxu1 %v9259_v18 }
 0x11c   :  { %2163 = vmatmul.mubr.bf16.vlgmr.msra.gmra.mrb[4].mxu0 %v9257_v16  ;;  %2090 = vmatpush1.bf16.msra.mxu1 %v7946_v35  ;;  %v7969_v16 = vld [vmem:[#allocation5 + $0x3a4] ss:$24 sps:$4 sm:$0xff]  }
 0x11d   :  { %2172 = vmatpush1.bf16.msra.mxu0 %v7949_v36  ;;  %2091 = vmatprep.subr.bf16.mxu1 %v7954_v37  ;;  %v8041_v35 = vld [vmem:[#allocation5 + $0x5e4] ss:$24 sps:$4 sm:$0xff]   ;;  %v8036_v36 = vld [vmem:[#allocation5 + $0x8d8] ss:$24 sps:$4 sm:$0xff]  }
 0x11e   :  { %2173 = vmatprep.subr.bf16.mxu0 %v7957_v38  ;;  %2121 = vmatprep.mubr.bf16.mxu1 %v9268_v50  ;;  %v8039_v37 = vld [vmem:[#allocation5 + $0x5e0] ss:$24 sps:$4 sm:$0xff]   ;;  %v8044_v38 = vld [vmem:[#allocation5 + $0x614] ss:$24 sps:$4 sm:$0xff]  }
 0x11f   :  { %2203 = vmatprep.mubr.bf16.mxu0 %v9253_v3  ;;  %v7973_v3 = vld [vmem:[#allocation5 + $0x3d0] ss:$24 sps:$4 sm:$0xff]  }
 0x120   :  { %2092 = vmatpush1.bf16.msra.mxu1 %v7952_v39  ;;  %v8068_v39 = vld [vmem:[#allocation8 + $0x4] ss:$48 sps:$4 sm:$0xff]  }
 0x121   :  { %2174 = vmatpush1.bf16.msra.mxu0 %v7955_v40  ;;  %2093 = vmatprep.subr.bf16.mxu1 %v7960_v41  ;;  %v8042_v40 = vld [vmem:[#allocation5 + $0x610] ss:$24 sps:$4 sm:$0xff]  }
 0x122   :  { %2175 = vmatprep.subr.bf16.mxu0 %v7963_v42  ;;  %v8066_v41 = vld [vmem:[#allocation8] ss:$48 sps:$4 sm:$0xff]  }
 0x123   :  { %v8047_v42 = vld [vmem:[#allocation5 + $0x644] ss:$24 sps:$4 sm:$0xff]  }
 0x124   :  { %2094 = vmatpush1.bf16.msra.mxu1 %v7958_v44  ;;  %v8074_v44 = vld [vmem:[#allocation8 + $0x64] ss:$48 sps:$4 sm:$0xff]  }
 0x125   :  { %2176 = vmatpush1.bf16.msra.mxu0 %v7961_v45  ;;  %2095 = vmatprep.subr.bf16.mxu1 %v7966_v62  ;;  %v8045_v45 = vld [vmem:[#allocation5 + $0x640] ss:$24 sps:$4 sm:$0xff]  }
 0x126   :  { %2177 = vmatprep.subr.bf16.mxu0 %v7969_v16  ;;  %v8072_v62 = vld [vmem:[#allocation8 + $0x60] ss:$48 sps:$4 sm:$0xff]  }
 0x127   :  { %v8050_v16 = vld [vmem:[#allocation5 + $0x674] ss:$24 sps:$4 sm:$0xff]  }
 0x128   :  { %2096 = vmatpush1.bf16.msra.mxu1 %v7964_v46  ;;  %v8080_v46 = vld [vmem:[#allocation8 + $0xc4] ss:$48 sps:$4 sm:$0xff]  }
 0x129   :  { %2178 = vmatpush1.bf16.msra.mxu0 %v7967_v47  ;;  %2097 = vmatprep.subr.bf16.mxu1 %v7972_v48  ;;  %v8048_v47 = vld [vmem:[#allocation5 + $0x670] ss:$24 sps:$4 sm:$0xff]   ;;  %v8053_v48 = vld [vmem:[#allocation5 + $0x6a4] ss:$24 sps:$4 sm:$0xff]  }
 0x12a   :  { %2179 = vmatprep.subr.bf16.mxu0 %v7975_v51  ;;  %v8078_v51 = vld [vmem:[#allocation8 + $0xc0] ss:$48 sps:$4 sm:$0xff]  }
 0x12c   :  { %2098 = vmatpush1.bf16.msra.mxu1 %v7970_v52  ;;  %v8086_v52 = vld [vmem:[#allocation8 + $0x124] ss:$48 sps:$4 sm:$0xff]  }
 0x12d   :  { %2180 = vmatpush1.bf16.msra.mxu0 %v7973_v3  ;;  %2099 = vmatprep.subr.bf16.mxu1 %v7978_v53  ;;  %v8056_v3 = vld [vmem:[#allocation5 + $0x6d4] ss:$24 sps:$4 sm:$0xff]  }
 0x12e   :  { %2181 = vmatprep.subr.bf16.mxu0 %v7981_v54  ;;  %v8084_v53 = vld [vmem:[#allocation8 + $0x120] ss:$48 sps:$4 sm:$0xff]   ;;  %v8092_v54 = vld [vmem:[#allocation8 + $0x184] ss:$48 sps:$4 sm:$0xff]  }
 0x130   :  { %2100 = vmatpush1.bf16.msra.mxu1 %v7976_v55  ;;  %v8054_v55 = vld [vmem:[#allocation5 + $0x6d0] ss:$24 sps:$4 sm:$0xff]  }
 0x131   :  { %2182 = vmatpush1.bf16.msra.mxu0 %v7979_v56  ;;  %2101 = vmatprep.subr.bf16.mxu1 %v7984_v57  ;;  %v8059_v56 = vld [vmem:[#allocation5 + $0x704] ss:$24 sps:$4 sm:$0xff]  }
 0x132   :  { %2183 = vmatprep.subr.bf16.mxu0 %v7987_v58  ;;  %v8098_v57 = vld [vmem:[#allocation8 + $0x1e4] ss:$48 sps:$4 sm:$0xff]  }
 0x133   :  { %v8057_v58 = vld [vmem:[#allocation5 + $0x700] ss:$24 sps:$4 sm:$0xff]  }
 0x134   :  { %2102 = vmatpush1.bf16.msra.mxu1 %v7982_v59  ;;  %v8062_v59 = vld [vmem:[#allocation5 + $0x734] ss:$24 sps:$4 sm:$0xff]  }
 0x135   :  { %2184 = vmatpush1.bf16.msra.mxu0 %v7985_v60  ;;  %2103 = vmatprep.subr.bf16.mxu1 %v7990_v61  ;;  %v8096_v60 = vld [vmem:[#allocation8 + $0x1e0] ss:$48 sps:$4 sm:$0xff]   ;;  %v8104_v61 = vld [vmem:[#allocation8 + $0x244] ss:$48 sps:$4 sm:$0xff]  }
 0x136   :  { %2185 = vmatprep.subr.bf16.mxu0 %v7993_v63 }
 0x138   :  { %2104 = vmatpush1.bf16.msra.mxu1 %v7988_v0 }
 0x139   :  { %2186 = vmatpush1.bf16.msra.mxu0 %v7991_v1  ;;  %2105 = vmatprep.subr.bf16.mxu1 %v7996_v2  ;;  %v8060_v2 = vld [vmem:[#allocation5 + $0x730] ss:$24 sps:$4 sm:$0xff]  }
 0x13a   :  { %2187 = vmatprep.subr.bf16.mxu0 %v7999_v4  ;;  %v8102_v4 = vld [vmem:[#allocation8 + $0x240] ss:$48 sps:$4 sm:$0xff]  }
 0x13c   :  { %2106 = vmatpush1.bf16.msra.mxu1 %v7994_v5 }
 0x13d   :  { %2188 = vmatpush1.bf16.msra.mxu0 %v7997_v6  ;;  %2107 = vmatprep.subr.bf16.mxu1 %v8002_v7  ;;  %v8065_v6 = vld [vmem:[#allocation5 + $0x764] ss:$24 sps:$4 sm:$0xff]  }
 0x13e   :  { %2189 = vmatprep.subr.bf16.mxu0 %v8005_v8  ;;  %v8110_v7 = vld [vmem:[#allocation8 + $0x2a4] ss:$48 sps:$4 sm:$0xff]  }
 0x13f   :  { %v8063_v8 = vld [vmem:[#allocation5 + $0x760] ss:$24 sps:$4 sm:$0xff]  }
 0x140   :  { %2108 = vmatpush1.bf16.msra.mxu1 %v8000_v9  ;;  %v8071_v9 = vld [vmem:[#allocation5 + $0x794] ss:$24 sps:$4 sm:$0xff]  }
 0x141   :  { %2190 = vmatpush1.bf16.msra.mxu0 %v8003_v10  ;;  %2109 = vmatprep.subr.bf16.mxu1 %v8008_v11  ;;  %v8108_v10 = vld [vmem:[#allocation8 + $0x2a0] ss:$48 sps:$4 sm:$0xff]   ;;  %v8116_v11 = vld [vmem:[#allocation8 + $0x304] ss:$48 sps:$4 sm:$0xff]  }
 0x142   :  { %2191 = vmatprep.subr.bf16.mxu0 %v8011_v12  ;;  %v8069_v12 = vld [vmem:[#allocation5 + $0x790] ss:$24 sps:$4 sm:$0xff]  }
 0x144   :  { %2110 = vmatpush1.bf16.msra.mxu1 %v8006_v13  ;;  %v8077_v13 = vld [vmem:[#allocation5 + $0x7c4] ss:$24 sps:$4 sm:$0xff]  }
 0x145   :  { %2192 = vmatpush1.bf16.msra.mxu0 %v8009_v14  ;;  %2111 = vmatprep.subr.bf16.mxu1 %v8014_v15  ;;  %v8114_v14 = vld [vmem:[#allocation8 + $0x300] ss:$48 sps:$4 sm:$0xff]   ;;  %v8119_v15 = vld [vmem:[#allocation8 + $0x364] ss:$48 sps:$4 sm:$0xff]  }
 0x146   :  { %2193 = vmatprep.subr.bf16.mxu0 %v8017_v17  ;;  %v8075_v17 = vld [vmem:[#allocation5 + $0x7c0] ss:$24 sps:$4 sm:$0xff]  }
 0x148   :  { %2112 = vmatpush1.bf16.msra.mxu1 %v8012_v19  ;;  %v8083_v19 = vld [vmem:[#allocation5 + $0x7f4] ss:$24 sps:$4 sm:$0xff]  }
 0x149   :  { %2194 = vmatpush1.bf16.msra.mxu0 %v8015_v20  ;;  %2113 = vmatprep.subr.bf16.mxu1 %v8020_v21  ;;  %v8117_v20 = vld [vmem:[#allocation8 + $0x360] ss:$48 sps:$4 sm:$0xff]   ;;  %v8125_v21 = vld [vmem:[#allocation8 + $0x3c4] ss:$48 sps:$4 sm:$0xff]  }
 0x14a   :  { %2195 = vmatprep.subr.bf16.mxu0 %v8023_v22  ;;  %v8081_v22 = vld [vmem:[#allocation5 + $0x7f0] ss:$24 sps:$4 sm:$0xff]  }
 0x14c   :  { %2114 = vmatpush1.bf16.msra.mxu1 %v8018_v23  ;;  %v8089_v23 = vld [vmem:[#allocation5 + $0x824] ss:$24 sps:$4 sm:$0xff]  }
 0x14d   :  { %2196 = vmatpush1.bf16.msra.mxu0 %v8021_v24  ;;  %2115 = vmatprep.subr.bf16.mxu1 %v8026_v25  ;;  %v8123_v24 = vld [vmem:[#allocation8 + $0x3c0] ss:$48 sps:$4 sm:$0xff]   ;;  %v8131_v25 = vld [vmem:[#allocation8 + $0x424] ss:$48 sps:$4 sm:$0xff]  }
 0x14e   :  { %2197 = vmatprep.subr.bf16.mxu0 %v8029_v26  ;;  %v8087_v26 = vld [vmem:[#allocation5 + $0x820] ss:$24 sps:$4 sm:$0xff]  }
 0x150   :  { %2116 = vmatpush1.bf16.msra.mxu1 %v8024_v28  ;;  %v8095_v28 = vld [vmem:[#allocation5 + $0x854] ss:$24 sps:$4 sm:$0xff]  }
 0x151   :  { %2198 = vmatpush1.bf16.msra.mxu0 %v8027_v29  ;;  %2117 = vmatprep.subr.bf16.mxu1 %v8032_v30  ;;  %v8129_v29 = vld [vmem:[#allocation8 + $0x420] ss:$48 sps:$4 sm:$0xff]   ;;  %v8137_v30 = vld [vmem:[#allocation8 + $0x484] ss:$48 sps:$4 sm:$0xff]  }
 0x152   :  { %2199 = vmatprep.subr.bf16.mxu0 %v8035_v31  ;;  %v8093_v31 = vld [vmem:[#allocation5 + $0x850] ss:$24 sps:$4 sm:$0xff]  }
 0x154   :  { %2118 = vmatpush1.bf16.msra.mxu1 %v8030_v32  ;;  %v8101_v32 = vld [vmem:[#allocation5 + $0x884] ss:$24 sps:$4 sm:$0xff]  }
 0x155   :  { %2200 = vmatpush1.bf16.msra.mxu0 %v8033_v33  ;;  %2119 = vmatprep.subr.bf16.mxu1 %v8038_v34  ;;  %v8135_v33 = vld [vmem:[#allocation8 + $0x480] ss:$48 sps:$4 sm:$0xff]   ;;  %v8143_v34 = vld [vmem:[#allocation8 + $0x4e4] ss:$48 sps:$4 sm:$0xff]  }
 0x156   :  { %2201 = vmatprep.subr.bf16.mxu0 %v8041_v35  ;;  %v8099_v35 = vld [vmem:[#allocation5 + $0x880] ss:$24 sps:$4 sm:$0xff]  }
 0x158   :  { %2120 = vmatpush1.bf16.msra.mxu1 %v8036_v36  ;;  %v8107_v36 = vld [vmem:[#allocation5 + $0x8b4] ss:$24 sps:$4 sm:$0xff]  }
 0x159   :  { %2202 = vmatpush1.bf16.msra.mxu0 %v8039_v37  ;;  %5785 = vmatprep.subr.bf16.mxu1 %v8068_v39  ;;  %v8141_v37 = vld [vmem:[#allocation8 + $0x4e0] ss:$48 sps:$4 sm:$0xff]  }
 0x15a   :  { %2212 = vmatprep.subr.bf16.mxu0 %v8044_v38  ;;  %v8149_v38 = vld [vmem:[#allocation8 + $0x544] ss:$48 sps:$4 sm:$0xff]  }
 0x15b   :  { %2122 = vmatmul.mubr.bf16.vlgmr.msra.gmra.mrb[4].mxu1 %v9273_v27  ;;  %v8105_v39 = vld [vmem:[#allocation5 + $0x8b0] ss:$24 sps:$4 sm:$0xff]  }
 0x15c   :  { %2204 = vmatmul.mubr.bf16.vlgmr.msra.gmra.mrb[4].mxu0 %v9259_v18  ;;  %5786 = vmatpush1.bf16.msra.mxu1 %v8066_v41  ;;  %v8051_v18 = vld [vmem:[#allocation5 + $0x6a0] ss:$24 sps:$4 sm:$0xff]   ;;  %v8113_v41 = vld [vmem:[#allocation5 + $0x8e4] ss:$24 sps:$4 sm:$0xff]  }
 0x15d   :  { %2213 = vmatpush1.bf16.msra.mxu0 %v8042_v40  ;;  %5787 = vmatprep.subr.bf16.mxu1 %v8074_v44  ;;  %v8147_v40 = vld [vmem:[#allocation8 + $0x540] ss:$48 sps:$4 sm:$0xff]  }
 0x15e   :  { %2214 = vmatprep.subr.bf16.mxu0 %v8047_v42  ;;  %2244 = vmatprep.mubr.bf16.mxu0 %v9268_v50  ;;  %v8090_v50 = vld [vmem:[#allocation8 + $0x180] ss:$48 sps:$4 sm:$0xff]   ;;  %v8155_v42 = vld [vmem:[#allocation8 + $0x5a4] ss:$48 sps:$4 sm:$0xff]  }
 0x15f   :  { %v8111_v44 = vld [vmem:[#allocation5 + $0x8e0] ss:$24 sps:$4 sm:$0xff]  }
 0x160   :  { %5788 = vmatpush1.bf16.msra.mxu1 %v8072_v62  ;;  %v8122_v62 = vld [vmem:[#allocation8 + $0xc] ss:$48 sps:$4 sm:$0xff]  }
 0x161   :  { %2215 = vmatpush1.bf16.msra.mxu0 %v8045_v45  ;;  %5789 = vmatprep.subr.bf16.mxu1 %v8080_v46  ;;  %v8153_v45 = vld [vmem:[#allocation8 + $0x5a0] ss:$48 sps:$4 sm:$0xff]   ;;  %v8120_v46 = vld [vmem:[#allocation8 + $0x8] ss:$48 sps:$4 sm:$0xff]  }
 0x162   :  { %2216 = vmatprep.subr.bf16.mxu0 %v8050_v16  ;;  %v8188_v16 = vld [vmem:[#allocation8 + $0x604] ss:$48 sps:$4 sm:$0xff]  }
 0x164   :  { %5790 = vmatpush1.bf16.msra.mxu1 %v8078_v51  ;;  %v8134_v51 = vld [vmem:[#allocation8 + $0xcc] ss:$48 sps:$4 sm:$0xff]  }
 0x165   :  { %2217 = vmatpush1.bf16.msra.mxu0 %v8048_v47  ;;  %5791 = vmatprep.subr.bf16.mxu1 %v8086_v52  ;;  %v8128_v47 = vld [vmem:[#allocation8 + $0x6c] ss:$48 sps:$4 sm:$0xff]   ;;  %v8132_v52 = vld [vmem:[#allocation8 + $0xc8] ss:$48 sps:$4 sm:$0xff]  }
 0x166   :  { %2218 = vmatprep.subr.bf16.mxu0 %v8053_v48  ;;  %v8126_v48 = vld [vmem:[#allocation8 + $0x68] ss:$48 sps:$4 sm:$0xff]  }
 0x168   :  { %5792 = vmatpush1.bf16.msra.mxu1 %v8084_v53  ;;  %v8146_v53 = vld [vmem:[#allocation8 + $0x18c] ss:$48 sps:$4 sm:$0xff]  }
 0x169   :  { %2219 = vmatpush1.bf16.msra.mxu0 %v8051_v18  ;;  %5793 = vmatprep.subr.bf16.mxu1 %v8092_v54  ;;  %v8140_v18 = vld [vmem:[#allocation8 + $0x12c] ss:$48 sps:$4 sm:$0xff]  }
 0x16a   :  { %2220 = vmatprep.subr.bf16.mxu0 %v8056_v3  ;;  %v8138_v3 = vld [vmem:[#allocation8 + $0x128] ss:$48 sps:$4 sm:$0xff]  }
 0x16b   :  { %v9291_v54 = vld [vmem:[#allocation7] sm:$0x3f] }
 0x16c   :  { %5794 = vmatpush1.bf16.msra.mxu1 %v8090_v50  ;;  %v8152_v50 = vld [vmem:[#allocation8 + $0x1ec] ss:$48 sps:$4 sm:$0xff]  }
 0x16d   :  { %2221 = vmatpush1.bf16.msra.mxu0 %v8054_v55  ;;  %5795 = vmatprep.subr.bf16.mxu1 %v8098_v57  ;;  %v9294_v55 = vsub.s32 0, %v9244_v43 }
 0x16e   :  { %2222 = vmatprep.subr.bf16.mxu0 %v8059_v56  ;;  %v9286_v63 = vpop.f32.mrb[0].mxu1  ;;  %v9297_v56 = vsub.s32 1, %v9244_v43 }
 0x16f   :  { %v9288_v0 = vpop.f32.mrb[1].mxu1  ;;  %v417_v57 = vrot.slane %v9291_v54, %v9294_v55 }
 0x170   :  { %v1922_v1 = vpop.f32.mrb[2].mxu1  ;;  %5796 = vmatpush1.bf16.msra.mxu1 %v8096_v60 }
 0x171   :  { %2223 = vmatpush1.bf16.msra.mxu0 %v8057_v58  ;;  %v1923_v5 = vpop.f32.mrb[3].mxu1  ;;  %5797 = vmatprep.subr.bf16.mxu1 %v8104_v61  ;;  %v421_v58 = vrot.slane %v9291_v54, %v9297_v56  ;;  %v1919_v60 = vadd.f32 %v9286_v63, %v417_v57  ;;  %v8158_v61 = vld [vmem:[#allocation8 + $0x24c] ss:$48 sps:$4 sm:$0xff]   ;;  %v8159_v63 = vld [vmem:[#allocation8 + $0x2a8] ss:$48 sps:$4 sm:$0xff]  }
 0x172   :  { %2224 = vmatprep.subr.bf16.mxu0 %v8062_v59  ;;  %v8150_v59 = vld [vmem:[#allocation8 + $0x1e8] ss:$48 sps:$4 sm:$0xff]   ;;  %v8246_v57 = vld [vmem:[#allocation8 + $0x9c0] ss:$48 sps:$4 sm:$0xff]  }
 0x173   :  { %v1921_v1 = vadd.f32 %v9288_v0, %v421_v58  ;;  %v8164_v0 = vld [vmem:[#allocation8 + $0x30c] ss:$48 sps:$4 sm:$0xff]  }
 0x174   :  { %5798 = vmatpush1.bf16.msra.mxu1 %v8102_v4  ;;  %v8203_v58 = vld [vmem:[#allocation8 + $0x6cc] ss:$48 sps:$4 sm:$0xff]  }
 0x175   :  { %2225 = vmatpush1.bf16.msra.mxu0 %v8060_v2  ;;  %5799 = vmatprep.subr.bf16.mxu1 %v8110_v7 }
 0x176   :  { %2226 = vmatprep.subr.bf16.mxu0 %v8065_v6 }
 0x178   :  { %5800 = vmatpush1.bf16.msra.mxu1 %v8108_v10 }
 0x179   :  { %2227 = vmatpush1.bf16.msra.mxu0 %v8063_v8  ;;  %5801 = vmatprep.subr.bf16.mxu1 %v8116_v11  ;;  %v8156_v8 = vld [vmem:[#allocation8 + $0x248] ss:$48 sps:$4 sm:$0xff]   ;;  %v8161_v11 = vld [vmem:[#allocation8 + $0x2ac] ss:$48 sps:$4 sm:$0xff]  }
 0x17a   :  { %2228 = vmatprep.subr.bf16.mxu0 %v8071_v9 }
 0x17c   :  { %5802 = vmatpush1.bf16.msra.mxu1 %v8114_v14  ;;  %v8186_v14 = vld [vmem:[#allocation8 + $0x600] ss:$48 sps:$4 sm:$0xff]  }
 0x17d   :  { %2229 = vmatpush1.bf16.msra.mxu0 %v8069_v12  ;;  %5803 = vmatprep.subr.bf16.mxu1 %v8119_v15 }
 0x17e   :  { %2230 = vmatprep.subr.bf16.mxu0 %v8077_v13 }
 0x180   :  { %5804 = vmatpush1.bf16.msra.mxu1 %v8117_v20  ;;  %v8192_v20 = vld [vmem:[#allocation8 + $0x660] ss:$48 sps:$4 sm:$0xff]  }
 0x181   :  { %2231 = vmatpush1.bf16.msra.mxu0 %v8075_v17  ;;  %5805 = vmatprep.subr.bf16.mxu1 %v8125_v21  ;;  %v8194_v17 = vld [vmem:[#allocation8 + $0x664] ss:$48 sps:$4 sm:$0xff]   ;;  %v8167_v21 = vld [vmem:[#allocation8 + $0x36c] ss:$48 sps:$4 sm:$0xff]  }
 0x182   :  { %2232 = vmatprep.subr.bf16.mxu0 %v8083_v19  ;;  %v8162_v19 = vld [vmem:[#allocation8 + $0x308] ss:$48 sps:$4 sm:$0xff]  }
 0x184   :  { %5806 = vmatpush1.bf16.msra.mxu1 %v8123_v24  ;;  %v8198_v24 = vld [vmem:[#allocation8 + $0x6c0] ss:$48 sps:$4 sm:$0xff]  }
 0x185   :  { %2233 = vmatpush1.bf16.msra.mxu0 %v8081_v22  ;;  %5807 = vmatprep.subr.bf16.mxu1 %v8131_v25  ;;  %v8200_v22 = vld [vmem:[#allocation8 + $0x6c4] ss:$48 sps:$4 sm:$0xff]   ;;  %v8170_v25 = vld [vmem:[#allocation8 + $0x3cc] ss:$48 sps:$4 sm:$0xff]  }
 0x186   :  { %2234 = vmatprep.subr.bf16.mxu0 %v8089_v23  ;;  %v8165_v23 = vld [vmem:[#allocation8 + $0x368] ss:$48 sps:$4 sm:$0xff]  }
 0x188   :  { %5808 = vmatpush1.bf16.msra.mxu1 %v8129_v29  ;;  %v8204_v29 = vld [vmem:[#allocation8 + $0x720] ss:$48 sps:$4 sm:$0xff]  }
 0x189   :  { %2235 = vmatpush1.bf16.msra.mxu0 %v8087_v26  ;;  %5809 = vmatprep.subr.bf16.mxu1 %v8137_v30  ;;  %v8206_v26 = vld [vmem:[#allocation8 + $0x724] ss:$48 sps:$4 sm:$0xff]   ;;  %v8173_v30 = vld [vmem:[#allocation8 + $0x42c] ss:$48 sps:$4 sm:$0xff]  }
 0x18a   :  { %2236 = vmatprep.subr.bf16.mxu0 %v8095_v28  ;;  %v8168_v28 = vld [vmem:[#allocation8 + $0x3c8] ss:$48 sps:$4 sm:$0xff]  }
 0x18c   :  { %5810 = vmatpush1.bf16.msra.mxu1 %v8135_v33  ;;  %v8210_v33 = vld [vmem:[#allocation8 + $0x780] ss:$48 sps:$4 sm:$0xff]  }
 0x18d   :  { %2237 = vmatpush1.bf16.msra.mxu0 %v8093_v31  ;;  %5811 = vmatprep.subr.bf16.mxu1 %v8143_v34  ;;  %v8212_v31 = vld [vmem:[#allocation8 + $0x784] ss:$48 sps:$4 sm:$0xff]   ;;  %v8176_v34 = vld [vmem:[#allocation8 + $0x48c] ss:$48 sps:$4 sm:$0xff]  }
 0x18e   :  { %2238 = vmatprep.subr.bf16.mxu0 %v8101_v32  ;;  %v8171_v32 = vld [vmem:[#allocation8 + $0x428] ss:$48 sps:$4 sm:$0xff]  }
 0x190   :  { %5812 = vmatpush1.bf16.msra.mxu1 %v8141_v37  ;;  %v8216_v37 = vld [vmem:[#allocation8 + $0x7e0] ss:$48 sps:$4 sm:$0xff]  }
 0x191   :  { %2239 = vmatpush1.bf16.msra.mxu0 %v8099_v35  ;;  %5813 = vmatprep.subr.bf16.mxu1 %v8149_v38  ;;  %v8218_v35 = vld [vmem:[#allocation8 + $0x7e4] ss:$48 sps:$4 sm:$0xff]   ;;  %v8179_v38 = vld [vmem:[#allocation8 + $0x4ec] ss:$48 sps:$4 sm:$0xff]  }
 0x192   :  { %2240 = vmatprep.subr.bf16.mxu0 %v8107_v36  ;;  %v8174_v36 = vld [vmem:[#allocation8 + $0x488] ss:$48 sps:$4 sm:$0xff]  }
 0x194   :  { %5814 = vmatpush1.bf16.msra.mxu1 %v8147_v40  ;;  %v8177_v40 = vld [vmem:[#allocation8 + $0x4e8] ss:$48 sps:$4 sm:$0xff]  }
 0x195   :  { %2241 = vmatpush1.bf16.msra.mxu0 %v8105_v39  ;;  %5815 = vmatprep.subr.bf16.mxu1 %v8155_v42  ;;  %v8224_v39 = vld [vmem:[#allocation8 + $0x844] ss:$48 sps:$4 sm:$0xff]   ;;  %v8182_v42 = vld [vmem:[#allocation8 + $0x54c] ss:$48 sps:$4 sm:$0xff]  }
 0x196   :  { %2242 = vmatprep.subr.bf16.mxu0 %v8113_v41  ;;  %v8222_v41 = vld [vmem:[#allocation8 + $0x840] ss:$48 sps:$4 sm:$0xff]  }
 0x198   :  { %5816 = vmatpush1.bf16.msra.mxu1 %v8153_v45  ;;  %v8180_v45 = vld [vmem:[#allocation8 + $0x548] ss:$48 sps:$4 sm:$0xff]  }
 0x199   :  { %2243 = vmatpush1.bf16.msra.mxu0 %v8111_v44  ;;  %5826 = vmatprep.subr.bf16.mxu1 %v8188_v16  ;;  %v8230_v44 = vld [vmem:[#allocation8 + $0x8a4] ss:$48 sps:$4 sm:$0xff]   ;;  %v8185_v16 = vld [vmem:[#allocation8 + $0x5ac] ss:$48 sps:$4 sm:$0xff]  }
 0x19a   :  { %5908 = vmatprep.subr.bf16.mxu0 %v8122_v62  ;;  %v8228_v62 = vld [vmem:[#allocation8 + $0x8a0] ss:$48 sps:$4 sm:$0xff]  }
 0x19c   :  { %2245 = vmatmul.mubr.bf16.vlgmr.msra.gmra.mrb[4].mxu0 %v9273_v27  ;;  %v8144_v27 = vld [vmem:[#allocation8 + $0x188] ss:$48 sps:$4 sm:$0xff]  }
 0x19d   :  { %5909 = vmatpush1.bf16.msra.mxu0 %v8120_v46  ;;  %v8236_v46 = vld [vmem:[#allocation8 + $0x904] ss:$48 sps:$4 sm:$0xff]  }
 0x19e   :  { %5910 = vmatprep.subr.bf16.mxu0 %v8128_v47  ;;  %v8183_v47 = vld [vmem:[#allocation8 + $0x5a8] ss:$48 sps:$4 sm:$0xff]  }
 0x1a1   :  { %5911 = vmatpush1.bf16.msra.mxu0 %v8126_v48  ;;  %v8234_v48 = vld [vmem:[#allocation8 + $0x900] ss:$48 sps:$4 sm:$0xff]  }
 0x1a2   :  { %5912 = vmatprep.subr.bf16.mxu0 %v8134_v51  ;;  %v8191_v51 = vld [vmem:[#allocation8 + $0x60c] ss:$48 sps:$4 sm:$0xff]  }
 0x1a5   :  { %5913 = vmatpush1.bf16.msra.mxu0 %v8132_v52  ;;  %v8242_v52 = vld [vmem:[#allocation8 + $0x964] ss:$48 sps:$4 sm:$0xff]  }
 0x1a6   :  { %5914 = vmatprep.subr.bf16.mxu0 %v8140_v18  ;;  %v8189_v18 = vld [vmem:[#allocation8 + $0x608] ss:$48 sps:$4 sm:$0xff]  }
 0x1a9   :  { %5915 = vmatpush1.bf16.msra.mxu0 %v8138_v3  ;;  %v8240_v3 = vld [vmem:[#allocation8 + $0x960] ss:$48 sps:$4 sm:$0xff]  }
 0x1aa   :  { %5916 = vmatprep.subr.bf16.mxu0 %v8146_v53  ;;  %v8197_v53 = vld [vmem:[#allocation8 + $0x66c] ss:$48 sps:$4 sm:$0xff]  }
 0x1ad   :  { %5917 = vmatpush1.bf16.msra.mxu0 %v8144_v27  ;;  %v8248_v27 = vld [vmem:[#allocation8 + $0x9c4] ss:$48 sps:$4 sm:$0xff]  }
 0x1ae   :  { %5918 = vmatprep.subr.bf16.mxu0 %v8152_v50  ;;  %v8195_v50 = vld [vmem:[#allocation8 + $0x668] ss:$48 sps:$4 sm:$0xff]  }
 0x1af   :  { %v2000_v2 = vpop.f32.mrb[0].mxu0 }
 0x1b0   :  { %v7559_v4 = vadd.f32 %v2000_v2, %v1919_v60  ;;  %v2002_v5 = vpop.f32.mrb[1].mxu0  ;;  %v8201_v60 = vld [vmem:[#allocation8 + $0x6c8] ss:$48 sps:$4 sm:$0xff]   ;;  %v8260_v2 = vld [vmem:[#allocation8 + $0xa84] ss:$48 sps:$4 sm:$0xff]  }
 0x1b1   :  { %v7561_v6 = vadd.f32 %v2002_v5, %v1921_v1  ;;  %v2004_v7 = vpop.f32.mrb[2].mxu0  ;;  %5919 = vmatpush1.bf16.msra.mxu0 %v8150_v59  ;;  %v8254_v59 = vld [vmem:[#allocation8 + $0xa24] ss:$48 sps:$4 sm:$0xff]   ;;  %v8209_v1 = vld [vmem:[#allocation8 + $0x72c] ss:$48 sps:$4 sm:$0xff]  }
 0x1b2   :  { %v2253_v9 = vmax.f32 %v7559_v4, 0.0  ;;  %v2005_v10 = vpop.f32.mrb[3].mxu0  ;;  %5920 = vmatprep.subr.bf16.mxu0 %v8158_v61  ;;  %v8252_v61 = vld [vmem:[#allocation8 + $0xa20] ss:$48 sps:$4 sm:$0xff]   ;;  %v8207_v4 = vld [vmem:[#allocation8 + $0x728] ss:$48 sps:$4 sm:$0xff]  }
 0x1b3   :  { %v2254_v12 = vmax.f32 %v7561_v6, 0.0  ;;  %v8258_v5 = vld [vmem:[#allocation8 + $0xa80] ss:$48 sps:$4 sm:$0xff]   ;;  %v8215_v6 = vld [vmem:[#allocation8 + $0x78c] ss:$48 sps:$4 sm:$0xff]  }
 0x1b4   :  { %v9307_v15 = vpack.c.bf16 %v2253_v9, %v2253_v9  ;;  %v8266_v7 = vld [vmem:[#allocation8 + $0xae4] ss:$48 sps:$4 sm:$0xff]   ;;  %v8264_v9 = vld [vmem:[#allocation8 + $0xae0] ss:$48 sps:$4 sm:$0xff]   ;;  %v8221_v10 = vld [vmem:[#allocation8 + $0x7ec] ss:$48 sps:$4 sm:$0xff]  }
 0x1b5   :  { %v9305_v13 = vpack.c.bf16 %v2254_v12, %v2254_v12  ;;  %5921 = vmatpush1.bf16.msra.mxu0 %v8156_v8  ;;  %v8213_v8 = vld [vmem:[#allocation8 + $0x788] ss:$48 sps:$4 sm:$0xff]  }
 0x1b6   :  { %5922 = vmatprep.subr.bf16.mxu0 %v8161_v11  ;;  %v8272_v11 = vld [vmem:[#allocation8 + $0xb44] ss:$48 sps:$4 sm:$0xff]   ;;  %v8219_v12 = vld [vmem:[#allocation8 + $0x7e8] ss:$48 sps:$4 sm:$0xff]  }
 0x1b7   :  { %5817 = vmatprep.mubr.bf16.mxu1 %v9305_v13  ;;  %5940 = vmatprep.mubr.bf16.mxu0 %v9305_v13 }
 0x1b8   :  { %5818 = vmatmul.mubr.bf16.vlgmr.msra.gmra.mrb[8].mxu1 %v9307_v15 }
 0x1b9   :  { %5923 = vmatpush1.bf16.msra.mxu0 %v8159_v63  ;;  %5827 = vmatpush1.bf16.msra.mxu1 %v8186_v14  ;;  %v8270_v63 = vld [vmem:[#allocation8 + $0xb40] ss:$48 sps:$4 sm:$0xff]   ;;  %v8227_v14 = vld [vmem:[#allocation8 + $0x84c] ss:$48 sps:$4 sm:$0xff]  }
 0x1ba   :  { %5924 = vmatprep.subr.bf16.mxu0 %v8164_v0  ;;  %5828 = vmatprep.subr.bf16.mxu1 %v8194_v17  ;;  %v8278_v0 = vld [vmem:[#allocation8 + $0xba4] ss:$48 sps:$4 sm:$0xff]   ;;  %v8225_v17 = vld [vmem:[#allocation8 + $0x848] ss:$48 sps:$4 sm:$0xff]  }
 0x1bd   :  { %5925 = vmatpush1.bf16.msra.mxu0 %v8162_v19  ;;  %5829 = vmatpush1.bf16.msra.mxu1 %v8192_v20  ;;  %v8276_v19 = vld [vmem:[#allocation8 + $0xba0] ss:$48 sps:$4 sm:$0xff]   ;;  %v8233_v20 = vld [vmem:[#allocation8 + $0x8ac] ss:$48 sps:$4 sm:$0xff]  }
 0x1be   :  { %5926 = vmatprep.subr.bf16.mxu0 %v8167_v21  ;;  %5830 = vmatprep.subr.bf16.mxu1 %v8200_v22  ;;  %v8284_v21 = vld [vmem:[#allocation8 + $0xc04] ss:$48 sps:$4 sm:$0xff]   ;;  %v8231_v22 = vld [vmem:[#allocation8 + $0x8a8] ss:$48 sps:$4 sm:$0xff]  }
 0x1c1   :  { %5927 = vmatpush1.bf16.msra.mxu0 %v8165_v23  ;;  %5831 = vmatpush1.bf16.msra.mxu1 %v8198_v24  ;;  %v8239_v23 = vld [vmem:[#allocation8 + $0x90c] ss:$48 sps:$4 sm:$0xff]   ;;  %v8237_v24 = vld [vmem:[#allocation8 + $0x908] ss:$48 sps:$4 sm:$0xff]  }
 0x1c2   :  { %5928 = vmatprep.subr.bf16.mxu0 %v8170_v25  ;;  %5832 = vmatprep.subr.bf16.mxu1 %v8206_v26  ;;  %v8245_v25 = vld [vmem:[#allocation8 + $0x96c] ss:$48 sps:$4 sm:$0xff]   ;;  %v8243_v26 = vld [vmem:[#allocation8 + $0x968] ss:$48 sps:$4 sm:$0xff]  }
 0x1c5   :  { %5929 = vmatpush1.bf16.msra.mxu0 %v8168_v28  ;;  %5833 = vmatpush1.bf16.msra.mxu1 %v8204_v29  ;;  %v8251_v28 = vld [vmem:[#allocation8 + $0x9cc] ss:$48 sps:$4 sm:$0xff]   ;;  %v8249_v29 = vld [vmem:[#allocation8 + $0x9c8] ss:$48 sps:$4 sm:$0xff]  }
 0x1c6   :  { %5930 = vmatprep.subr.bf16.mxu0 %v8173_v30  ;;  %5834 = vmatprep.subr.bf16.mxu1 %v8212_v31  ;;  %v8257_v30 = vld [vmem:[#allocation8 + $0xa2c] ss:$48 sps:$4 sm:$0xff]   ;;  %v8255_v31 = vld [vmem:[#allocation8 + $0xa28] ss:$48 sps:$4 sm:$0xff]  }
 0x1c9   :  { %5931 = vmatpush1.bf16.msra.mxu0 %v8171_v32  ;;  %5835 = vmatpush1.bf16.msra.mxu1 %v8210_v33  ;;  %v8263_v32 = vld [vmem:[#allocation8 + $0xa8c] ss:$48 sps:$4 sm:$0xff]   ;;  %v8261_v33 = vld [vmem:[#allocation8 + $0xa88] ss:$48 sps:$4 sm:$0xff]  }
 0x1ca   :  { %5932 = vmatprep.subr.bf16.mxu0 %v8176_v34  ;;  %5836 = vmatprep.subr.bf16.mxu1 %v8218_v35  ;;  %v8269_v34 = vld [vmem:[#allocation8 + $0xaec] ss:$48 sps:$4 sm:$0xff]   ;;  %v8267_v35 = vld [vmem:[#allocation8 + $0xae8] ss:$48 sps:$4 sm:$0xff]  }
 0x1cd   :  { %5933 = vmatpush1.bf16.msra.mxu0 %v8174_v36  ;;  %5837 = vmatpush1.bf16.msra.mxu1 %v8216_v37  ;;  %v8275_v36 = vld [vmem:[#allocation8 + $0xb4c] ss:$48 sps:$4 sm:$0xff]   ;;  %v8273_v37 = vld [vmem:[#allocation8 + $0xb48] ss:$48 sps:$4 sm:$0xff]  }
 0x1ce   :  { %5934 = vmatprep.subr.bf16.mxu0 %v8179_v38  ;;  %5838 = vmatprep.subr.bf16.mxu1 %v8224_v39  ;;  %v8281_v38 = vld [vmem:[#allocation8 + $0xbac] ss:$48 sps:$4 sm:$0xff]   ;;  %v8279_v39 = vld [vmem:[#allocation8 + $0xba8] ss:$48 sps:$4 sm:$0xff]  }
 0x1d1   :  { %5935 = vmatpush1.bf16.msra.mxu0 %v8177_v40  ;;  %5839 = vmatpush1.bf16.msra.mxu1 %v8222_v41  ;;  %v8287_v40 = vld [vmem:[#allocation8 + $0xc0c] ss:$48 sps:$4 sm:$0xff]   ;;  %v9314_v41 = vsub.s32 2, %v9244_v43 }
 0x1d2   :  { %5936 = vmatprep.subr.bf16.mxu0 %v8182_v42  ;;  %5840 = vmatprep.subr.bf16.mxu1 %v8230_v44  ;;  %v9317_v42 = vsub.s32 3, %v9244_v43 }
 0x1d3   :  { %v425_v44 = vrot.slane %v9291_v54, %v9314_v41 }
 0x1d5   :  { %5937 = vmatpush1.bf16.msra.mxu0 %v8180_v45  ;;  %5841 = vmatpush1.bf16.msra.mxu1 %v8228_v62  ;;  %v429_v45 = vrot.slane %v9291_v54, %v9317_v42  ;;  %v8288_v54 = vld [vmem:[#allocation8 + $0xc60] ss:$48 sps:$4 sm:$0xff]  }
 0x1d6   :  { %5938 = vmatprep.subr.bf16.mxu0 %v8185_v16  ;;  %5842 = vmatprep.subr.bf16.mxu1 %v8236_v46 }
 0x1d9   :  { %5939 = vmatpush1.bf16.msra.mxu0 %v8183_v47  ;;  %5843 = vmatpush1.bf16.msra.mxu1 %v8234_v48 }
 0x1da   :  { %5949 = vmatprep.subr.bf16.mxu0 %v8191_v51  ;;  %5844 = vmatprep.subr.bf16.mxu1 %v8242_v52 }
 0x1dc   :  { %5941 = vmatmul.mubr.bf16.vlgmr.msra.gmra.mrb[8].mxu0 %v9307_v15 }
 0x1dd   :  { %5950 = vmatpush1.bf16.msra.mxu0 %v8189_v18  ;;  %5845 = vmatpush1.bf16.msra.mxu1 %v8240_v3 }
 0x1de   :  { %5951 = vmatprep.subr.bf16.mxu0 %v8197_v53  ;;  %5846 = vmatprep.subr.bf16.mxu1 %v8248_v27  ;;  %v8282_v53 = vld [vmem:[#allocation8 + $0xc00] ss:$48 sps:$4 sm:$0xff]   ;;  %v8285_v27 = vld [vmem:[#allocation8 + $0xc08] ss:$48 sps:$4 sm:$0xff]  }
 0x1e1   :  { %5952 = vmatpush1.bf16.msra.mxu0 %v8195_v50  ;;  %5847 = vmatpush1.bf16.msra.mxu1 %v8246_v57  ;;  %v8290_v57 = vld [vmem:[#allocation8 + $0xc64] ss:$48 sps:$4 sm:$0xff]  }
 0x1e2   :  { %5953 = vmatprep.subr.bf16.mxu0 %v8203_v58  ;;  %5848 = vmatprep.subr.bf16.mxu1 %v8254_v59  ;;  %v8293_v58 = vld [vmem:[#allocation8 + $0xc6c] ss:$48 sps:$4 sm:$0xff]   ;;  %v8291_v59 = vld [vmem:[#allocation8 + $0xc68] ss:$48 sps:$4 sm:$0xff]  }
 0x1e5   :  { %5954 = vmatpush1.bf16.msra.mxu0 %v8201_v60  ;;  %5849 = vmatpush1.bf16.msra.mxu1 %v8252_v61  ;;  %v8296_v60 = vld [vmem:[#allocation8 + $0xcc4] ss:$48 sps:$4 sm:$0xff]   ;;  %v8299_v61 = vld [vmem:[#allocation8 + $0xccc] ss:$48 sps:$4 sm:$0xff]  }
 0x1e6   :  { %5955 = vmatprep.subr.bf16.mxu0 %v8209_v1  ;;  %5850 = vmatprep.subr.bf16.mxu1 %v8260_v2  ;;  %v8294_v1 = vld [vmem:[#allocation8 + $0xcc0] ss:$48 sps:$4 sm:$0xff]   ;;  %v8297_v2 = vld [vmem:[#allocation8 + $0xcc8] ss:$48 sps:$4 sm:$0xff]  }
 0x1e9   :  { %5956 = vmatpush1.bf16.msra.mxu0 %v8207_v4  ;;  %5851 = vmatpush1.bf16.msra.mxu1 %v8258_v5  ;;  %v8302_v4 = vld [vmem:[#allocation8 + $0xd24] ss:$48 sps:$4 sm:$0xff]   ;;  %v8305_v5 = vld [vmem:[#allocation8 + $0xd2c] ss:$48 sps:$4 sm:$0xff]  }
 0x1ea   :  { %5957 = vmatprep.subr.bf16.mxu0 %v8215_v6  ;;  %5852 = vmatprep.subr.bf16.mxu1 %v8266_v7  ;;  %v8300_v6 = vld [vmem:[#allocation8 + $0xd20] ss:$48 sps:$4 sm:$0xff]   ;;  %v8303_v7 = vld [vmem:[#allocation8 + $0xd28] ss:$48 sps:$4 sm:$0xff]  }
 0x1ed   :  { %5958 = vmatpush1.bf16.msra.mxu0 %v8213_v8  ;;  %5853 = vmatpush1.bf16.msra.mxu1 %v8264_v9  ;;  %v8308_v8 = vld [vmem:[#allocation8 + $0xd84] ss:$48 sps:$4 sm:$0xff]   ;;  %v8311_v9 = vld [vmem:[#allocation8 + $0xd8c] ss:$48 sps:$4 sm:$0xff]  }
 0x1ee   :  { %5959 = vmatprep.subr.bf16.mxu0 %v8221_v10  ;;  %5854 = vmatprep.subr.bf16.mxu1 %v8272_v11  ;;  %v8306_v10 = vld [vmem:[#allocation8 + $0xd80] ss:$48 sps:$4 sm:$0xff]   ;;  %v8309_v11 = vld [vmem:[#allocation8 + $0xd88] ss:$48 sps:$4 sm:$0xff]  }
 0x1f1   :  { %5960 = vmatpush1.bf16.msra.mxu0 %v8219_v12  ;;  %5855 = vmatpush1.bf16.msra.mxu1 %v8270_v63  ;;  %v8314_v12 = vld [vmem:[#allocation8 + $0xde4] ss:$48 sps:$4 sm:$0xff]   ;;  %v8317_v63 = vld [vmem:[#allocation8 + $0xdec] ss:$48 sps:$4 sm:$0xff]  }
 0x1f2   :  { %5961 = vmatprep.subr.bf16.mxu0 %v8227_v14  ;;  %5856 = vmatprep.subr.bf16.mxu1 %v8278_v0  ;;  %v8312_v14 = vld [vmem:[#allocation8 + $0xde0] ss:$48 sps:$4 sm:$0xff]   ;;  %v8315_v0 = vld [vmem:[#allocation8 + $0xde8] ss:$48 sps:$4 sm:$0xff]  }
 0x1f5   :  { %5962 = vmatpush1.bf16.msra.mxu0 %v8225_v17  ;;  %5857 = vmatpush1.bf16.msra.mxu1 %v8276_v19  ;;  %v8320_v17 = vld [vmem:[#allocation8 + $0xe44] ss:$48 sps:$4 sm:$0xff]   ;;  %v8323_v19 = vld [vmem:[#allocation8 + $0xe4c] ss:$48 sps:$4 sm:$0xff]  }
 0x1f6   :  { %5963 = vmatprep.subr.bf16.mxu0 %v8233_v20  ;;  %5867 = vmatprep.subr.bf16.mxu1 %v8284_v21  ;;  %v8318_v20 = vld [vmem:[#allocation8 + $0xe40] ss:$48 sps:$4 sm:$0xff]   ;;  %v8321_v21 = vld [vmem:[#allocation8 + $0xe48] ss:$48 sps:$4 sm:$0xff]  }
 0x1f9   :  { %5964 = vmatpush1.bf16.msra.mxu0 %v8231_v22  ;;  %v8326_v22 = vld [vmem:[#allocation8 + $0xea4] ss:$48 sps:$4 sm:$0xff]  }
 0x1fa   :  { %5965 = vmatprep.subr.bf16.mxu0 %v8239_v23  ;;  %v8329_v23 = vld [vmem:[#allocation8 + $0xeac] ss:$48 sps:$4 sm:$0xff]  }
 0x1fd   :  { %5966 = vmatpush1.bf16.msra.mxu0 %v8237_v24  ;;  %v8324_v24 = vld [vmem:[#allocation8 + $0xea0] ss:$48 sps:$4 sm:$0xff]  }
 0x1fe   :  { %5967 = vmatprep.subr.bf16.mxu0 %v8245_v25  ;;  %v8327_v25 = vld [vmem:[#allocation8 + $0xea8] ss:$48 sps:$4 sm:$0xff]  }
 0x201   :  { %5968 = vmatpush1.bf16.msra.mxu0 %v8243_v26  ;;  %v8332_v26 = vld [vmem:[#allocation8 + $0xf04] ss:$48 sps:$4 sm:$0xff]  }
 0x202   :  { %5969 = vmatprep.subr.bf16.mxu0 %v8251_v28  ;;  %v8335_v28 = vld [vmem:[#allocation8 + $0xf0c] ss:$48 sps:$4 sm:$0xff]  }
 0x205   :  { %5970 = vmatpush1.bf16.msra.mxu0 %v8249_v29  ;;  %v8330_v29 = vld [vmem:[#allocation8 + $0xf00] ss:$48 sps:$4 sm:$0xff]  }
 0x206   :  { %5971 = vmatprep.subr.bf16.mxu0 %v8257_v30  ;;  %v8333_v30 = vld [vmem:[#allocation8 + $0xf08] ss:$48 sps:$4 sm:$0xff]  }
 0x209   :  { %5972 = vmatpush1.bf16.msra.mxu0 %v8255_v31  ;;  %v8338_v31 = vld [vmem:[#allocation8 + $0xf64] ss:$48 sps:$4 sm:$0xff]  }
 0x20a   :  { %5973 = vmatprep.subr.bf16.mxu0 %v8263_v32  ;;  %v8341_v32 = vld [vmem:[#allocation8 + $0xf6c] ss:$48 sps:$4 sm:$0xff]  }
 0x20d   :  { %5974 = vmatpush1.bf16.msra.mxu0 %v8261_v33  ;;  %v8336_v33 = vld [vmem:[#allocation8 + $0xf60] ss:$48 sps:$4 sm:$0xff]  }
 0x20e   :  { %5975 = vmatprep.subr.bf16.mxu0 %v8269_v34  ;;  %v8339_v34 = vld [vmem:[#allocation8 + $0xf68] ss:$48 sps:$4 sm:$0xff]  }
 0x211   :  { %5976 = vmatpush1.bf16.msra.mxu0 %v8267_v35  ;;  %v8344_v35 = vld [vmem:[#allocation8 + $0xfc4] ss:$48 sps:$4 sm:$0xff]  }
 0x212   :  { %5977 = vmatprep.subr.bf16.mxu0 %v8275_v36  ;;  %v8347_v36 = vld [vmem:[#allocation8 + $0xfcc] ss:$48 sps:$4 sm:$0xff]  }
 0x215   :  { %5978 = vmatpush1.bf16.msra.mxu0 %v8273_v37  ;;  %v8342_v37 = vld [vmem:[#allocation8 + $0xfc0] ss:$48 sps:$4 sm:$0xff]  }
 0x216   :  { %5979 = vmatprep.subr.bf16.mxu0 %v8281_v38  ;;  %v8345_v38 = vld [vmem:[#allocation8 + $0xfc8] ss:$48 sps:$4 sm:$0xff]  }
 0x219   :  { %5980 = vmatpush1.bf16.msra.mxu0 %v8279_v39  ;;  %v8350_v39 = vld [vmem:[#allocation8 + $0x1024] ss:$48 sps:$4 sm:$0xff]  }
 0x21a   :  { %5990 = vmatprep.subr.bf16.mxu0 %v8287_v40  ;;  %v8353_v40 = vld [vmem:[#allocation8 + $0x102c] ss:$48 sps:$4 sm:$0xff]  }
 0x22e   :  { %v2123_v62 = vpop.f32.mrb[4].mxu1 }
 0x22f   :  { %v7562_v16 = vadd.f32 %v2123_v62, %v425_v44  ;;  %v2125_v46 = vpop.f32.mrb[5].mxu1  ;;  %v8348_v44 = vld [vmem:[#allocation8 + $0x1020] ss:$48 sps:$4 sm:$0xff]   ;;  %v8356_v62 = vld [vmem:[#allocation8 + $0x1084] ss:$48 sps:$4 sm:$0xff]  }
 0x230   :  { %v7563_v47 = vadd.f32 %v2125_v46, %v429_v45  ;;  %v2127_v48 = vpop.f32.mrb[6].mxu1  ;;  %v8351_v45 = vld [vmem:[#allocation8 + $0x1028] ss:$48 sps:$4 sm:$0xff]   ;;  %v8354_v46 = vld [vmem:[#allocation8 + $0x1080] ss:$48 sps:$4 sm:$0xff]  }
 0x231   :  { %v2255_v51 = vmax.f32 %v7562_v16, 0.0  ;;  %v2128_v52 = vpop.f32.mrb[7].mxu1  ;;  %v8359_v16 = vld [vmem:[#allocation8 + $0x108c] ss:$48 sps:$4 sm:$0xff]   ;;  %v8362_v48 = vld [vmem:[#allocation8 + $0x10e4] ss:$48 sps:$4 sm:$0xff]  }
 0x232   :  { %v2256_v18 = vmax.f32 %v7563_v47, 0.0  ;;  %v8357_v47 = vld [vmem:[#allocation8 + $0x1088] ss:$48 sps:$4 sm:$0xff]   ;;  %v432_v52 = vsub.s32 4, %v9244_v43 }
 0x233   :  { %v9325_v50 = vpack.c.bf16 %v2255_v51, %v2255_v51  ;;  %v8365_v51 = vld [vmem:[#allocation8 + $0x10ec] ss:$48 sps:$4 sm:$0xff]  }
 0x234   :  { %v9323_v3 = vpack.c.bf16 %v2256_v18, %v2256_v18  ;;  %v8360_v18 = vld [vmem:[#allocation8 + $0x10e0] ss:$48 sps:$4 sm:$0xff]  }
 0x236   :  { %5858 = vmatprep.mubr.bf16.mxu1 %v9323_v3  ;;  %5981 = vmatprep.mubr.bf16.mxu0 %v9323_v3 }
 0x237   :  { %5859 = vmatmul.mubr.bf16.vlgmr.msra.gmra.mrb[8].mxu1 %v9325_v50  ;;  %5982 = vmatmul.mubr.bf16.vlgmr.msra.gmra.mrb[8].mxu0 %v9325_v50 }
 0x238   :  { %5868 = vmatpush1.bf16.msra.mxu1 %v8282_v53  ;;  %5991 = vmatpush1.bf16.msra.mxu0 %v8285_v27  ;;  %v8363_v53 = vld [vmem:[#allocation8 + $0x10e8] ss:$48 sps:$4 sm:$0xff]   ;;  %v436_v27 = vsub.s32 5, %v9244_v43 }
 0x239   :  { %5869 = vmatprep.subr.bf16.mxu1 %v8290_v57  ;;  %5992 = vmatprep.subr.bf16.mxu0 %v8293_v58  ;;  %v8368_v57 = vld [vmem:[#allocation8 + $0x1144] ss:$48 sps:$4 sm:$0xff]   ;;  %v8371_v58 = vld [vmem:[#allocation8 + $0x114c] ss:$48 sps:$4 sm:$0xff]  }
 0x23c   :  { %5870 = vmatpush1.bf16.msra.mxu1 %v8288_v54  ;;  %5993 = vmatpush1.bf16.msra.mxu0 %v8291_v59  ;;  %v9002_v54 = vld [vmem:[#allocation7] sm:$0x3f] }
 0x23d   :  { %5871 = vmatprep.subr.bf16.mxu1 %v8296_v60  ;;  %5994 = vmatprep.subr.bf16.mxu0 %v8299_v61  ;;  %v433_v59 = vrot.slane %v9002_v54, %v432_v52  ;;  %v8366_v60 = vld [vmem:[#allocation8 + $0x1140] ss:$48 sps:$4 sm:$0xff]   ;;  %v8369_v61 = vld [vmem:[#allocation8 + $0x1148] ss:$48 sps:$4 sm:$0xff]  }
 0x240   :  { %5872 = vmatpush1.bf16.msra.mxu1 %v8294_v1  ;;  %5995 = vmatpush1.bf16.msra.mxu0 %v8297_v2  ;;  %v437_v1 = vrot.slane %v9002_v54, %v436_v27  ;;  %v8374_v2 = vld [vmem:[#allocation8 + $0x11a4] ss:$48 sps:$4 sm:$0xff]   ;;  %v8431_v54 = vld [vmem:[#allocation8 + $0x31c] ss:$48 sps:$4 sm:$0xff]  }
 0x241   :  { %5873 = vmatprep.subr.bf16.mxu1 %v8302_v4  ;;  %5996 = vmatprep.subr.bf16.mxu0 %v8305_v5  ;;  %v8377_v4 = vld [vmem:[#allocation8 + $0x11ac] ss:$48 sps:$4 sm:$0xff]  }
 0x244   :  { %5874 = vmatpush1.bf16.msra.mxu1 %v8300_v6  ;;  %5997 = vmatpush1.bf16.msra.mxu0 %v8303_v7 }
 0x245   :  { %5875 = vmatprep.subr.bf16.mxu1 %v8308_v8  ;;  %5998 = vmatprep.subr.bf16.mxu0 %v8311_v9 }
 0x248   :  { %5876 = vmatpush1.bf16.msra.mxu1 %v8306_v10  ;;  %5999 = vmatpush1.bf16.msra.mxu0 %v8309_v11  ;;  %v8372_v10 = vld [vmem:[#allocation8 + $0x11a0] ss:$48 sps:$4 sm:$0xff]   ;;  %v8375_v11 = vld [vmem:[#allocation8 + $0x11a8] ss:$48 sps:$4 sm:$0xff]  }
 0x249   :  { %5877 = vmatprep.subr.bf16.mxu1 %v8314_v12  ;;  %6000 = vmatprep.subr.bf16.mxu0 %v8317_v63 }
 0x24c   :  { %5878 = vmatpush1.bf16.msra.mxu1 %v8312_v14  ;;  %6001 = vmatpush1.bf16.msra.mxu0 %v8315_v0  ;;  %v8380_v14 = vld [vmem:[#allocation8 + $0x14] ss:$48 sps:$4 sm:$0xff]   ;;  %v8383_v0 = vld [vmem:[#allocation8 + $0x1c] ss:$48 sps:$4 sm:$0xff]  }
 0x24d   :  { %5879 = vmatprep.subr.bf16.mxu1 %v8320_v17  ;;  %6002 = vmatprep.subr.bf16.mxu0 %v8323_v19 }
 0x250   :  { %5880 = vmatpush1.bf16.msra.mxu1 %v8318_v20  ;;  %6003 = vmatpush1.bf16.msra.mxu0 %v8321_v21  ;;  %v8378_v20 = vld [vmem:[#allocation8 + $0x10] ss:$48 sps:$4 sm:$0xff]   ;;  %v8381_v21 = vld [vmem:[#allocation8 + $0x18] ss:$48 sps:$4 sm:$0xff]  }
 0x251   :  { %5881 = vmatprep.subr.bf16.mxu1 %v8326_v22  ;;  %6004 = vmatprep.subr.bf16.mxu0 %v8329_v23  ;;  %v8386_v23 = vld [vmem:[#allocation8 + $0x74] ss:$48 sps:$4 sm:$0xff]  }
 0x254   :  { %5882 = vmatpush1.bf16.msra.mxu1 %v8324_v24  ;;  %6005 = vmatpush1.bf16.msra.mxu0 %v8327_v25  ;;  %v8389_v24 = vld [vmem:[#allocation8 + $0x7c] ss:$48 sps:$4 sm:$0xff]   ;;  %v8384_v25 = vld [vmem:[#allocation8 + $0x70] ss:$48 sps:$4 sm:$0xff]  }
 0x255   :  { %5883 = vmatprep.subr.bf16.mxu1 %v8332_v26  ;;  %6006 = vmatprep.subr.bf16.mxu0 %v8335_v28  ;;  %v8387_v26 = vld [vmem:[#allocation8 + $0x78] ss:$48 sps:$4 sm:$0xff]   ;;  %v8392_v28 = vld [vmem:[#allocation8 + $0xd4] ss:$48 sps:$4 sm:$0xff]  }
 0x258   :  { %5884 = vmatpush1.bf16.msra.mxu1 %v8330_v29  ;;  %6007 = vmatpush1.bf16.msra.mxu0 %v8333_v30  ;;  %v8395_v29 = vld [vmem:[#allocation8 + $0xdc] ss:$48 sps:$4 sm:$0xff]   ;;  %v8390_v30 = vld [vmem:[#allocation8 + $0xd0] ss:$48 sps:$4 sm:$0xff]  }
 0x259   :  { %5885 = vmatprep.subr.bf16.mxu1 %v8338_v31  ;;  %6008 = vmatprep.subr.bf16.mxu0 %v8341_v32  ;;  %v8393_v31 = vld [vmem:[#allocation8 + $0xd8] ss:$48 sps:$4 sm:$0xff]   ;;  %v8398_v32 = vld [vmem:[#allocation8 + $0x134] ss:$48 sps:$4 sm:$0xff]  }
 0x25c   :  { %5886 = vmatpush1.bf16.msra.mxu1 %v8336_v33  ;;  %6009 = vmatpush1.bf16.msra.mxu0 %v8339_v34  ;;  %v8401_v33 = vld [vmem:[#allocation8 + $0x13c] ss:$48 sps:$4 sm:$0xff]   ;;  %v8396_v34 = vld [vmem:[#allocation8 + $0x130] ss:$48 sps:$4 sm:$0xff]  }
 0x25d   :  { %5887 = vmatprep.subr.bf16.mxu1 %v8344_v35  ;;  %6010 = vmatprep.subr.bf16.mxu0 %v8347_v36  ;;  %v8399_v35 = vld [vmem:[#allocation8 + $0x138] ss:$48 sps:$4 sm:$0xff]   ;;  %v8404_v36 = vld [vmem:[#allocation8 + $0x194] ss:$48 sps:$4 sm:$0xff]  }
 0x260   :  { %5888 = vmatpush1.bf16.msra.mxu1 %v8342_v37  ;;  %6011 = vmatpush1.bf16.msra.mxu0 %v8345_v38  ;;  %v8407_v37 = vld [vmem:[#allocation8 + $0x19c] ss:$48 sps:$4 sm:$0xff]   ;;  %v8402_v38 = vld [vmem:[#allocation8 + $0x190] ss:$48 sps:$4 sm:$0xff]  }
 0x261   :  { %5889 = vmatprep.subr.bf16.mxu1 %v8350_v39  ;;  %6012 = vmatprep.subr.bf16.mxu0 %v8353_v40  ;;  %v8405_v39 = vld [vmem:[#allocation8 + $0x198] ss:$48 sps:$4 sm:$0xff]   ;;  %v8410_v40 = vld [vmem:[#allocation8 + $0x1f4] ss:$48 sps:$4 sm:$0xff]  }
 0x264   :  { %5890 = vmatpush1.bf16.msra.mxu1 %v8348_v44  ;;  %6013 = vmatpush1.bf16.msra.mxu0 %v8351_v45  ;;  %v8413_v44 = vld [vmem:[#allocation8 + $0x1fc] ss:$48 sps:$4 sm:$0xff]   ;;  %v8408_v45 = vld [vmem:[#allocation8 + $0x1f0] ss:$48 sps:$4 sm:$0xff]  }
 0x265   :  { %5891 = vmatprep.subr.bf16.mxu1 %v8356_v62  ;;  %6014 = vmatprep.subr.bf16.mxu0 %v8359_v16  ;;  %v8411_v62 = vld [vmem:[#allocation8 + $0x1f8] ss:$48 sps:$4 sm:$0xff]   ;;  %v8416_v16 = vld [vmem:[#allocation8 + $0x254] ss:$48 sps:$4 sm:$0xff]  }
 0x268   :  { %5892 = vmatpush1.bf16.msra.mxu1 %v8354_v46  ;;  %6015 = vmatpush1.bf16.msra.mxu0 %v8357_v47  ;;  %v8419_v46 = vld [vmem:[#allocation8 + $0x25c] ss:$48 sps:$4 sm:$0xff]   ;;  %v8414_v47 = vld [vmem:[#allocation8 + $0x250] ss:$48 sps:$4 sm:$0xff]  }
 0x269   :  { %5893 = vmatprep.subr.bf16.mxu1 %v8362_v48  ;;  %6016 = vmatprep.subr.bf16.mxu0 %v8365_v51  ;;  %v8417_v48 = vld [vmem:[#allocation8 + $0x258] ss:$48 sps:$4 sm:$0xff]   ;;  %v8422_v51 = vld [vmem:[#allocation8 + $0x2b4] ss:$48 sps:$4 sm:$0xff]  }
 0x26c   :  { %5894 = vmatpush1.bf16.msra.mxu1 %v8360_v18  ;;  %6017 = vmatpush1.bf16.msra.mxu0 %v8363_v53  ;;  %v8425_v18 = vld [vmem:[#allocation8 + $0x2bc] ss:$48 sps:$4 sm:$0xff]   ;;  %v8420_v53 = vld [vmem:[#allocation8 + $0x2b0] ss:$48 sps:$4 sm:$0xff]  }
 0x26d   :  { %5895 = vmatprep.subr.bf16.mxu1 %v8368_v57  ;;  %6018 = vmatprep.subr.bf16.mxu0 %v8371_v58  ;;  %v8423_v57 = vld [vmem:[#allocation8 + $0x2b8] ss:$48 sps:$4 sm:$0xff]   ;;  %v8428_v58 = vld [vmem:[#allocation8 + $0x314] ss:$48 sps:$4 sm:$0xff]  }
 0x26f   :  { %v2246_v5 = vpop.f32.mrb[4].mxu0 }
 0x270   :  { %v7564_v6 = vadd.f32 %v2246_v5, %v433_v59  ;;  %v2248_v7 = vpop.f32.mrb[5].mxu0  ;;  %5896 = vmatpush1.bf16.msra.mxu1 %v8366_v60  ;;  %6019 = vmatpush1.bf16.msra.mxu0 %v8369_v61  ;;  %v8426_v59 = vld [vmem:[#allocation8 + $0x310] ss:$48 sps:$4 sm:$0xff]   ;;  %v8429_v60 = vld [vmem:[#allocation8 + $0x318] ss:$48 sps:$4 sm:$0xff]  }
 0x271   :  { %v7565_v8 = vadd.f32 %v2248_v7, %v437_v1  ;;  %v2250_v9 = vpop.f32.mrb[6].mxu0  ;;  %5897 = vmatprep.subr.bf16.mxu1 %v8374_v2  ;;  %6020 = vmatprep.subr.bf16.mxu0 %v8377_v4  ;;  %v8434_v61 = vld [vmem:[#allocation8 + $0x374] ss:$48 sps:$4 sm:$0xff]   ;;  %v8437_v1 = vld [vmem:[#allocation8 + $0x37c] ss:$48 sps:$4 sm:$0xff]  }
 0x272   :  { %v2257_v12 = vmax.f32 %v7564_v6, 0.0  ;;  %v2251_v63 = vpop.f32.mrb[7].mxu0  ;;  %v8432_v2 = vld [vmem:[#allocation8 + $0x370] ss:$48 sps:$4 sm:$0xff]   ;;  %v8435_v4 = vld [vmem:[#allocation8 + $0x378] ss:$48 sps:$4 sm:$0xff]  }
 0x273   :  { %v2258_v17 = vmax.f32 %v7565_v8, 0.0  ;;  %v8440_v5 = vld [vmem:[#allocation8 + $0x3d4] ss:$48 sps:$4 sm:$0xff]   ;;  %v8443_v6 = vld [vmem:[#allocation8 + $0x3dc] ss:$48 sps:$4 sm:$0xff]  }
 0x274   :  { %5898 = vmatpush1.bf16.msra.mxu1 %v8372_v10  ;;  %6021 = vmatpush1.bf16.msra.mxu0 %v8375_v11  ;;  %v9339_v22 = vpack.c.bf16 %v2257_v12, %v2257_v12  ;;  %v8438_v7 = vld [vmem:[#allocation8 + $0x3d0] ss:$48 sps:$4 sm:$0xff]   ;;  %v8441_v8 = vld [vmem:[#allocation8 + $0x3d8] ss:$48 sps:$4 sm:$0xff]   ;;  %v8446_v9 = vld [vmem:[#allocation8 + $0x434] ss:$48 sps:$4 sm:$0xff]  }
 0x275   :  { %v9337_v19 = vpack.c.bf16 %v2258_v17, %v2258_v17  ;;  %6031 = vmatprep.subr.bf16.mxu1 %v8380_v14  ;;  %6154 = vmatprep.subr.bf16.mxu0 %v8383_v0  ;;  %v8449_v10 = vld [vmem:[#allocation8 + $0x43c] ss:$48 sps:$4 sm:$0xff]   ;;  %v8444_v11 = vld [vmem:[#allocation8 + $0x430] ss:$48 sps:$4 sm:$0xff]   ;;  %v8447_v12 = vld [vmem:[#allocation8 + $0x438] ss:$48 sps:$4 sm:$0xff]  }
 0x276   :  { %v8452_v63 = vld [vmem:[#allocation8 + $0x494] ss:$48 sps:$4 sm:$0xff]   ;;  %v8455_v14 = vld [vmem:[#allocation8 + $0x49c] ss:$48 sps:$4 sm:$0xff]   ;;  %v8450_v0 = vld [vmem:[#allocation8 + $0x490] ss:$48 sps:$4 sm:$0xff]  }
 0x277   :  { %5899 = vmatprep.mubr.bf16.mxu1 %v9337_v19  ;;  %6022 = vmatprep.mubr.bf16.mxu0 %v9337_v19  ;;  %v8453_v17 = vld [vmem:[#allocation8 + $0x498] ss:$48 sps:$4 sm:$0xff]  }
 0x278   :  { %5900 = vmatmul.mubr.bf16.vlgmr.msra.gmra.mrb[8].mxu1 %v9339_v22  ;;  %6023 = vmatmul.mubr.bf16.vlgmr.msra.gmra.mrb[8].mxu0 %v9339_v22 }
 0x279   :  { %6032 = vmatpush1.bf16.msra.mxu1 %v8378_v20  ;;  %6155 = vmatpush1.bf16.msra.mxu0 %v8381_v21  ;;  %v8458_v20 = vld [vmem:[#allocation8 + $0x4f4] ss:$48 sps:$4 sm:$0xff]   ;;  %v8461_v21 = vld [vmem:[#allocation8 + $0x4fc] ss:$48 sps:$4 sm:$0xff]  }
 0x27a   :  { %6063 = vmatprep.mubr.bf16.mxu1 %v9305_v13  ;;  %6186 = vmatprep.mubr.bf16.mxu0 %v9305_v13 }
 0x27b   :  { %6033 = vmatprep.subr.bf16.mxu1 %v8386_v23  ;;  %6156 = vmatprep.subr.bf16.mxu0 %v8389_v24  ;;  %v8456_v23 = vld [vmem:[#allocation8 + $0x4f0] ss:$48 sps:$4 sm:$0xff]   ;;  %v8459_v24 = vld [vmem:[#allocation8 + $0x4f8] ss:$48 sps:$4 sm:$0xff]  }
 0x27d   :  { %6034 = vmatpush1.bf16.msra.mxu1 %v8384_v25  ;;  %6157 = vmatpush1.bf16.msra.mxu0 %v8387_v26  ;;  %v8464_v25 = vld [vmem:[#allocation8 + $0x554] ss:$48 sps:$4 sm:$0xff]   ;;  %v8467_v26 = vld [vmem:[#allocation8 + $0x55c] ss:$48 sps:$4 sm:$0xff]  }
 0x27e   :  { %6035 = vmatprep.subr.bf16.mxu1 %v8392_v28  ;;  %6158 = vmatprep.subr.bf16.mxu0 %v8395_v29  ;;  %v8462_v28 = vld [vmem:[#allocation8 + $0x550] ss:$48 sps:$4 sm:$0xff]   ;;  %v8465_v29 = vld [vmem:[#allocation8 + $0x558] ss:$48 sps:$4 sm:$0xff]  }
 0x281   :  { %6036 = vmatpush1.bf16.msra.mxu1 %v8390_v30  ;;  %6159 = vmatpush1.bf16.msra.mxu0 %v8393_v31  ;;  %v8470_v30 = vld [vmem:[#allocation8 + $0x5b4] ss:$48 sps:$4 sm:$0xff]   ;;  %v8473_v31 = vld [vmem:[#allocation8 + $0x5bc] ss:$48 sps:$4 sm:$0xff]  }
 0x282   :  { %6037 = vmatprep.subr.bf16.mxu1 %v8398_v32  ;;  %6160 = vmatprep.subr.bf16.mxu0 %v8401_v33  ;;  %v8468_v32 = vld [vmem:[#allocation8 + $0x5b0] ss:$48 sps:$4 sm:$0xff]   ;;  %v8471_v33 = vld [vmem:[#allocation8 + $0x5b8] ss:$48 sps:$4 sm:$0xff]  }
 0x285   :  { %6038 = vmatpush1.bf16.msra.mxu1 %v8396_v34  ;;  %6161 = vmatpush1.bf16.msra.mxu0 %v8399_v35  ;;  %v8476_v34 = vld [vmem:[#allocation8 + $0x614] ss:$48 sps:$4 sm:$0xff]   ;;  %v8479_v35 = vld [vmem:[#allocation8 + $0x61c] ss:$48 sps:$4 sm:$0xff]  }
 0x286   :  { %6039 = vmatprep.subr.bf16.mxu1 %v8404_v36  ;;  %6162 = vmatprep.subr.bf16.mxu0 %v8407_v37  ;;  %v8474_v36 = vld [vmem:[#allocation8 + $0x610] ss:$48 sps:$4 sm:$0xff]   ;;  %v8477_v37 = vld [vmem:[#allocation8 + $0x618] ss:$48 sps:$4 sm:$0xff]  }
 0x289   :  { %6040 = vmatpush1.bf16.msra.mxu1 %v8402_v38  ;;  %6163 = vmatpush1.bf16.msra.mxu0 %v8405_v39  ;;  %v8482_v38 = vld [vmem:[#allocation8 + $0x674] ss:$48 sps:$4 sm:$0xff]   ;;  %v8485_v39 = vld [vmem:[#allocation8 + $0x67c] ss:$48 sps:$4 sm:$0xff]  }
 0x28a   :  { %6041 = vmatprep.subr.bf16.mxu1 %v8410_v40  ;;  %6164 = vmatprep.subr.bf16.mxu0 %v8413_v44  ;;  %v8480_v40 = vld [vmem:[#allocation8 + $0x670] ss:$48 sps:$4 sm:$0xff]   ;;  %v8483_v44 = vld [vmem:[#allocation8 + $0x678] ss:$48 sps:$4 sm:$0xff]  }
 0x28d   :  { %6042 = vmatpush1.bf16.msra.mxu1 %v8408_v45  ;;  %6165 = vmatpush1.bf16.msra.mxu0 %v8411_v62  ;;  %v8488_v45 = vld [vmem:[#allocation8 + $0x6d4] ss:$48 sps:$4 sm:$0xff]   ;;  %v8491_v62 = vld [vmem:[#allocation8 + $0x6dc] ss:$48 sps:$4 sm:$0xff]  }
 0x28e   :  { %6043 = vmatprep.subr.bf16.mxu1 %v8416_v16  ;;  %6166 = vmatprep.subr.bf16.mxu0 %v8419_v46  ;;  %v8486_v16 = vld [vmem:[#allocation8 + $0x6d0] ss:$48 sps:$4 sm:$0xff]   ;;  %v8489_v46 = vld [vmem:[#allocation8 + $0x6d8] ss:$48 sps:$4 sm:$0xff]  }
 0x291   :  { %6044 = vmatpush1.bf16.msra.mxu1 %v8414_v47  ;;  %6167 = vmatpush1.bf16.msra.mxu0 %v8417_v48  ;;  %v8494_v47 = vld [vmem:[#allocation8 + $0x734] ss:$48 sps:$4 sm:$0xff]   ;;  %v8497_v48 = vld [vmem:[#allocation8 + $0x73c] ss:$48 sps:$4 sm:$0xff]  }
 0x292   :  { %6045 = vmatprep.subr.bf16.mxu1 %v8422_v51  ;;  %6168 = vmatprep.subr.bf16.mxu0 %v8425_v18  ;;  %v8492_v51 = vld [vmem:[#allocation8 + $0x730] ss:$48 sps:$4 sm:$0xff]   ;;  %v8495_v18 = vld [vmem:[#allocation8 + $0x738] ss:$48 sps:$4 sm:$0xff]  }
 0x295   :  { %6046 = vmatpush1.bf16.msra.mxu1 %v8420_v53  ;;  %6169 = vmatpush1.bf16.msra.mxu0 %v8423_v57  ;;  %v8500_v53 = vld [vmem:[#allocation8 + $0x794] ss:$48 sps:$4 sm:$0xff]   ;;  %v8503_v57 = vld [vmem:[#allocation8 + $0x79c] ss:$48 sps:$4 sm:$0xff]  }
 0x296   :  { %6047 = vmatprep.subr.bf16.mxu1 %v8428_v58  ;;  %6170 = vmatprep.subr.bf16.mxu0 %v8431_v54  ;;  %v8498_v58 = vld [vmem:[#allocation8 + $0x790] ss:$48 sps:$4 sm:$0xff]   ;;  %v8501_v54 = vld [vmem:[#allocation8 + $0x798] ss:$48 sps:$4 sm:$0xff]  }
 0x299   :  { %6048 = vmatpush1.bf16.msra.mxu1 %v8426_v59  ;;  %6171 = vmatpush1.bf16.msra.mxu0 %v8429_v60  ;;  %v8506_v59 = vld [vmem:[#allocation8 + $0x7f4] ss:$48 sps:$4 sm:$0xff]   ;;  %v8509_v60 = vld [vmem:[#allocation8 + $0x7fc] ss:$48 sps:$4 sm:$0xff]  }
 0x29a   :  { %6049 = vmatprep.subr.bf16.mxu1 %v8434_v61  ;;  %6172 = vmatprep.subr.bf16.mxu0 %v8437_v1  ;;  %v8504_v61 = vld [vmem:[#allocation8 + $0x7f0] ss:$48 sps:$4 sm:$0xff]   ;;  %v8507_v1 = vld [vmem:[#allocation8 + $0x7f8] ss:$48 sps:$4 sm:$0xff]  }
 0x29d   :  { %6050 = vmatpush1.bf16.msra.mxu1 %v8432_v2  ;;  %6173 = vmatpush1.bf16.msra.mxu0 %v8435_v4  ;;  %v8512_v2 = vld [vmem:[#allocation8 + $0x854] ss:$48 sps:$4 sm:$0xff]   ;;  %v8515_v4 = vld [vmem:[#allocation8 + $0x85c] ss:$48 sps:$4 sm:$0xff]  }
 0x29e   :  { %6051 = vmatprep.subr.bf16.mxu1 %v8440_v5  ;;  %6174 = vmatprep.subr.bf16.mxu0 %v8443_v6  ;;  %v8510_v5 = vld [vmem:[#allocation8 + $0x850] ss:$48 sps:$4 sm:$0xff]   ;;  %v8513_v6 = vld [vmem:[#allocation8 + $0x858] ss:$48 sps:$4 sm:$0xff]  }
 0x2a1   :  { %6052 = vmatpush1.bf16.msra.mxu1 %v8438_v7  ;;  %6175 = vmatpush1.bf16.msra.mxu0 %v8441_v8  ;;  %v8518_v7 = vld [vmem:[#allocation8 + $0x8b4] ss:$48 sps:$4 sm:$0xff]   ;;  %v8521_v8 = vld [vmem:[#allocation8 + $0x8bc] ss:$48 sps:$4 sm:$0xff]  }
 0x2a2   :  { %6053 = vmatprep.subr.bf16.mxu1 %v8446_v9  ;;  %6176 = vmatprep.subr.bf16.mxu0 %v8449_v10  ;;  %v8516_v9 = vld [vmem:[#allocation8 + $0x8b0] ss:$48 sps:$4 sm:$0xff]   ;;  %v8519_v10 = vld [vmem:[#allocation8 + $0x8b8] ss:$48 sps:$4 sm:$0xff]  }
 0x2a5   :  { %6054 = vmatpush1.bf16.msra.mxu1 %v8444_v11  ;;  %6177 = vmatpush1.bf16.msra.mxu0 %v8447_v12  ;;  %v8524_v11 = vld [vmem:[#allocation8 + $0x914] ss:$48 sps:$4 sm:$0xff]   ;;  %v8527_v12 = vld [vmem:[#allocation8 + $0x91c] ss:$48 sps:$4 sm:$0xff]  }
 0x2a6   :  { %6055 = vmatprep.subr.bf16.mxu1 %v8452_v63  ;;  %6178 = vmatprep.subr.bf16.mxu0 %v8455_v14  ;;  %v8522_v63 = vld [vmem:[#allocation8 + $0x910] ss:$48 sps:$4 sm:$0xff]   ;;  %v8525_v14 = vld [vmem:[#allocation8 + $0x918] ss:$48 sps:$4 sm:$0xff]  }
 0x2a9   :  { %6056 = vmatpush1.bf16.msra.mxu1 %v8450_v0  ;;  %6179 = vmatpush1.bf16.msra.mxu0 %v8453_v17  ;;  %v8530_v0 = vld [vmem:[#allocation8 + $0x974] ss:$48 sps:$4 sm:$0xff]   ;;  %v8533_v17 = vld [vmem:[#allocation8 + $0x97c] ss:$48 sps:$4 sm:$0xff]  }
 0x2aa   :  { %6057 = vmatprep.subr.bf16.mxu1 %v8458_v20  ;;  %6180 = vmatprep.subr.bf16.mxu0 %v8461_v21  ;;  %v8528_v20 = vld [vmem:[#allocation8 + $0x970] ss:$48 sps:$4 sm:$0xff]   ;;  %v8531_v21 = vld [vmem:[#allocation8 + $0x978] ss:$48 sps:$4 sm:$0xff]  }
 0x2ad   :  { %6058 = vmatpush1.bf16.msra.mxu1 %v8456_v23  ;;  %6181 = vmatpush1.bf16.msra.mxu0 %v8459_v24  ;;  %v8536_v23 = vld [vmem:[#allocation8 + $0x9d4] ss:$48 sps:$4 sm:$0xff]   ;;  %v8539_v24 = vld [vmem:[#allocation8 + $0x9dc] ss:$48 sps:$4 sm:$0xff]  }
 0x2ae   :  { %6059 = vmatprep.subr.bf16.mxu1 %v8464_v25  ;;  %6182 = vmatprep.subr.bf16.mxu0 %v8467_v26  ;;  %v8534_v25 = vld [vmem:[#allocation8 + $0x9d0] ss:$48 sps:$4 sm:$0xff]   ;;  %v8537_v26 = vld [vmem:[#allocation8 + $0x9d8] ss:$48 sps:$4 sm:$0xff]  }
 0x2b1   :  { %6060 = vmatpush1.bf16.msra.mxu1 %v8462_v28  ;;  %6183 = vmatpush1.bf16.msra.mxu0 %v8465_v29  ;;  %v8542_v28 = vld [vmem:[#allocation8 + $0xa34] ss:$48 sps:$4 sm:$0xff]   ;;  %v8545_v29 = vld [vmem:[#allocation8 + $0xa3c] ss:$48 sps:$4 sm:$0xff]  }
 0x2b2   :  { %6061 = vmatprep.subr.bf16.mxu1 %v8470_v30  ;;  %6184 = vmatprep.subr.bf16.mxu0 %v8473_v31  ;;  %v8540_v30 = vld [vmem:[#allocation8 + $0xa30] ss:$48 sps:$4 sm:$0xff]   ;;  %v8543_v31 = vld [vmem:[#allocation8 + $0xa38] ss:$48 sps:$4 sm:$0xff]  }
 0x2b5   :  { %6062 = vmatpush1.bf16.msra.mxu1 %v8468_v32  ;;  %6185 = vmatpush1.bf16.msra.mxu0 %v8471_v33  ;;  %v8548_v32 = vld [vmem:[#allocation8 + $0xa94] ss:$48 sps:$4 sm:$0xff]   ;;  %v8551_v33 = vld [vmem:[#allocation8 + $0xa9c] ss:$48 sps:$4 sm:$0xff]  }
 0x2b6   :  { %6072 = vmatprep.subr.bf16.mxu1 %v8476_v34  ;;  %6195 = vmatprep.subr.bf16.mxu0 %v8479_v35  ;;  %v8546_v34 = vld [vmem:[#allocation8 + $0xa90] ss:$48 sps:$4 sm:$0xff]   ;;  %v8549_v35 = vld [vmem:[#allocation8 + $0xa98] ss:$48 sps:$4 sm:$0xff]  }
 0x2b8   :  { %6064 = vmatmul.mubr.bf16.vlgmr.msra.gmra.mrb[12].mxu1 %v9307_v15  ;;  %6187 = vmatmul.mubr.bf16.vlgmr.msra.gmra.mrb[12].mxu0 %v9307_v15 }
 0x2b9   :  { %6073 = vmatpush1.bf16.msra.mxu1 %v8474_v36  ;;  %6104 = vmatprep.mubr.bf16.mxu1 %v9323_v3  ;;  %v8554_v36 = vld [vmem:[#allocation8 + $0xaf4] ss:$48 sps:$4 sm:$0xff]  }
 0x2ba   :  { %6196 = vmatpush1.bf16.msra.mxu0 %v8477_v37  ;;  %6227 = vmatprep.mubr.bf16.mxu0 %v9323_v3  ;;  %v8557_v37 = vld [vmem:[#allocation8 + $0xafc] ss:$48 sps:$4 sm:$0xff]  }
 0x2bb   :  { %6074 = vmatprep.subr.bf16.mxu1 %v8482_v38  ;;  %6197 = vmatprep.subr.bf16.mxu0 %v8485_v39  ;;  %v8552_v38 = vld [vmem:[#allocation8 + $0xaf0] ss:$48 sps:$4 sm:$0xff]   ;;  %v8555_v39 = vld [vmem:[#allocation8 + $0xaf8] ss:$48 sps:$4 sm:$0xff]  }
 0x2bd   :  { %6075 = vmatpush1.bf16.msra.mxu1 %v8480_v40  ;;  %v8560_v40 = vld [vmem:[#allocation8 + $0xb54] ss:$48 sps:$4 sm:$0xff]  }
 0x2be   :  { %6198 = vmatpush1.bf16.msra.mxu0 %v8483_v44  ;;  %6076 = vmatprep.subr.bf16.mxu1 %v8488_v45  ;;  %v8563_v44 = vld [vmem:[#allocation8 + $0xb5c] ss:$48 sps:$4 sm:$0xff]   ;;  %v8558_v45 = vld [vmem:[#allocation8 + $0xb50] ss:$48 sps:$4 sm:$0xff]  }
 0x2bf   :  { %6199 = vmatprep.subr.bf16.mxu0 %v8491_v62  ;;  %v8561_v62 = vld [vmem:[#allocation8 + $0xb58] ss:$48 sps:$4 sm:$0xff]  }
 0x2c1   :  { %6077 = vmatpush1.bf16.msra.mxu1 %v8486_v16  ;;  %v8566_v16 = vld [vmem:[#allocation8 + $0xbb4] ss:$48 sps:$4 sm:$0xff]  }
 0x2c2   :  { %6200 = vmatpush1.bf16.msra.mxu0 %v8489_v46  ;;  %6078 = vmatprep.subr.bf16.mxu1 %v8494_v47  ;;  %v8569_v46 = vld [vmem:[#allocation8 + $0xbbc] ss:$48 sps:$4 sm:$0xff]   ;;  %v8564_v47 = vld [vmem:[#allocation8 + $0xbb0] ss:$48 sps:$4 sm:$0xff]  }
 0x2c3   :  { %6201 = vmatprep.subr.bf16.mxu0 %v8497_v48  ;;  %v8567_v48 = vld [vmem:[#allocation8 + $0xbb8] ss:$48 sps:$4 sm:$0xff]  }
 0x2c5   :  { %6079 = vmatpush1.bf16.msra.mxu1 %v8492_v51  ;;  %v8572_v51 = vld [vmem:[#allocation8 + $0xc14] ss:$48 sps:$4 sm:$0xff]  }
 0x2c6   :  { %6202 = vmatpush1.bf16.msra.mxu0 %v8495_v18  ;;  %6080 = vmatprep.subr.bf16.mxu1 %v8500_v53  ;;  %v8575_v18 = vld [vmem:[#allocation8 + $0xc1c] ss:$48 sps:$4 sm:$0xff]   ;;  %v8570_v53 = vld [vmem:[#allocation8 + $0xc10] ss:$48 sps:$4 sm:$0xff]  }
 0x2c7   :  { %6203 = vmatprep.subr.bf16.mxu0 %v8503_v57  ;;  %v8573_v57 = vld [vmem:[#allocation8 + $0xc18] ss:$48 sps:$4 sm:$0xff]  }
 0x2c9   :  { %6081 = vmatpush1.bf16.msra.mxu1 %v8498_v58  ;;  %v8578_v58 = vld [vmem:[#allocation8 + $0xc74] ss:$48 sps:$4 sm:$0xff]  }
 0x2ca   :  { %6204 = vmatpush1.bf16.msra.mxu0 %v8501_v54  ;;  %6082 = vmatprep.subr.bf16.mxu1 %v8506_v59  ;;  %v8581_v54 = vld [vmem:[#allocation8 + $0xc7c] ss:$48 sps:$4 sm:$0xff]   ;;  %v8576_v59 = vld [vmem:[#allocation8 + $0xc70] ss:$48 sps:$4 sm:$0xff]  }
 0x2cb   :  { %6205 = vmatprep.subr.bf16.mxu0 %v8509_v60  ;;  %v8579_v60 = vld [vmem:[#allocation8 + $0xc78] ss:$48 sps:$4 sm:$0xff]  }
 0x2cd   :  { %6083 = vmatpush1.bf16.msra.mxu1 %v8504_v61  ;;  %v8584_v61 = vld [vmem:[#allocation8 + $0xcd4] ss:$48 sps:$4 sm:$0xff]  }
 0x2ce   :  { %6206 = vmatpush1.bf16.msra.mxu0 %v8507_v1  ;;  %6084 = vmatprep.subr.bf16.mxu1 %v8512_v2  ;;  %v8587_v1 = vld [vmem:[#allocation8 + $0xcdc] ss:$48 sps:$4 sm:$0xff]   ;;  %v8582_v2 = vld [vmem:[#allocation8 + $0xcd0] ss:$48 sps:$4 sm:$0xff]  }
 0x2cf   :  { %6207 = vmatprep.subr.bf16.mxu0 %v8515_v4  ;;  %v8585_v4 = vld [vmem:[#allocation8 + $0xcd8] ss:$48 sps:$4 sm:$0xff]  }
 0x2d1   :  { %6085 = vmatpush1.bf16.msra.mxu1 %v8510_v5  ;;  %v8590_v5 = vld [vmem:[#allocation8 + $0xd34] ss:$48 sps:$4 sm:$0xff]  }
 0x2d2   :  { %6208 = vmatpush1.bf16.msra.mxu0 %v8513_v6  ;;  %6086 = vmatprep.subr.bf16.mxu1 %v8518_v7  ;;  %v8593_v6 = vld [vmem:[#allocation8 + $0xd3c] ss:$48 sps:$4 sm:$0xff]   ;;  %v8588_v7 = vld [vmem:[#allocation8 + $0xd30] ss:$48 sps:$4 sm:$0xff]  }
 0x2d3   :  { %6209 = vmatprep.subr.bf16.mxu0 %v8521_v8  ;;  %v8591_v8 = vld [vmem:[#allocation8 + $0xd38] ss:$48 sps:$4 sm:$0xff]  }
 0x2d5   :  { %6087 = vmatpush1.bf16.msra.mxu1 %v8516_v9  ;;  %v8596_v9 = vld [vmem:[#allocation8 + $0xd94] ss:$48 sps:$4 sm:$0xff]  }
 0x2d6   :  { %6210 = vmatpush1.bf16.msra.mxu0 %v8519_v10  ;;  %6088 = vmatprep.subr.bf16.mxu1 %v8524_v11  ;;  %v8599_v10 = vld [vmem:[#allocation8 + $0xd9c] ss:$48 sps:$4 sm:$0xff]   ;;  %v8594_v11 = vld [vmem:[#allocation8 + $0xd90] ss:$48 sps:$4 sm:$0xff]  }
 0x2d7   :  { %6211 = vmatprep.subr.bf16.mxu0 %v8527_v12  ;;  %v8597_v12 = vld [vmem:[#allocation8 + $0xd98] ss:$48 sps:$4 sm:$0xff]  }
 0x2d9   :  { %6089 = vmatpush1.bf16.msra.mxu1 %v8522_v63  ;;  %v8602_v63 = vld [vmem:[#allocation8 + $0xdf4] ss:$48 sps:$4 sm:$0xff]  }
 0x2da   :  { %6212 = vmatpush1.bf16.msra.mxu0 %v8525_v14  ;;  %6090 = vmatprep.subr.bf16.mxu1 %v8530_v0  ;;  %v8605_v14 = vld [vmem:[#allocation8 + $0xdfc] ss:$48 sps:$4 sm:$0xff]   ;;  %v8600_v0 = vld [vmem:[#allocation8 + $0xdf0] ss:$48 sps:$4 sm:$0xff]  }
 0x2db   :  { %6213 = vmatprep.subr.bf16.mxu0 %v8533_v17  ;;  %v8603_v17 = vld [vmem:[#allocation8 + $0xdf8] ss:$48 sps:$4 sm:$0xff]  }
 0x2dd   :  { %6091 = vmatpush1.bf16.msra.mxu1 %v8528_v20  ;;  %v8608_v20 = vld [vmem:[#allocation8 + $0xe54] ss:$48 sps:$4 sm:$0xff]  }
 0x2de   :  { %6214 = vmatpush1.bf16.msra.mxu0 %v8531_v21  ;;  %6092 = vmatprep.subr.bf16.mxu1 %v8536_v23  ;;  %v8611_v21 = vld [vmem:[#allocation8 + $0xe5c] ss:$48 sps:$4 sm:$0xff]   ;;  %v8606_v23 = vld [vmem:[#allocation8 + $0xe50] ss:$48 sps:$4 sm:$0xff]  }
 0x2df   :  { %6215 = vmatprep.subr.bf16.mxu0 %v8539_v24  ;;  %v8609_v24 = vld [vmem:[#allocation8 + $0xe58] ss:$48 sps:$4 sm:$0xff]  }
 0x2e1   :  { %6093 = vmatpush1.bf16.msra.mxu1 %v8534_v25  ;;  %v8614_v25 = vld [vmem:[#allocation8 + $0xeb4] ss:$48 sps:$4 sm:$0xff]  }
 0x2e2   :  { %6216 = vmatpush1.bf16.msra.mxu0 %v8537_v26  ;;  %6094 = vmatprep.subr.bf16.mxu1 %v8542_v28  ;;  %v8617_v26 = vld [vmem:[#allocation8 + $0xebc] ss:$48 sps:$4 sm:$0xff]   ;;  %v8612_v28 = vld [vmem:[#allocation8 + $0xeb0] ss:$48 sps:$4 sm:$0xff]  }
 0x2e3   :  { %6217 = vmatprep.subr.bf16.mxu0 %v8545_v29  ;;  %v8615_v29 = vld [vmem:[#allocation8 + $0xeb8] ss:$48 sps:$4 sm:$0xff]  }
 0x2e5   :  { %6095 = vmatpush1.bf16.msra.mxu1 %v8540_v30  ;;  %v8620_v30 = vld [vmem:[#allocation8 + $0xf14] ss:$48 sps:$4 sm:$0xff]  }
 0x2e6   :  { %6218 = vmatpush1.bf16.msra.mxu0 %v8543_v31  ;;  %6096 = vmatprep.subr.bf16.mxu1 %v8548_v32  ;;  %v8623_v31 = vld [vmem:[#allocation8 + $0xf1c] ss:$48 sps:$4 sm:$0xff]   ;;  %v8618_v32 = vld [vmem:[#allocation8 + $0xf10] ss:$48 sps:$4 sm:$0xff]  }
 0x2e7   :  { %6219 = vmatprep.subr.bf16.mxu0 %v8551_v33  ;;  %v8621_v33 = vld [vmem:[#allocation8 + $0xf18] ss:$48 sps:$4 sm:$0xff]  }
 0x2e9   :  { %6097 = vmatpush1.bf16.msra.mxu1 %v8546_v34  ;;  %v8626_v34 = vld [vmem:[#allocation8 + $0xf74] ss:$48 sps:$4 sm:$0xff]  }
 0x2ea   :  { %6220 = vmatpush1.bf16.msra.mxu0 %v8549_v35  ;;  %6098 = vmatprep.subr.bf16.mxu1 %v8554_v36  ;;  %v8629_v35 = vld [vmem:[#allocation8 + $0xf7c] ss:$48 sps:$4 sm:$0xff]   ;;  %v8624_v36 = vld [vmem:[#allocation8 + $0xf70] ss:$48 sps:$4 sm:$0xff]  }
 0x2eb   :  { %6221 = vmatprep.subr.bf16.mxu0 %v8557_v37  ;;  %v8627_v37 = vld [vmem:[#allocation8 + $0xf78] ss:$48 sps:$4 sm:$0xff]  }
 0x2ed   :  { %6099 = vmatpush1.bf16.msra.mxu1 %v8552_v38  ;;  %v8632_v38 = vld [vmem:[#allocation8 + $0xfd4] ss:$48 sps:$4 sm:$0xff]  }
 0x2ee   :  { %6222 = vmatpush1.bf16.msra.mxu0 %v8555_v39  ;;  %6100 = vmatprep.subr.bf16.mxu1 %v8560_v40  ;;  %v8635_v39 = vld [vmem:[#allocation8 + $0xfdc] ss:$48 sps:$4 sm:$0xff]   ;;  %v8630_v40 = vld [vmem:[#allocation8 + $0xfd0] ss:$48 sps:$4 sm:$0xff]  }
 0x2ef   :  { %6223 = vmatprep.subr.bf16.mxu0 %v8563_v44  ;;  %v8633_v44 = vld [vmem:[#allocation8 + $0xfd8] ss:$48 sps:$4 sm:$0xff]  }
 0x2f1   :  { %6101 = vmatpush1.bf16.msra.mxu1 %v8558_v45  ;;  %v8638_v45 = vld [vmem:[#allocation8 + $0x1034] ss:$48 sps:$4 sm:$0xff]  }
 0x2f2   :  { %6224 = vmatpush1.bf16.msra.mxu0 %v8561_v62  ;;  %6102 = vmatprep.subr.bf16.mxu1 %v8566_v16  ;;  %v8641_v62 = vld [vmem:[#allocation8 + $0x103c] ss:$48 sps:$4 sm:$0xff]   ;;  %v8636_v16 = vld [vmem:[#allocation8 + $0x1030] ss:$48 sps:$4 sm:$0xff]  }
 0x2f3   :  { %6225 = vmatprep.subr.bf16.mxu0 %v8569_v46  ;;  %v8639_v46 = vld [vmem:[#allocation8 + $0x1038] ss:$48 sps:$4 sm:$0xff]  }
 0x2f5   :  { %6103 = vmatpush1.bf16.msra.mxu1 %v8564_v47  ;;  %v8644_v47 = vld [vmem:[#allocation8 + $0x1094] ss:$48 sps:$4 sm:$0xff]  }
 0x2f6   :  { %6226 = vmatpush1.bf16.msra.mxu0 %v8567_v48  ;;  %6113 = vmatprep.subr.bf16.mxu1 %v8572_v51  ;;  %v8647_v48 = vld [vmem:[#allocation8 + $0x109c] ss:$48 sps:$4 sm:$0xff]   ;;  %v8642_v51 = vld [vmem:[#allocation8 + $0x1090] ss:$48 sps:$4 sm:$0xff]  }
 0x2f7   :  { %6236 = vmatprep.subr.bf16.mxu0 %v8575_v18  ;;  %v8645_v18 = vld [vmem:[#allocation8 + $0x1098] ss:$48 sps:$4 sm:$0xff]  }
 0x2f8   :  { %6105 = vmatmul.mubr.bf16.vlgmr.msra.gmra.mrb[12].mxu1 %v9325_v50 }
 0x2f9   :  { %6228 = vmatmul.mubr.bf16.vlgmr.msra.gmra.mrb[12].mxu0 %v9325_v50  ;;  %6114 = vmatpush1.bf16.msra.mxu1 %v8570_v53  ;;  %v8650_v53 = vld [vmem:[#allocation8 + $0x10f4] ss:$48 sps:$4 sm:$0xff]  }
 0x2fa   :  { %6145 = vmatprep.mubr.bf16.mxu1 %v9337_v19  ;;  %6237 = vmatpush1.bf16.msra.mxu0 %v8573_v57  ;;  %v8653_v57 = vld [vmem:[#allocation8 + $0x10fc] ss:$48 sps:$4 sm:$0xff]  }
 0x2fb   :  { %6268 = vmatprep.mubr.bf16.mxu0 %v9337_v19  ;;  %6115 = vmatprep.subr.bf16.mxu1 %v8578_v58  ;;  %v8648_v58 = vld [vmem:[#allocation8 + $0x10f0] ss:$48 sps:$4 sm:$0xff]  }
 0x2fc   :  { %6238 = vmatprep.subr.bf16.mxu0 %v8581_v54  ;;  %v8651_v54 = vld [vmem:[#allocation8 + $0x10f8] ss:$48 sps:$4 sm:$0xff]  }
 0x2fd   :  { %6116 = vmatpush1.bf16.msra.mxu1 %v8576_v59  ;;  %v8656_v59 = vld [vmem:[#allocation8 + $0x1154] ss:$48 sps:$4 sm:$0xff]  }
 0x2fe   :  { %6239 = vmatpush1.bf16.msra.mxu0 %v8579_v60  ;;  %6117 = vmatprep.subr.bf16.mxu1 %v8584_v61  ;;  %v8659_v60 = vld [vmem:[#allocation8 + $0x115c] ss:$48 sps:$4 sm:$0xff]   ;;  %v8654_v61 = vld [vmem:[#allocation8 + $0x1150] ss:$48 sps:$4 sm:$0xff]  }
 0x2ff   :  { %6240 = vmatprep.subr.bf16.mxu0 %v8587_v1  ;;  %v8657_v1 = vld [vmem:[#allocation8 + $0x1158] ss:$48 sps:$4 sm:$0xff]  }
 0x301   :  { %6118 = vmatpush1.bf16.msra.mxu1 %v8582_v2  ;;  %v8662_v2 = vld [vmem:[#allocation8 + $0x11b4] ss:$48 sps:$4 sm:$0xff]  }
 0x302   :  { %6241 = vmatpush1.bf16.msra.mxu0 %v8585_v4  ;;  %6119 = vmatprep.subr.bf16.mxu1 %v8590_v5  ;;  %v8665_v4 = vld [vmem:[#allocation8 + $0x11bc] ss:$48 sps:$4 sm:$0xff]   ;;  %v8660_v5 = vld [vmem:[#allocation8 + $0x11b0] ss:$48 sps:$4 sm:$0xff]  }
 0x303   :  { %6242 = vmatprep.subr.bf16.mxu0 %v8593_v6  ;;  %v8663_v6 = vld [vmem:[#allocation8 + $0x11b8] ss:$48 sps:$4 sm:$0xff]  }
 0x305   :  { %6120 = vmatpush1.bf16.msra.mxu1 %v8588_v7  ;;  %v8668_v7 = vld [vmem:[#allocation8 + $0x24] ss:$48 sps:$4 sm:$0xff]  }
 0x306   :  { %6243 = vmatpush1.bf16.msra.mxu0 %v8591_v8  ;;  %6121 = vmatprep.subr.bf16.mxu1 %v8596_v9  ;;  %v8671_v8 = vld [vmem:[#allocation8 + $0x2c] ss:$48 sps:$4 sm:$0xff]   ;;  %v8666_v9 = vld [vmem:[#allocation8 + $0x20] ss:$48 sps:$4 sm:$0xff]  }
 0x307   :  { %6244 = vmatprep.subr.bf16.mxu0 %v8599_v10  ;;  %v8669_v10 = vld [vmem:[#allocation8 + $0x28] ss:$48 sps:$4 sm:$0xff]  }
 0x309   :  { %6122 = vmatpush1.bf16.msra.mxu1 %v8594_v11  ;;  %v8674_v11 = vld [vmem:[#allocation8 + $0x84] ss:$48 sps:$4 sm:$0xff]  }
 0x30a   :  { %6245 = vmatpush1.bf16.msra.mxu0 %v8597_v12  ;;  %6123 = vmatprep.subr.bf16.mxu1 %v8602_v63  ;;  %v8677_v12 = vld [vmem:[#allocation8 + $0x8c] ss:$48 sps:$4 sm:$0xff]   ;;  %v8672_v63 = vld [vmem:[#allocation8 + $0x80] ss:$48 sps:$4 sm:$0xff]  }
 0x30b   :  { %6246 = vmatprep.subr.bf16.mxu0 %v8605_v14  ;;  %v8675_v14 = vld [vmem:[#allocation8 + $0x88] ss:$48 sps:$4 sm:$0xff]  }
 0x30d   :  { %6124 = vmatpush1.bf16.msra.mxu1 %v8600_v0  ;;  %v8680_v0 = vld [vmem:[#allocation8 + $0xe4] ss:$48 sps:$4 sm:$0xff]  }
 0x30e   :  { %6247 = vmatpush1.bf16.msra.mxu0 %v8603_v17  ;;  %6125 = vmatprep.subr.bf16.mxu1 %v8608_v20  ;;  %v8683_v17 = vld [vmem:[#allocation8 + $0xec] ss:$48 sps:$4 sm:$0xff]   ;;  %v8678_v20 = vld [vmem:[#allocation8 + $0xe0] ss:$48 sps:$4 sm:$0xff]  }
 0x30f   :  { %6248 = vmatprep.subr.bf16.mxu0 %v8611_v21  ;;  %v8681_v21 = vld [vmem:[#allocation8 + $0xe8] ss:$48 sps:$4 sm:$0xff]  }
 0x311   :  { %6126 = vmatpush1.bf16.msra.mxu1 %v8606_v23  ;;  %v8686_v23 = vld [vmem:[#allocation8 + $0x144] ss:$48 sps:$4 sm:$0xff]  }
 0x312   :  { %6249 = vmatpush1.bf16.msra.mxu0 %v8609_v24  ;;  %6127 = vmatprep.subr.bf16.mxu1 %v8614_v25  ;;  %v8689_v24 = vld [vmem:[#allocation8 + $0x14c] ss:$48 sps:$4 sm:$0xff]   ;;  %v8684_v25 = vld [vmem:[#allocation8 + $0x140] ss:$48 sps:$4 sm:$0xff]  }
 0x313   :  { %6250 = vmatprep.subr.bf16.mxu0 %v8617_v26  ;;  %v8687_v26 = vld [vmem:[#allocation8 + $0x148] ss:$48 sps:$4 sm:$0xff]  }
 0x315   :  { %6128 = vmatpush1.bf16.msra.mxu1 %v8612_v28  ;;  %v8692_v28 = vld [vmem:[#allocation8 + $0x1a4] ss:$48 sps:$4 sm:$0xff]  }
 0x316   :  { %6251 = vmatpush1.bf16.msra.mxu0 %v8615_v29  ;;  %6129 = vmatprep.subr.bf16.mxu1 %v8620_v30  ;;  %v8695_v29 = vld [vmem:[#allocation8 + $0x1ac] ss:$48 sps:$4 sm:$0xff]   ;;  %v9359_v30 = vld [vmem:[#allocation10] sm:$0xff] }
 0x317   :  { %6252 = vmatprep.subr.bf16.mxu0 %v8623_v31  ;;  %v8693_v31 = vld [vmem:[#allocation8 + $0x1a8] ss:$48 sps:$4 sm:$0xff]  }
 0x319   :  { %6130 = vmatpush1.bf16.msra.mxu1 %v8618_v32  ;;  %v8698_v32 = vld [vmem:[#allocation8 + $0x204] ss:$48 sps:$4 sm:$0xff]  }
 0x31a   :  { %6253 = vmatpush1.bf16.msra.mxu0 %v8621_v33  ;;  %6131 = vmatprep.subr.bf16.mxu1 %v8626_v34  ;;  %v8701_v33 = vld [vmem:[#allocation8 + $0x20c] ss:$48 sps:$4 sm:$0xff]   ;;  %v2848_v34 = vrot.slane %v9359_v30, %v9294_v55 }
 0x31b   :  { %6254 = vmatprep.subr.bf16.mxu0 %v8629_v35  ;;  %v2856_v35 = vrot.slane %v9359_v30, %v9314_v41 }
 0x31d   :  { %6132 = vmatpush1.bf16.msra.mxu1 %v8624_v36  ;;  %v8696_v36 = vld [vmem:[#allocation8 + $0x200] ss:$48 sps:$4 sm:$0xff]  }
 0x31e   :  { %6255 = vmatpush1.bf16.msra.mxu0 %v8627_v37  ;;  %6133 = vmatprep.subr.bf16.mxu1 %v8632_v38  ;;  %v2852_v37 = vrot.slane %v9359_v30, %v9297_v56  ;;  %v2860_v38 = vrot.slane %v9359_v30, %v9317_v42 }
 0x31f   :  { %6256 = vmatprep.subr.bf16.mxu0 %v8635_v39  ;;  %v8699_v39 = vld [vmem:[#allocation8 + $0x208] ss:$48 sps:$4 sm:$0xff]  }
 0x321   :  { %6134 = vmatpush1.bf16.msra.mxu1 %v8630_v40  ;;  %v8704_v40 = vld [vmem:[#allocation8 + $0x264] ss:$48 sps:$4 sm:$0xff]  }
 0x322   :  { %6257 = vmatpush1.bf16.msra.mxu0 %v8633_v44  ;;  %6135 = vmatprep.subr.bf16.mxu1 %v8638_v45 }
 0x323   :  { %6258 = vmatprep.subr.bf16.mxu0 %v8641_v62  ;;  %v8707_v62 = vld [vmem:[#allocation8 + $0x26c] ss:$48 sps:$4 sm:$0xff]  }
 0x325   :  { %6136 = vmatpush1.bf16.msra.mxu1 %v8636_v16 }
 0x326   :  { %6259 = vmatpush1.bf16.msra.mxu0 %v8639_v46  ;;  %6137 = vmatprep.subr.bf16.mxu1 %v8644_v47 }
 0x327   :  { %6260 = vmatprep.subr.bf16.mxu0 %v8647_v48 }
 0x329   :  { %6138 = vmatpush1.bf16.msra.mxu1 %v8642_v51  ;;  %v8702_v51 = vld [vmem:[#allocation8 + $0x260] ss:$48 sps:$4 sm:$0xff]  }
 0x32a   :  { %6261 = vmatpush1.bf16.msra.mxu0 %v8645_v18  ;;  %6139 = vmatprep.subr.bf16.mxu1 %v8650_v53 }
 0x32b   :  { %6262 = vmatprep.subr.bf16.mxu0 %v8653_v57 }
 0x32d   :  { %6140 = vmatpush1.bf16.msra.mxu1 %v8648_v58 }
 0x32e   :  { %6263 = vmatpush1.bf16.msra.mxu0 %v8651_v54  ;;  %6141 = vmatprep.subr.bf16.mxu1 %v8656_v59  ;;  %v8705_v54 = vld [vmem:[#allocation8 + $0x268] ss:$48 sps:$4 sm:$0xff]   ;;  %v8710_v59 = vld [vmem:[#allocation8 + $0x2c4] ss:$48 sps:$4 sm:$0xff]  }
 0x32f   :  { %6264 = vmatprep.subr.bf16.mxu0 %v8659_v60 }
 0x331   :  { %6142 = vmatpush1.bf16.msra.mxu1 %v8654_v61 }
 0x332   :  { %6265 = vmatpush1.bf16.msra.mxu0 %v8657_v1  ;;  %6143 = vmatprep.subr.bf16.mxu1 %v8662_v2 }
 0x333   :  { %6266 = vmatprep.subr.bf16.mxu0 %v8665_v4 }
 0x335   :  { %6144 = vmatpush1.bf16.msra.mxu1 %v8660_v5 }
 0x336   :  { %6267 = vmatpush1.bf16.msra.mxu0 %v8663_v6  ;;  %6277 = vmatprep.subr.bf16.mxu1 %v8668_v7  ;;  %v8713_v6 = vld [vmem:[#allocation8 + $0x2cc] ss:$48 sps:$4 sm:$0xff]   ;;  %v8708_v7 = vld [vmem:[#allocation8 + $0x2c0] ss:$48 sps:$4 sm:$0xff]  }
 0x337   :  { %6400 = vmatprep.subr.bf16.mxu0 %v8671_v8  ;;  %v8711_v8 = vld [vmem:[#allocation8 + $0x2c8] ss:$48 sps:$4 sm:$0xff]  }
 0x338   :  { %6146 = vmatmul.mubr.bf16.vlgmr.msra.gmra.mrb[12].mxu1 %v9339_v22 }
 0x339   :  { %6269 = vmatmul.mubr.bf16.vlgmr.msra.gmra.mrb[12].mxu0 %v9339_v22  ;;  %6278 = vmatpush1.bf16.msra.mxu1 %v8666_v9  ;;  %v8716_v9 = vld [vmem:[#allocation8 + $0x324] ss:$48 sps:$4 sm:$0xff]  }
 0x33a   :  { %6309 = vmatprep.mubr.bf16.mxu1 %v9305_v13  ;;  %6401 = vmatpush1.bf16.msra.mxu0 %v8669_v10  ;;  %v8719_v10 = vld [vmem:[#allocation8 + $0x32c] ss:$48 sps:$4 sm:$0xff]  }
 0x33b   :  { %6432 = vmatprep.mubr.bf16.mxu0 %v9305_v13  ;;  %6279 = vmatprep.subr.bf16.mxu1 %v8674_v11  ;;  %v8690_v13 = vld [vmem:[#allocation8 + $0x1a0] ss:$48 sps:$4 sm:$0xff]  }
 0x33c   :  { %6402 = vmatprep.subr.bf16.mxu0 %v8677_v12  ;;  %v8714_v11 = vld [vmem:[#allocation8 + $0x320] ss:$48 sps:$4 sm:$0xff]   ;;  %v8717_v12 = vld [vmem:[#allocation8 + $0x328] ss:$48 sps:$4 sm:$0xff]  }
 0x33d   :  { %6280 = vmatpush1.bf16.msra.mxu1 %v8672_v63  ;;  %v8722_v63 = vld [vmem:[#allocation8 + $0x384] ss:$48 sps:$4 sm:$0xff]  }
 0x33e   :  { %6403 = vmatpush1.bf16.msra.mxu0 %v8675_v14  ;;  %6281 = vmatprep.subr.bf16.mxu1 %v8680_v0  ;;  %v8725_v14 = vld [vmem:[#allocation8 + $0x38c] ss:$48 sps:$4 sm:$0xff]   ;;  %v8720_v0 = vld [vmem:[#allocation8 + $0x380] ss:$48 sps:$4 sm:$0xff]  }
 0x33f   :  { %6404 = vmatprep.subr.bf16.mxu0 %v8683_v17 }
 0x341   :  { %6282 = vmatpush1.bf16.msra.mxu1 %v8678_v20  ;;  %v8723_v20 = vld [vmem:[#allocation8 + $0x388] ss:$48 sps:$4 sm:$0xff]  }
 0x342   :  { %6405 = vmatpush1.bf16.msra.mxu0 %v8681_v21  ;;  %6283 = vmatprep.subr.bf16.mxu1 %v8686_v23  ;;  %v8728_v21 = vld [vmem:[#allocation8 + $0x3e4] ss:$48 sps:$4 sm:$0xff]  }
 0x343   :  { %6406 = vmatprep.subr.bf16.mxu0 %v8689_v24 }
 0x345   :  { %6284 = vmatpush1.bf16.msra.mxu1 %v8684_v25  ;;  %v8731_v25 = vld [vmem:[#allocation8 + $0x3ec] ss:$48 sps:$4 sm:$0xff]  }
 0x346   :  { %6407 = vmatpush1.bf16.msra.mxu0 %v8687_v26  ;;  %6285 = vmatprep.subr.bf16.mxu1 %v8692_v28 }
 0x347   :  { %6408 = vmatprep.subr.bf16.mxu0 %v8695_v29 }
 0x349   :  { %6286 = vmatpush1.bf16.msra.mxu1 %v8690_v13 }
 0x34a   :  { %6409 = vmatpush1.bf16.msra.mxu0 %v8693_v31  ;;  %6287 = vmatprep.subr.bf16.mxu1 %v8698_v32  ;;  %v8726_v31 = vld [vmem:[#allocation8 + $0x3e0] ss:$48 sps:$4 sm:$0xff]  }
 0x34b   :  { %v5901_v44 = vpop.f32.mrb[8].mxu1  ;;  %v6024_v45 = vpop.f32.mrb[8].mxu0  ;;  %6410 = vmatprep.subr.bf16.mxu0 %v8701_v33  ;;  %v8729_v33 = vld [vmem:[#allocation8 + $0x3e8] ss:$48 sps:$4 sm:$0xff]  }
 0x34c   :  { %v7566_v16 = vadd.f32 %v5901_v44, %v2848_v34  ;;  %v7568_v46 = vadd.f32 %v6024_v45, %v2856_v35  ;;  %v5903_v47 = vpop.f32.mrb[9].mxu1  ;;  %v6026_v48 = vpop.f32.mrb[9].mxu0  ;;  %v8734_v34 = vld [vmem:[#allocation8 + $0x444] ss:$48 sps:$4 sm:$0xff]   ;;  %v8737_v35 = vld [vmem:[#allocation8 + $0x44c] ss:$48 sps:$4 sm:$0xff]  }
 0x34d   :  { %v7567_v18 = vadd.f32 %v5903_v47, %v2852_v37  ;;  %v7569_v53 = vadd.f32 %v6026_v48, %v2860_v38  ;;  %6288 = vmatpush1.bf16.msra.mxu1 %v8696_v36  ;;  %v5905_v57 = vpop.f32.mrb[10].mxu1  ;;  %v6028_v58 = vpop.f32.mrb[10].mxu0  ;;  %v8732_v36 = vld [vmem:[#allocation8 + $0x440] ss:$48 sps:$4 sm:$0xff]   ;;  %v8735_v37 = vld [vmem:[#allocation8 + $0x448] ss:$48 sps:$4 sm:$0xff]  }
 0x34e   :  { %v7546_v60 = vmul.f32 -1.442695, %v7566_v16  ;;  %v7548_v61 = vmul.f32 -1.442695, %v7568_v46  ;;  %6411 = vmatpush1.bf16.msra.mxu0 %v8699_v39  ;;  %v5906_v1 = vpop.f32.mrb[11].mxu1  ;;  %v6029_v2 = vpop.f32.mrb[11].mxu0  ;;  %6289 = vmatprep.subr.bf16.mxu1 %v8704_v40 }
 0x34f   :  { %v7547_v4 = vmul.f32 -1.442695, %v7567_v18  ;;  %v7549_v5 = vmul.f32 -1.442695, %v7569_v53  ;;  %6412 = vmatprep.subr.bf16.mxu0 %v8707_v62  ;;  %v8740_v38 = vld [vmem:[#allocation8 + $0x4a4] ss:$48 sps:$4 sm:$0xff]  }
 0x350   :  { %8954 = vpow2.f32 %v7546_v60  ;;  %v8743_v39 = vld [vmem:[#allocation8 + $0x4ac] ss:$48 sps:$4 sm:$0xff]   ;;  %v8738_v40 = vld [vmem:[#allocation8 + $0x4a0] ss:$48 sps:$4 sm:$0xff]   ;;  %v8741_v44 = vld [vmem:[#allocation8 + $0x4a8] ss:$48 sps:$4 sm:$0xff]  }
 0x351   :  { %8956 = vpow2.f32 %v7548_v61  ;;  %6290 = vmatpush1.bf16.msra.mxu1 %v8702_v51  ;;  %v8746_v45 = vld [vmem:[#allocation8 + $0x504] ss:$48 sps:$4 sm:$0xff]   ;;  %v8749_v16 = vld [vmem:[#allocation8 + $0x50c] ss:$48 sps:$4 sm:$0xff]   ;;  %v8744_v48 = vld [vmem:[#allocation8 + $0x500] ss:$48 sps:$4 sm:$0xff]  }
 0x352   :  { %8958 = vpow2.f32 %v7547_v4  ;;  %6413 = vmatpush1.bf16.msra.mxu0 %v8705_v54  ;;  %6291 = vmatprep.subr.bf16.mxu1 %v8710_v59  ;;  %v8747_v18 = vld [vmem:[#allocation8 + $0x508] ss:$48 sps:$4 sm:$0xff]   ;;  %v8752_v53 = vld [vmem:[#allocation8 + $0x564] ss:$48 sps:$4 sm:$0xff]   ;;  %v8755_v58 = vld [vmem:[#allocation8 + $0x56c] ss:$48 sps:$4 sm:$0xff]  }
 0x353   :  { %8960 = vpow2.f32 %v7549_v5  ;;  %6414 = vmatprep.subr.bf16.mxu0 %v8713_v6  ;;  %v8750_v60 = vld [vmem:[#allocation8 + $0x560] ss:$48 sps:$4 sm:$0xff]   ;;  %v8753_v1 = vld [vmem:[#allocation8 + $0x568] ss:$48 sps:$4 sm:$0xff]   ;;  %v8758_v2 = vld [vmem:[#allocation8 + $0x5c4] ss:$48 sps:$4 sm:$0xff]  }
 0x354   :  { %v8761_v4 = vld [vmem:[#allocation8 + $0x5cc] ss:$48 sps:$4 sm:$0xff]   ;;  %v8756_v6 = vld [vmem:[#allocation8 + $0x5c0] ss:$48 sps:$4 sm:$0xff]  }
 0x355   :  { %6292 = vmatpush1.bf16.msra.mxu1 %v8708_v7  ;;  %v8759_v7 = vld [vmem:[#allocation8 + $0x5c8] ss:$48 sps:$4 sm:$0xff]  }
 0x356   :  { %6415 = vmatpush1.bf16.msra.mxu0 %v8711_v8  ;;  %6293 = vmatprep.subr.bf16.mxu1 %v8716_v9  ;;  %v8764_v8 = vld [vmem:[#allocation8 + $0x624] ss:$48 sps:$4 sm:$0xff]   ;;  %v8767_v9 = vld [vmem:[#allocation8 + $0x62c] ss:$48 sps:$4 sm:$0xff]  }
 0x357   :  { %6416 = vmatprep.subr.bf16.mxu0 %v8719_v10  ;;  %v8762_v10 = vld [vmem:[#allocation8 + $0x620] ss:$48 sps:$4 sm:$0xff]  }
 0x359   :  { %6294 = vmatpush1.bf16.msra.mxu1 %v8714_v11  ;;  %v8765_v11 = vld [vmem:[#allocation8 + $0x628] ss:$48 sps:$4 sm:$0xff]  }
 0x35a   :  { %v8955_v17 = vpop.eup %8954  ;;  %6417 = vmatpush1.bf16.msra.mxu0 %v8717_v12  ;;  %6295 = vmatprep.subr.bf16.mxu1 %v8722_v63  ;;  %v8770_v12 = vld [vmem:[#allocation8 + $0x684] ss:$48 sps:$4 sm:$0xff]   ;;  %v8773_v63 = vld [vmem:[#allocation8 + $0x68c] ss:$48 sps:$4 sm:$0xff]  }
 0x35b   :  { %v8957_v23 = vpop.eup %8956  ;;  %v6559_v24 = vadd.f32 1.0, %v8955_v17  ;;  %6418 = vmatprep.subr.bf16.mxu0 %v8725_v14  ;;  %v8768_v14 = vld [vmem:[#allocation8 + $0x680] ss:$48 sps:$4 sm:$0xff]   ;;  %v8776_v17 = vld [vmem:[#allocation8 + $0x6e4] ss:$48 sps:$4 sm:$0xff]  }
 0x35c   :  { %v8959_v26 = vpop.eup %8958  ;;  %v6561_v28 = vadd.f32 1.0, %v8957_v23  ;;  %v8777_v23 = vld [vmem:[#allocation8 + $0x6e8] ss:$48 sps:$4 sm:$0xff]  }
 0x35d   :  { %v8961_v29 = vpop.eup %8960  ;;  %8962 = vrcp.f32 %v6559_v24  ;;  %v6560_v13 = vadd.f32 1.0, %v8959_v26  ;;  %6296 = vmatpush1.bf16.msra.mxu1 %v8720_v0  ;;  %v8771_v0 = vld [vmem:[#allocation8 + $0x688] ss:$48 sps:$4 sm:$0xff]   ;;  %v8782_v24 = vld [vmem:[#allocation8 + $0x744] ss:$48 sps:$4 sm:$0xff]  }
 0x35e   :  { %8964 = vrcp.f32 %v6561_v28  ;;  %v6562_v32 = vadd.f32 1.0, %v8961_v29  ;;  %6419 = vmatpush1.bf16.msra.mxu0 %v8723_v20  ;;  %6297 = vmatprep.subr.bf16.mxu1 %v8728_v21  ;;  %v8779_v20 = vld [vmem:[#allocation8 + $0x6ec] ss:$48 sps:$4 sm:$0xff]   ;;  %v8774_v21 = vld [vmem:[#allocation8 + $0x6e0] ss:$48 sps:$4 sm:$0xff]  }
 0x35f   :  { %8966 = vrcp.f32 %v6560_v13  ;;  %6420 = vmatprep.subr.bf16.mxu0 %v8731_v25  ;;  %v8780_v25 = vld [vmem:[#allocation8 + $0x740] ss:$48 sps:$4 sm:$0xff]   ;;  %v8783_v26 = vld [vmem:[#allocation8 + $0x748] ss:$48 sps:$4 sm:$0xff]   ;;  %v8788_v28 = vld [vmem:[#allocation8 + $0x7a4] ss:$48 sps:$4 sm:$0xff]  }
 0x360   :  { %8968 = vrcp.f32 %v6562_v32  ;;  %v8791_v29 = vld [vmem:[#allocation8 + $0x7ac] ss:$48 sps:$4 sm:$0xff]   ;;  %v8789_v13 = vld [vmem:[#allocation8 + $0x7a8] ss:$48 sps:$4 sm:$0xff]  }
 0x361   :  { %6298 = vmatpush1.bf16.msra.mxu1 %v8726_v31  ;;  %v8794_v31 = vld [vmem:[#allocation8 + $0x804] ss:$48 sps:$4 sm:$0xff]   ;;  %v8797_v32 = vld [vmem:[#allocation8 + $0x80c] ss:$48 sps:$4 sm:$0xff]  }
 0x362   :  { %6421 = vmatpush1.bf16.msra.mxu0 %v8729_v33  ;;  %6299 = vmatprep.subr.bf16.mxu1 %v8734_v34  ;;  %v8792_v33 = vld [vmem:[#allocation8 + $0x800] ss:$48 sps:$4 sm:$0xff]   ;;  %v8795_v34 = vld [vmem:[#allocation8 + $0x808] ss:$48 sps:$4 sm:$0xff]  }
 0x363   :  { %6422 = vmatprep.subr.bf16.mxu0 %v8737_v35  ;;  %v8800_v35 = vld [vmem:[#allocation8 + $0x864] ss:$48 sps:$4 sm:$0xff]  }
 0x365   :  { %6300 = vmatpush1.bf16.msra.mxu1 %v8732_v36  ;;  %v8803_v36 = vld [vmem:[#allocation8 + $0x86c] ss:$48 sps:$4 sm:$0xff]  }
 0x366   :  { %6423 = vmatpush1.bf16.msra.mxu0 %v8735_v37  ;;  %6301 = vmatprep.subr.bf16.mxu1 %v8740_v38  ;;  %v8798_v37 = vld [vmem:[#allocation8 + $0x860] ss:$48 sps:$4 sm:$0xff]   ;;  %v8801_v38 = vld [vmem:[#allocation8 + $0x868] ss:$48 sps:$4 sm:$0xff]  }
 0x367   :  { %v8963_v62 = vpop.eup %8962  ;;  %6424 = vmatprep.subr.bf16.mxu0 %v8743_v39  ;;  %v8806_v39 = vld [vmem:[#allocation8 + $0x8c4] ss:$48 sps:$4 sm:$0xff]  }
 0x368   :  { %v8965_v46 = vpop.eup %8964 }
 0x369   :  { %v8967_v47 = vpop.eup %8966  ;;  %6302 = vmatpush1.bf16.msra.mxu1 %v8738_v40  ;;  %v8809_v40 = vld [vmem:[#allocation8 + $0x8cc] ss:$48 sps:$4 sm:$0xff]  }
 0x36a   :  { %v8969_v51 = vpop.eup %8968  ;;  %6425 = vmatpush1.bf16.msra.mxu0 %v8741_v44  ;;  %6303 = vmatprep.subr.bf16.mxu1 %v8746_v45  ;;  %v6607_v57 = vcombine.low %v8963_v62, %v8967_v47  ;;  %v8804_v44 = vld [vmem:[#allocation8 + $0x8c0] ss:$48 sps:$4 sm:$0xff]   ;;  %v8807_v45 = vld [vmem:[#allocation8 + $0x8c8] ss:$48 sps:$4 sm:$0xff]   ;;  %v8812_v62 = vld [vmem:[#allocation8 + $0x924] ss:$48 sps:$4 sm:$0xff]  }
 0x36b   :  { %6426 = vmatprep.subr.bf16.mxu0 %v8749_v16  ;;  %v6608_v54 = vcombine.low %v8965_v46, %v8969_v51  ;;  %v8815_v16 = vld [vmem:[#allocation8 + $0x92c] ss:$48 sps:$4 sm:$0xff]   ;;  %v8810_v46 = vld [vmem:[#allocation8 + $0x920] ss:$48 sps:$4 sm:$0xff]   ;;  %v8813_v47 = vld [vmem:[#allocation8 + $0x928] ss:$48 sps:$4 sm:$0xff]  }
 0x36c   :  { %v6615_v59 = vrot.slane %v6607_v57, %v9247_v49  ;;  %v8821_v51 = vld [vmem:[#allocation8 + $0x98c] ss:$48 sps:$4 sm:$0xff]   ;;  %v8824_v57 = vld [vmem:[#allocation8 + $0x9e4] ss:$48 sps:$4 sm:$0xff]  }
 0x36d   :  { %6304 = vmatpush1.bf16.msra.mxu1 %v8744_v48  ;;  %v6622_v61 = vrot.slane %v6608_v54, %v9247_v49  ;;  %v8818_v48 = vld [vmem:[#allocation8 + $0x984] ss:$48 sps:$4 sm:$0xff]   ;;  %v8822_v54 = vld [vmem:[#allocation8 + $0x9e0] ss:$48 sps:$4 sm:$0xff]  }
 0x36e   :  { %6427 = vmatpush1.bf16.msra.mxu0 %v8747_v18  ;;  %6305 = vmatprep.subr.bf16.mxu1 %v8752_v53  ;;  %v8816_v18 = vld [vmem:[#allocation8 + $0x980] ss:$48 sps:$4 sm:$0xff]   ;;  %v8819_v53 = vld [vmem:[#allocation8 + $0x988] ss:$48 sps:$4 sm:$0xff]  }
 0x36f   :  { %6428 = vmatprep.subr.bf16.mxu0 %v8755_v58  ;;  %v6623_v5 = vcombine.low %v6615_v59, %v6622_v61  ;;  %v8827_v58 = vld [vmem:[#allocation8 + $0x9ec] ss:$48 sps:$4 sm:$0xff]   ;;  %v8825_v59 = vld [vmem:[#allocation8 + $0x9e8] ss:$48 sps:$4 sm:$0xff]  }
 0x370   :  { %v8833_v61 = vld [vmem:[#allocation8 + $0xa4c] ss:$48 sps:$4 sm:$0xff]  }
 0x371   :  { %6306 = vmatpush1.bf16.msra.mxu1 %v8750_v60  ;;  %6661 = vst [vmem:[#allocation11] sm:$0xff] %v6623_v5  ;;  %v8830_v60 = vld [vmem:[#allocation8 + $0xa44] ss:$48 sps:$4 sm:$0xff]   ;;  %v8839_v5 = vld [vmem:[#allocation8 + $0xaac] ss:$48 sps:$4 sm:$0xff]  }
 0x372   :  { %6429 = vmatpush1.bf16.msra.mxu0 %v8753_v1  ;;  %6307 = vmatprep.subr.bf16.mxu1 %v8758_v2  ;;  %v8828_v1 = vld [vmem:[#allocation8 + $0xa40] ss:$48 sps:$4 sm:$0xff]   ;;  %v8831_v2 = vld [vmem:[#allocation8 + $0xa48] ss:$48 sps:$4 sm:$0xff]  }
 0x373   :  { %6430 = vmatprep.subr.bf16.mxu0 %v8761_v4  ;;  %v8836_v4 = vld [vmem:[#allocation8 + $0xaa4] ss:$48 sps:$4 sm:$0xff]  }
 0x375   :  { %6308 = vmatpush1.bf16.msra.mxu1 %v8756_v6  ;;  %v8834_v6 = vld [vmem:[#allocation8 + $0xaa0] ss:$48 sps:$4 sm:$0xff]  }
 0x376   :  { %6431 = vmatpush1.bf16.msra.mxu0 %v8759_v7  ;;  %6318 = vmatprep.subr.bf16.mxu1 %v8764_v8  ;;  %v8837_v7 = vld [vmem:[#allocation8 + $0xaa8] ss:$48 sps:$4 sm:$0xff]   ;;  %v8842_v8 = vld [vmem:[#allocation8 + $0xb04] ss:$48 sps:$4 sm:$0xff]  }
 0x377   :  { %6441 = vmatprep.subr.bf16.mxu0 %v8767_v9  ;;  %v8845_v9 = vld [vmem:[#allocation8 + $0xb0c] ss:$48 sps:$4 sm:$0xff]  }
 0x378   :  { %6310 = vmatmul.mubr.bf16.vlgmr.msra.gmra.mrb[16].mxu1 %v9307_v15 }
 0x379   :  { %6433 = vmatmul.mubr.bf16.vlgmr.msra.gmra.mrb[16].mxu0 %v9307_v15  ;;  %6319 = vmatpush1.bf16.msra.mxu1 %v8762_v10  ;;  %v8785_v15 = vld [vmem:[#allocation8 + $0x74c] ss:$48 sps:$4 sm:$0xff]   ;;  %v8840_v10 = vld [vmem:[#allocation8 + $0xb00] ss:$48 sps:$4 sm:$0xff]  }
 0x37a   :  { %6350 = vmatprep.mubr.bf16.mxu1 %v9323_v3  ;;  %6442 = vmatpush1.bf16.msra.mxu0 %v8765_v11  ;;  %v8843_v11 = vld [vmem:[#allocation8 + $0xb08] ss:$48 sps:$4 sm:$0xff]  }
 0x37b   :  { %6473 = vmatprep.mubr.bf16.mxu0 %v9323_v3  ;;  %6320 = vmatprep.subr.bf16.mxu1 %v8770_v12  ;;  %v8786_v3 = vld [vmem:[#allocation8 + $0x7a0] ss:$48 sps:$4 sm:$0xff]   ;;  %v8848_v12 = vld [vmem:[#allocation8 + $0xb64] ss:$48 sps:$4 sm:$0xff]  }
 0x37c   :  { %6443 = vmatprep.subr.bf16.mxu0 %v8773_v63  ;;  %v8851_v63 = vld [vmem:[#allocation8 + $0xb6c] ss:$48 sps:$4 sm:$0xff]  }
 0x37d   :  { %6321 = vmatpush1.bf16.msra.mxu1 %v8768_v14  ;;  %v8846_v14 = vld [vmem:[#allocation8 + $0xb60] ss:$48 sps:$4 sm:$0xff]  }
 0x37e   :  { %6444 = vmatpush1.bf16.msra.mxu0 %v8771_v0  ;;  %6322 = vmatprep.subr.bf16.mxu1 %v8776_v17  ;;  %v8849_v0 = vld [vmem:[#allocation8 + $0xb68] ss:$48 sps:$4 sm:$0xff]   ;;  %v8854_v17 = vld [vmem:[#allocation8 + $0xbc4] ss:$48 sps:$4 sm:$0xff]  }
 0x37f   :  { %6445 = vmatprep.subr.bf16.mxu0 %v8779_v20  ;;  %v8857_v20 = vld [vmem:[#allocation8 + $0xbcc] ss:$48 sps:$4 sm:$0xff]  }
 0x381   :  { %6323 = vmatpush1.bf16.msra.mxu1 %v8774_v21  ;;  %v8852_v21 = vld [vmem:[#allocation8 + $0xbc0] ss:$48 sps:$4 sm:$0xff]  }
 0x382   :  { %6446 = vmatpush1.bf16.msra.mxu0 %v8777_v23  ;;  %6324 = vmatprep.subr.bf16.mxu1 %v8782_v24  ;;  %v8855_v23 = vld [vmem:[#allocation8 + $0xbc8] ss:$48 sps:$4 sm:$0xff]   ;;  %v8860_v24 = vld [vmem:[#allocation8 + $0xc24] ss:$48 sps:$4 sm:$0xff]  }
 0x383   :  { %6447 = vmatprep.subr.bf16.mxu0 %v8785_v15  ;;  %v8863_v15 = vld [vmem:[#allocation8 + $0xc2c] ss:$48 sps:$4 sm:$0xff]  }
 0x385   :  { %6325 = vmatpush1.bf16.msra.mxu1 %v8780_v25  ;;  %v8858_v25 = vld [vmem:[#allocation8 + $0xc20] ss:$48 sps:$4 sm:$0xff]  }
 0x386   :  { %6448 = vmatpush1.bf16.msra.mxu0 %v8783_v26  ;;  %6326 = vmatprep.subr.bf16.mxu1 %v8788_v28  ;;  %v8861_v26 = vld [vmem:[#allocation8 + $0xc28] ss:$48 sps:$4 sm:$0xff]   ;;  %v8866_v28 = vld [vmem:[#allocation8 + $0xc84] ss:$48 sps:$4 sm:$0xff]  }
 0x387   :  { %6449 = vmatprep.subr.bf16.mxu0 %v8791_v29  ;;  %v8869_v29 = vld [vmem:[#allocation8 + $0xc8c] ss:$48 sps:$4 sm:$0xff]  }
 0x389   :  { %6327 = vmatpush1.bf16.msra.mxu1 %v8786_v3  ;;  %v8864_v3 = vld [vmem:[#allocation8 + $0xc80] ss:$48 sps:$4 sm:$0xff]  }
 0x38a   :  { %6450 = vmatpush1.bf16.msra.mxu0 %v8789_v13  ;;  %6328 = vmatprep.subr.bf16.mxu1 %v8794_v31  ;;  %v8867_v13 = vld [vmem:[#allocation8 + $0xc88] ss:$48 sps:$4 sm:$0xff]   ;;  %v8872_v31 = vld [vmem:[#allocation8 + $0xce4] ss:$48 sps:$4 sm:$0xff]  }
 0x38b   :  { %6451 = vmatprep.subr.bf16.mxu0 %v8797_v32  ;;  %v8875_v32 = vld [vmem:[#allocation8 + $0xcec] ss:$48 sps:$4 sm:$0xff]  }
 0x38d   :  { %6329 = vmatpush1.bf16.msra.mxu1 %v8792_v33  ;;  %v8870_v33 = vld [vmem:[#allocation8 + $0xce0] ss:$48 sps:$4 sm:$0xff]  }
 0x38e   :  { %6452 = vmatpush1.bf16.msra.mxu0 %v8795_v34  ;;  %6330 = vmatprep.subr.bf16.mxu1 %v8800_v35  ;;  %v8873_v34 = vld [vmem:[#allocation8 + $0xce8] ss:$48 sps:$4 sm:$0xff]   ;;  %v8878_v35 = vld [vmem:[#allocation8 + $0xd44] ss:$48 sps:$4 sm:$0xff]  }
 0x38f   :  { %6453 = vmatprep.subr.bf16.mxu0 %v8803_v36  ;;  %v8876_v36 = vld [vmem:[#allocation8 + $0xd40] ss:$48 sps:$4 sm:$0xff]  }
 0x391   :  { %6331 = vmatpush1.bf16.msra.mxu1 %v8798_v37  ;;  %v8879_v37 = vld [vmem:[#allocation8 + $0xd48] ss:$48 sps:$4 sm:$0xff]  }
 0x392   :  { %6454 = vmatpush1.bf16.msra.mxu0 %v8801_v38  ;;  %6332 = vmatprep.subr.bf16.mxu1 %v8806_v39  ;;  %v8884_v38 = vld [vmem:[#allocation8 + $0xda4] ss:$48 sps:$4 sm:$0xff]   ;;  %v8887_v39 = vld [vmem:[#allocation8 + $0xdac] ss:$48 sps:$4 sm:$0xff]  }
 0x393   :  { %6455 = vmatprep.subr.bf16.mxu0 %v8809_v40  ;;  %v8885_v40 = vld [vmem:[#allocation8 + $0xda8] ss:$48 sps:$4 sm:$0xff]  }
 0x395   :  { %6333 = vmatpush1.bf16.msra.mxu1 %v8804_v44  ;;  %v8890_v44 = vld [vmem:[#allocation8 + $0xe04] ss:$48 sps:$4 sm:$0xff]  }
 0x396   :  { %6456 = vmatpush1.bf16.msra.mxu0 %v8807_v45  ;;  %6334 = vmatprep.subr.bf16.mxu1 %v8812_v62  ;;  %v8893_v45 = vld [vmem:[#allocation8 + $0xe0c] ss:$48 sps:$4 sm:$0xff]   ;;  %v8888_v62 = vld [vmem:[#allocation8 + $0xe00] ss:$48 sps:$4 sm:$0xff]  }
 0x397   :  { %6457 = vmatprep.subr.bf16.mxu0 %v8815_v16  ;;  %v8891_v16 = vld [vmem:[#allocation8 + $0xe08] ss:$48 sps:$4 sm:$0xff]  }
 0x399   :  { %6335 = vmatpush1.bf16.msra.mxu1 %v8810_v46  ;;  %v8896_v46 = vld [vmem:[#allocation8 + $0xe64] ss:$48 sps:$4 sm:$0xff]  }
 0x39a   :  { %6458 = vmatpush1.bf16.msra.mxu0 %v8813_v47  ;;  %6336 = vmatprep.subr.bf16.mxu1 %v8818_v48  ;;  %v8899_v47 = vld [vmem:[#allocation8 + $0xe6c] ss:$48 sps:$4 sm:$0xff]   ;;  %v8894_v48 = vld [vmem:[#allocation8 + $0xe60] ss:$48 sps:$4 sm:$0xff]  }
 0x39b   :  { %6459 = vmatprep.subr.bf16.mxu0 %v8821_v51  ;;  %v8897_v51 = vld [vmem:[#allocation8 + $0xe68] ss:$48 sps:$4 sm:$0xff]  }
 0x39d   :  { %6337 = vmatpush1.bf16.msra.mxu1 %v8816_v18  ;;  %v8902_v18 = vld [vmem:[#allocation8 + $0xec4] ss:$48 sps:$4 sm:$0xff]  }
 0x39e   :  { %6460 = vmatpush1.bf16.msra.mxu0 %v8819_v53  ;;  %6338 = vmatprep.subr.bf16.mxu1 %v8824_v57  ;;  %v8905_v53 = vld [vmem:[#allocation8 + $0xecc] ss:$48 sps:$4 sm:$0xff]   ;;  %v8900_v57 = vld [vmem:[#allocation8 + $0xec0] ss:$48 sps:$4 sm:$0xff]  }
 0x39f   :  { %6461 = vmatprep.subr.bf16.mxu0 %v8827_v58  ;;  %v8903_v58 = vld [vmem:[#allocation8 + $0xec8] ss:$48 sps:$4 sm:$0xff]  }
 0x3a1   :  { %6339 = vmatpush1.bf16.msra.mxu1 %v8822_v54  ;;  %v8908_v54 = vld [vmem:[#allocation8 + $0xf24] ss:$48 sps:$4 sm:$0xff]  }
 0x3a2   :  { %6462 = vmatpush1.bf16.msra.mxu0 %v8825_v59  ;;  %6340 = vmatprep.subr.bf16.mxu1 %v8830_v60  ;;  %v8911_v59 = vld [vmem:[#allocation8 + $0xf2c] ss:$48 sps:$4 sm:$0xff]   ;;  %v8906_v60 = vld [vmem:[#allocation8 + $0xf20] ss:$48 sps:$4 sm:$0xff]  }
 0x3a3   :  { %6463 = vmatprep.subr.bf16.mxu0 %v8833_v61  ;;  %v8909_v61 = vld [vmem:[#allocation8 + $0xf28] ss:$48 sps:$4 sm:$0xff]  }
 0x3a5   :  { %6341 = vmatpush1.bf16.msra.mxu1 %v8828_v1  ;;  %v8914_v1 = vld [vmem:[#allocation8 + $0xf84] ss:$48 sps:$4 sm:$0xff]  }
 0x3a6   :  { %6464 = vmatpush1.bf16.msra.mxu0 %v8831_v2  ;;  %6342 = vmatprep.subr.bf16.mxu1 %v8836_v4  ;;  %v8917_v2 = vld [vmem:[#allocation8 + $0xf8c] ss:$48 sps:$4 sm:$0xff]   ;;  %v8912_v4 = vld [vmem:[#allocation8 + $0xf80] ss:$48 sps:$4 sm:$0xff]  }
 0x3a7   :  { %6465 = vmatprep.subr.bf16.mxu0 %v8839_v5  ;;  %v8915_v5 = vld [vmem:[#allocation8 + $0xf88] ss:$48 sps:$4 sm:$0xff]  }
 0x3a9   :  { %6343 = vmatpush1.bf16.msra.mxu1 %v8834_v6  ;;  %v8920_v6 = vld [vmem:[#allocation8 + $0xfe4] ss:$48 sps:$4 sm:$0xff]  }
 0x3aa   :  { %6466 = vmatpush1.bf16.msra.mxu0 %v8837_v7  ;;  %6344 = vmatprep.subr.bf16.mxu1 %v8842_v8  ;;  %v8923_v7 = vld [vmem:[#allocation8 + $0xfec] ss:$48 sps:$4 sm:$0xff]   ;;  %v8918_v8 = vld [vmem:[#allocation8 + $0xfe0] ss:$48 sps:$4 sm:$0xff]  }
 0x3ab   :  { %6467 = vmatprep.subr.bf16.mxu0 %v8845_v9  ;;  %v8921_v9 = vld [vmem:[#allocation8 + $0xfe8] ss:$48 sps:$4 sm:$0xff]  }
 0x3ad   :  { %6345 = vmatpush1.bf16.msra.mxu1 %v8840_v10  ;;  %v8926_v10 = vld [vmem:[#allocation8 + $0x1044] ss:$48 sps:$4 sm:$0xff]  }
 0x3ae   :  { %6468 = vmatpush1.bf16.msra.mxu0 %v8843_v11  ;;  %6346 = vmatprep.subr.bf16.mxu1 %v8848_v12  ;;  %v8929_v11 = vld [vmem:[#allocation8 + $0x104c] ss:$48 sps:$4 sm:$0xff]   ;;  %v8924_v12 = vld [vmem:[#allocation8 + $0x1040] ss:$48 sps:$4 sm:$0xff]  }
 0x3af   :  { %6469 = vmatprep.subr.bf16.mxu0 %v8851_v63  ;;  %v8927_v63 = vld [vmem:[#allocation8 + $0x1048] ss:$48 sps:$4 sm:$0xff]  }
 0x3b1   :  { %6347 = vmatpush1.bf16.msra.mxu1 %v8846_v14  ;;  %v8932_v14 = vld [vmem:[#allocation8 + $0x10a4] ss:$48 sps:$4 sm:$0xff]  }
 0x3b2   :  { %6470 = vmatpush1.bf16.msra.mxu0 %v8849_v0  ;;  %6348 = vmatprep.subr.bf16.mxu1 %v8854_v17  ;;  %v8935_v0 = vld [vmem:[#allocation8 + $0x10ac] ss:$48 sps:$4 sm:$0xff]   ;;  %v8930_v17 = vld [vmem:[#allocation8 + $0x10a0] ss:$48 sps:$4 sm:$0xff]  }
 0x3b3   :  { %6471 = vmatprep.subr.bf16.mxu0 %v8857_v20  ;;  %v8933_v20 = vld [vmem:[#allocation8 + $0x10a8] ss:$48 sps:$4 sm:$0xff]  }
 0x3b5   :  { %6349 = vmatpush1.bf16.msra.mxu1 %v8852_v21  ;;  %v8938_v21 = vld [vmem:[#allocation8 + $0x1104] ss:$48 sps:$4 sm:$0xff]  }
 0x3b6   :  { %6472 = vmatpush1.bf16.msra.mxu0 %v8855_v23  ;;  %6359 = vmatprep.subr.bf16.mxu1 %v8860_v24  ;;  %v8941_v23 = vld [vmem:[#allocation8 + $0x110c] ss:$48 sps:$4 sm:$0xff]   ;;  %v8936_v24 = vld [vmem:[#allocation8 + $0x1100] ss:$48 sps:$4 sm:$0xff]  }
 0x3b7   :  { %6482 = vmatprep.subr.bf16.mxu0 %v8863_v15  ;;  %v8939_v15 = vld [vmem:[#allocation8 + $0x1108] ss:$48 sps:$4 sm:$0xff]  }
 0x3b8   :  { %6351 = vmatmul.mubr.bf16.vlgmr.msra.gmra.mrb[16].mxu1 %v9325_v50 }
 0x3b9   :  { %6474 = vmatmul.mubr.bf16.vlgmr.msra.gmra.mrb[16].mxu0 %v9325_v50  ;;  %6360 = vmatpush1.bf16.msra.mxu1 %v8858_v25  ;;  %v8881_v50 = vld [vmem:[#allocation8 + $0xd4c] ss:$48 sps:$4 sm:$0xff]   ;;  %v8944_v25 = vld [vmem:[#allocation8 + $0x1164] ss:$48 sps:$4 sm:$0xff]  }
 0x3ba   :  { %6391 = vmatprep.mubr.bf16.mxu1 %v9337_v19  ;;  %6483 = vmatpush1.bf16.msra.mxu0 %v8861_v26  ;;  %v8947_v26 = vld [vmem:[#allocation8 + $0x116c] ss:$48 sps:$4 sm:$0xff]  }
 0x3bb   :  { %6514 = vmatprep.mubr.bf16.mxu0 %v9337_v19  ;;  %6361 = vmatprep.subr.bf16.mxu1 %v8866_v28  ;;  %v8882_v19 = vld [vmem:[#allocation8 + $0xda0] ss:$48 sps:$4 sm:$0xff]  }
 0x3bc   :  { %6484 = vmatprep.subr.bf16.mxu0 %v8869_v29  ;;  %v8942_v28 = vld [vmem:[#allocation8 + $0x1160] ss:$48 sps:$4 sm:$0xff]   ;;  %v8945_v29 = vld [vmem:[#allocation8 + $0x1168] ss:$48 sps:$4 sm:$0xff]  }
 0x3bd   :  { %6362 = vmatpush1.bf16.msra.mxu1 %v8864_v3  ;;  %v8950_v3 = vld [vmem:[#allocation8 + $0x11c4] ss:$48 sps:$4 sm:$0xff]  }
 0x3be   :  { %6485 = vmatpush1.bf16.msra.mxu0 %v8867_v13  ;;  %6363 = vmatprep.subr.bf16.mxu1 %v8872_v31  ;;  %v8953_v13 = vld [vmem:[#allocation8 + $0x11cc] ss:$48 sps:$4 sm:$0xff]   ;;  %v8948_v31 = vld [vmem:[#allocation8 + $0x11c0] ss:$48 sps:$4 sm:$0xff]  }
 0x3bf   :  { %6486 = vmatprep.subr.bf16.mxu0 %v8875_v32  ;;  %v8951_v32 = vld [vmem:[#allocation8 + $0x11c8] ss:$48 sps:$4 sm:$0xff]  }
 0x3c1   :  { %6364 = vmatpush1.bf16.msra.mxu1 %v8870_v33  ;;  %v2871_v33 = vsub.s32 6, %v9244_v43 }
 0x3c2   :  { %6487 = vmatpush1.bf16.msra.mxu0 %v8873_v34  ;;  %6365 = vmatprep.subr.bf16.mxu1 %v8878_v35  ;;  %v2875_v34 = vsub.s32 7, %v9244_v43  ;;  %v2864_v35 = vrot.slane %v9359_v30, %v432_v52 }
 0x3c3   :  { %6488 = vmatprep.subr.bf16.mxu0 %v8881_v50  ;;  %v2872_v50 = vrot.slane %v9359_v30, %v2871_v33 }
 0x3c5   :  { %6366 = vmatpush1.bf16.msra.mxu1 %v8876_v36  ;;  %v2868_v36 = vrot.slane %v9359_v30, %v436_v27 }
 0x3c6   :  { %6489 = vmatpush1.bf16.msra.mxu0 %v8879_v37  ;;  %6367 = vmatprep.subr.bf16.mxu1 %v8884_v38  ;;  %v2876_v37 = vrot.slane %v9359_v30, %v2875_v34 }
 0x3c7   :  { %6490 = vmatprep.subr.bf16.mxu0 %v8887_v39 }
 0x3c9   :  { %6368 = vmatpush1.bf16.msra.mxu1 %v8882_v19 }
 0x3ca   :  { %6491 = vmatpush1.bf16.msra.mxu0 %v8885_v40  ;;  %6369 = vmatprep.subr.bf16.mxu1 %v8890_v44 }
 0x3cb   :  { %6492 = vmatprep.subr.bf16.mxu0 %v8893_v45 }
 0x3cd   :  { %6370 = vmatpush1.bf16.msra.mxu1 %v8888_v62 }
 0x3ce   :  { %6493 = vmatpush1.bf16.msra.mxu0 %v8891_v16  ;;  %6371 = vmatprep.subr.bf16.mxu1 %v8896_v46 }
 0x3cf   :  { %6494 = vmatprep.subr.bf16.mxu0 %v8899_v47 }
 0x3d1   :  { %6372 = vmatpush1.bf16.msra.mxu1 %v8894_v48 }
 0x3d2   :  { %6495 = vmatpush1.bf16.msra.mxu0 %v8897_v51  ;;  %6373 = vmatprep.subr.bf16.mxu1 %v8902_v18 }
 0x3d3   :  { %6496 = vmatprep.subr.bf16.mxu0 %v8905_v53 }
 0x3d5   :  { %6374 = vmatpush1.bf16.msra.mxu1 %v8900_v57 }
 0x3d6   :  { %6497 = vmatpush1.bf16.msra.mxu0 %v8903_v58  ;;  %6375 = vmatprep.subr.bf16.mxu1 %v8908_v54 }
 0x3d7   :  { %6498 = vmatprep.subr.bf16.mxu0 %v8911_v59 }
 0x3d9   :  { %6376 = vmatpush1.bf16.msra.mxu1 %v8906_v60 }
 0x3da   :  { %6499 = vmatpush1.bf16.msra.mxu0 %v8909_v61  ;;  %6377 = vmatprep.subr.bf16.mxu1 %v8914_v1 }
 0x3db   :  { %6500 = vmatprep.subr.bf16.mxu0 %v8917_v2 }
 0x3dd   :  { %6378 = vmatpush1.bf16.msra.mxu1 %v8912_v4 }
 0x3de   :  { %6501 = vmatpush1.bf16.msra.mxu0 %v8915_v5  ;;  %6379 = vmatprep.subr.bf16.mxu1 %v8920_v6 }
 0x3df   :  { %6502 = vmatprep.subr.bf16.mxu0 %v8923_v7 }
 0x3e1   :  { %6380 = vmatpush1.bf16.msra.mxu1 %v8918_v8 }
 0x3e2   :  { %6503 = vmatpush1.bf16.msra.mxu0 %v8921_v9  ;;  %6381 = vmatprep.subr.bf16.mxu1 %v8926_v10  ;;  %v2842_v10 = vld [vmem:[#allocation10 + $0x8] sm:$0xf] }
 0x3e3   :  { %6504 = vmatprep.subr.bf16.mxu0 %v8929_v11  ;;  %v2880_v11 = vrot.slane %v2842_v10, %v9294_v55 }
 0x3e5   :  { %6382 = vmatpush1.bf16.msra.mxu1 %v8924_v12  ;;  %v2888_v12 = vrot.slane %v2842_v10, %v9314_v41 }
 0x3e6   :  { %6505 = vmatpush1.bf16.msra.mxu0 %v8927_v63  ;;  %6383 = vmatprep.subr.bf16.mxu1 %v8932_v14  ;;  %v2884_v63 = vrot.slane %v2842_v10, %v9297_v56  ;;  %v2892_v14 = vrot.slane %v2842_v10, %v9317_v42 }
 0x3e7   :  { %6506 = vmatprep.subr.bf16.mxu0 %v8935_v0 }
 0x3e9   :  { %6384 = vmatpush1.bf16.msra.mxu1 %v8930_v17 }
 0x3ea   :  { %6507 = vmatpush1.bf16.msra.mxu0 %v8933_v20  ;;  %6385 = vmatprep.subr.bf16.mxu1 %v8938_v21 }
 0x3eb   :  { %6508 = vmatprep.subr.bf16.mxu0 %v8941_v23 }
 0x3ed   :  { %6386 = vmatpush1.bf16.msra.mxu1 %v8936_v24 }
 0x3ee   :  { %6509 = vmatpush1.bf16.msra.mxu0 %v8939_v15  ;;  %6387 = vmatprep.subr.bf16.mxu1 %v8944_v25 }
 0x3ef   :  { %6510 = vmatprep.subr.bf16.mxu0 %v8947_v26 }
 0x3f1   :  { %6388 = vmatpush1.bf16.msra.mxu1 %v8942_v28 }
 0x3f2   :  { %6511 = vmatpush1.bf16.msra.mxu0 %v8945_v29  ;;  %6389 = vmatprep.subr.bf16.mxu1 %v8950_v3 }
 0x3f3   :  { %6512 = vmatprep.subr.bf16.mxu0 %v8953_v13 }
 0x3f5   :  { %6390 = vmatpush1.bf16.msra.mxu1 %v8948_v31 }
 0x3f6   :  { %6513 = vmatpush1.bf16.msra.mxu0 %v8951_v32 }
 0x3f8   :  { %6392 = vmatmul.mubr.bf16.vlgmr.msra.gmra.mrb[16].mxu1 %v9339_v22 }
 0x3f9   :  { %6515 = vmatmul.mubr.bf16.vlgmr.msra.gmra.mrb[16].mxu0 %v9339_v22 }
 0x40b   :  { %v6147_v38 = vpop.f32.mrb[12].mxu1 }
 0x40c   :  { %v7570_v39 = vadd.f32 %v6147_v38, %v2864_v35  ;;  %v6270_v19 = vpop.f32.mrb[12].mxu0  ;;  %v6149_v22 = vpop.f32.mrb[13].mxu1 }
 0x40d   :  { %v7572_v40 = vadd.f32 %v6270_v19, %v2872_v50  ;;  %v7571_v44 = vadd.f32 %v6149_v22, %v2868_v36  ;;  %v6272_v45 = vpop.f32.mrb[13].mxu0  ;;  %v6151_v62 = vpop.f32.mrb[14].mxu1 }
 0x40e   :  { %v7550_v16 = vmul.f32 -1.442695, %v7570_v39  ;;  %v7573_v46 = vadd.f32 %v6272_v45, %v2876_v37  ;;  %v6274_v47 = vpop.f32.mrb[14].mxu0  ;;  %v6152_v52 = vpop.f32.mrb[15].mxu1 }
 0x40f   :  { %v7552_v48 = vmul.f32 -1.442695, %v7572_v40  ;;  %v7551_v51 = vmul.f32 -1.442695, %v7571_v44  ;;  %v6275_v18 = vpop.f32.mrb[15].mxu0 }
 0x410   :  { %8970 = vpow2.f32 %v7550_v16  ;;  %v7553_v43 = vmul.f32 -1.442695, %v7573_v46 }
 0x411   :  { %8972 = vpow2.f32 %v7552_v48 }
 0x412   :  { %8974 = vpow2.f32 %v7551_v51 }
 0x413   :  { %8976 = vpow2.f32 %v7553_v43 }
 0x41a   :  { %v8971_v27 = vpop.eup %8970 }
 0x41b   :  { %v8973_v30 = vpop.eup %8972  ;;  %v6563_v53 = vadd.f32 1.0, %v8971_v27 }
 0x41c   :  { %v8975_v57 = vpop.eup %8974  ;;  %v6565_v58 = vadd.f32 1.0, %v8973_v30 }
 0x41d   :  { %v8977_v54 = vpop.eup %8976  ;;  %8978 = vrcp.f32 %v6563_v53  ;;  %v6564_v59 = vadd.f32 1.0, %v8975_v57 }
 0x41e   :  { %8980 = vrcp.f32 %v6565_v58  ;;  %v6566_v60 = vadd.f32 1.0, %v8977_v54 }
 0x41f   :  { %8982 = vrcp.f32 %v6564_v59 }
 0x420   :  { %8984 = vrcp.f32 %v6566_v60 }
 0x427   :  { %v8979_v61 = vpop.eup %8978 }
 0x428   :  { %v8981_v1 = vpop.eup %8980 }
 0x429   :  { %v8983_v2 = vpop.eup %8982 }
 0x42a   :  { %v8985_v4 = vpop.eup %8984  ;;  %v6624_v5 = vcombine.low %v8979_v61, %v8983_v2 }
 0x42b   :  { %v6625_v6 = vcombine.low %v8981_v1, %v8985_v4 }
 0x42c   :  { %v6632_v7 = vrot.slane %v6624_v5, %v9247_v49 }
 0x42d   :  { %v6639_v8 = vrot.slane %v6625_v6, %v9247_v49 }
 0x42f   :  { %v6640_v9 = vcombine.low %v6632_v7, %v6639_v8 }
 0x431   :  { %6662 = vst [vmem:[#allocation11 + $0x8] sm:$0xff] %v6640_v9 }
 0x4cb   :  { %v6393_v0 = vpop.f32.mrb[16].mxu1 }
 0x4cc   :  { %v7574_v17 = vadd.f32 %v6393_v0, %v2880_v11  ;;  %v6516_v20 = vpop.f32.mrb[16].mxu0  ;;  %v6395_v21 = vpop.f32.mrb[17].mxu1 }
 0x4cd   :  { %v7576_v23 = vadd.f32 %v6516_v20, %v2888_v12  ;;  %v7575_v24 = vadd.f32 %v6395_v21, %v2884_v63  ;;  %v6518_v15 = vpop.f32.mrb[17].mxu0  ;;  %v6397_v25 = vpop.f32.mrb[18].mxu1 }
 0x4ce   :  { %v7554_v26 = vmul.f32 -1.442695, %v7574_v17  ;;  %v7577_v28 = vadd.f32 %v6518_v15, %v2892_v14  ;;  %v6520_v29 = vpop.f32.mrb[18].mxu0  ;;  %v6398_v3 = vpop.f32.mrb[19].mxu1 }
 0x4cf   :  { %v7556_v13 = vmul.f32 -1.442695, %v7576_v23  ;;  %v7555_v55 = vmul.f32 -1.442695, %v7575_v24  ;;  %v6521_v31 = vpop.f32.mrb[19].mxu0 }
 0x4d0   :  { %8986 = vpow2.f32 %v7554_v26  ;;  %v7557_v41 = vmul.f32 -1.442695, %v7577_v28 }
 0x4d1   :  { %8988 = vpow2.f32 %v7556_v13 }
 0x4d2   :  { %8990 = vpow2.f32 %v7555_v55 }
 0x4d3   :  { %8992 = vpow2.f32 %v7557_v41 }
 0x4da   :  { %v8987_v56 = vpop.eup %8986 }
 0x4db   :  { %v8989_v42 = vpop.eup %8988  ;;  %v6567_v32 = vadd.f32 1.0, %v8987_v56 }
 0x4dc   :  { %v8991_v33 = vpop.eup %8990  ;;  %v6569_v34 = vadd.f32 1.0, %v8989_v42 }
 0x4dd   :  { %v8993_v35 = vpop.eup %8992  ;;  %8994 = vrcp.f32 %v6567_v32  ;;  %v6568_v50 = vadd.f32 1.0, %v8991_v33 }
 0x4de   :  { %8996 = vrcp.f32 %v6569_v34  ;;  %v6570_v36 = vadd.f32 1.0, %v8993_v35 }
 0x4df   :  { %8998 = vrcp.f32 %v6568_v50 }
 0x4e0   :  { %9000 = vrcp.f32 %v6570_v36 }
 0x4e7   :  { %v8995_v37 = vpop.eup %8994 }
 0x4e8   :  { %v8997_v38 = vpop.eup %8996 }
 0x4e9   :  { %v8999_v39 = vpop.eup %8998 }
 0x4ea   :  { %v9001_v19 = vpop.eup %9000  ;;  %v6641_v22 = vcombine.low %v8995_v37, %v8999_v39 }
 0x4eb   :  { %v6642_v40 = vcombine.low %v8997_v38, %v9001_v19 }
 0x4ec   :  { %v6649_v44 = vrot.slane %v6641_v22, %v9247_v49 }
 0x4ed   :  { %v6656_v45 = vrot.slane %v6642_v40, %v9247_v49 }
 0x4ef   :  { %v6657_v62 = vcombine.low %v6649_v44, %v6656_v45 }
 0x4f1   :  { %6663 = vst [vmem:[#allocation11 + $0x10] sm:$0xff] %v6657_v62 }
 0x4f2   :  { %9124 = shalt.err (!%p9121_p2)
}
 0x4f3   :  { %s9125_s3 = scalar_lea.hbm %s9416_s5, 384 }
 0x4f4   :  { %p9126_p3 = scmp.ne.s32.totalorder %s9416_s5, %s9125_s3  ;;  %p9129_p4 = scmp.lt.u32.totalorder %s9125_s3, %s9416_s5 }
 0x4f6   :  { %p9131_p5 = pnand %p9129_p4, %p9126_p3 }
 0x4f8   :  { %9134 = shalt.err (!%p9131_p5)
}
 0x4f9   :  { %6673 = dma.vmem_to_hbm [thread:$0]  %s6671_s27, 384, %s9416_s5, [#allocation4]  }
 0x4fa   :  { %9141 = dma.done.wait [#allocation4], 384  }
 0x4fb   :  { %9142 = vsyncadd [#allocation4], 4294966912 }
 0x4fc   :  { %6677 = vsyncpa [#allocation3], 1 }
 0x4fd   :  { %6678 = vsyncpa [#allocation6], 1 }
 0x4fe   :  { %6679 = vsyncpa [#allocation9], 1 }
 0x4ff   :  { %6680 = vsyncpa [#allocation4], 1 }

</bundles_post_ra>
